<compile_context>
chip_gen: v7x
topology: tpu7x:2x2x1
jax: 0.10.0
libtpu: 0.0.40
codegen_flags: <defaults>
</compile_context>

<pallas_src>
import functools

import jax
import jax.numpy as jnp
from jax import lax
from jax.experimental import pallas as pl
from jax.experimental.pallas import tpu as pltpu


# ---------------------------------------------------------------------------
# The fused kernel.  One grid step == one batch element.
#
#   ap*  : (1, h+2, w+2, Cin)  bf16  zero-padded Focuss inputs (after s2d)
#   sk*  : (1, h*w,  Cs)       bf16  UNPADDED skip features f1/f2/f3
#   wf*  : (3, 3*Cin, Cf)      bf16  Focuss conv weights, BN folded, dx-merged
#   bf*  : (1, Cf)             f32   folded BN bias
#   wc*a/b, bc* : split 1x1 ccat weights (bf16) + bias (f32)
#   wdn  : (9, Cp2, C16) bf16, bdn : (1, C16) f32   final stride-2 conv
#   o0..o3 : (1, h*w, C) f32 outputs (dense interior, single bulk store each)
# ---------------------------------------------------------------------------
def _neck_kernel(
    ap1, sk1, ap2, sk2, ap3, sk3,                        # activations
    wf1, bf1, wf2, bf2, wf3, bf3,                        # Focuss convs
    wc1a, wc1b, bc1, wc2a, wc2b, bc2, wc3a, wc3b, bc3,   # ccat 1x1 convs
    wdn, bdn,                                            # c1 downsample conv
    o0, o1, o2, o3,                                      # outputs
    *, dims):
    f32 = jnp.float32
    bf16 = jnp.bfloat16

    def silu(y):
        # y * sigmoid(y); approx reciprocal runs on the EUP slot (f32 math).
        return y * pl.reciprocal(1.0 + jnp.exp(-y), approx=True)

    def branch(ap_ref, sk_ref, wf_ref, bf_ref, wca_ref, wcb_ref, bc_ref,
               o_ref, h, w):
        cin = ap_ref.shape[-1]
        cf = wf_ref.shape[-1]
        ap = ap_ref[0]                                   # (h+2, w+2, cin) bf16
        # --- Focuss 3x3 conv: 3 matmuls with K=3*cin (dx taps lane-merged) ---
        acc = jnp.zeros((h * w, cf), f32)
        for dy in range(3):
            win = jnp.concatenate(
                [ap[dy:dy + h, dx:dx + w, :] for dx in range(3)], axis=-1)
            acc = acc + jnp.dot(win.reshape(h * w, 3 * cin), wf_ref[dy],
                                preferred_element_type=f32)
        y = silu(acc + bf_ref[...])                      # f32, interior rows only
        # --- cat([y, skip], ch) + 1x1 conv == two split-weight matmuls ---
        skip = sk_ref[0]                                 # (h*w, cs) bf16
        cat = (jnp.dot(y.astype(bf16), wca_ref[...], preferred_element_type=f32)
               + jnp.dot(skip, wcb_ref[...], preferred_element_type=f32)
               + bc_ref[...])
        o_ref[0] = cat                                   # ONE bulk store
        return cat

    (h1, w1), (h2, w2), (h3, w3) = dims
    branch(ap1, sk1, wf1, bf1, wc1a, wc1b, bc1, o0, h1, w1)
    branch(ap2, sk2, wf2, bf2, wc2a, wc2b, bc2, o1, h2, w2)
    cat3 = branch(ap3, sk3, wf3, bf3, wc3a, wc3b, bc3, o2, h3, w3)

    # --- c1: 3x3 / stride 2 / pad 1 conv on p2 (read from the value, not o2) ---
    cp2 = cat3.shape[-1]
    c16 = wdn.shape[-1]
    ho_n = (h3 - 1) // 2 + 1
    wo_n = (w3 - 1) // 2 + 1

    # zero-pad p2 to (h3+2, w3+2, cp2) with explicit concats (bf16 operand)
    x = cat3.reshape(h3, w3, cp2).astype(bf16)
    zc = jnp.zeros((h3, 1, cp2), bf16)
    x = jnp.concatenate([zc, x, zc], axis=1)
    zr = jnp.zeros((1, w3 + 2, cp2), bf16)
    x = jnp.concatenate([zr, x, zr], axis=0)             # (h3+2, w3+2, cp2)

    # parity split (even/odd rows & cols) built from plain unit slices + concat,
    # so no strided loads are needed; tap windows become contiguous slices.
    nce = (w3 + 3) // 2
    nco = (w3 + 2) // 2
    xe = jnp.concatenate([x[:, 2 * j:2 * j + 1, :] for j in range(nce)], axis=1)
    xo = jnp.concatenate([x[:, 2 * j + 1:2 * j + 2, :] for j in range(nco)], axis=1)

    def rsplit(v, p):
        n = (h3 + 3 - p) // 2
        return jnp.concatenate([v[2 * i + p:2 * i + p + 1] for i in range(n)],
                               axis=0)

    planes = {(0, 0): rsplit(xe, 0), (0, 1): rsplit(xo, 0),
              (1, 0): rsplit(xe, 1), (1, 1): rsplit(xo, 1)}

    # 9 full-output-plane matmuls (M = ho_n*wo_n), bias added once at the end.
    acc3 = jnp.zeros((ho_n * wo_n, c16), f32)
    for dy in range(3):
        for dx in range(3):
            pln = planes[(dy % 2, dx % 2)]
            win = pln[dy // 2:dy // 2 + ho_n, dx // 2:dx // 2 + wo_n, :]
            acc3 = acc3 + jnp.dot(win.reshape(ho_n * wo_n, cp2),
                                  wdn[dy * 3 + dx], preferred_element_type=f32)
    o3[0] = acc3 + bdn[...]


# ---------------------------------------------------------------------------
# BlockSpec helpers (batch-blocked activations/outputs, replicated params)
# ---------------------------------------------------------------------------
def _batched_spec(shape):
    rest = (0,) * (len(shape) - 1)

    def idx(b):
        return (b,) + rest

    return pl.BlockSpec((1,) + tuple(shape[1:]), idx)


def _param_spec(shape):
    zero = (0,) * len(shape)

    def idx(b):
        return zero

    return pl.BlockSpec(tuple(shape), idx)


# ---------------------------------------------------------------------------
# Wrapper: NCHW interface (matches nn.Conv2d).  One-time XLA glue does
# NCHW->NHWC, space_to_depth, zero-pad + bf16 cast; everything else is the
# single fused pallas_call.
# ---------------------------------------------------------------------------
def neck_forward(kparams, f0, f1, f2, f3):
    bf16 = jnp.bfloat16
    f0 = jnp.transpose(f0, (0, 2, 3, 1))
    f1 = jnp.transpose(f1, (0, 2, 3, 1))
    f2 = jnp.transpose(f2, (0, 2, 3, 1))
    f3 = jnp.transpose(f3, (0, 2, 3, 1))

    def s2d(x):  # NHWC; same channel order as torch.cat([::2,::2],[1::2,::2],...)
        return jnp.concatenate(
            [x[:, ::2, ::2, :], x[:, 1::2, ::2, :],
             x[:, ::2, 1::2, :], x[:, 1::2, 1::2, :]], axis=-1)

    a1 = s2d(f0)
    a2 = s2d(a1)
    a3 = s2d(a2)

    def pad_hw(x):   # zero-pad H/W by 1, keep NHWC, cast matmul operand to bf16
        return jnp.pad(x, ((0, 0), (1, 1), (1, 1), (0, 0))).astype(bf16)

    def flat(x):     # skips stay UNPADDED: (B, h*w, C) bf16
        b, h, w, c = x.shape
        return x.reshape(b, h * w, c).astype(bf16)

    acts = [pad_hw(a1), flat(f1), pad_hw(a2), flat(f2), pad_hw(a3), flat(f3)]

    B = f0.shape[0]
    h1, w1 = a1.shape[1], a1.shape[2]
    h2, w2 = a2.shape[1], a2.shape[2]
    h3, w3 = a3.shape[1], a3.shape[2]
    ho3 = (h3 - 1) // 2 + 1
    wo3 = (w3 - 1) // 2 + 1

    cp0 = kparams["bc1"].shape[-1]
    cp1 = kparams["bc2"].shape[-1]
    cp2 = kparams["bc3"].shape[-1]
    cp3 = kparams["bdn"].shape[-1]

    par_names = ("wf1", "bf1", "wf2", "bf2", "wf3", "bf3",
                 "wc1a", "wc1b", "bc1", "wc2a", "wc2b", "bc2",
                 "wc3a", "wc3b", "bc3", "wdn", "bdn")
    pars = [kparams[n] for n in par_names]

    out_shapes = [
        jax.ShapeDtypeStruct((B, h1 * w1, cp0), jnp.float32),
        jax.ShapeDtypeStruct((B, h2 * w2, cp1), jnp.float32),
        jax.ShapeDtypeStruct((B, h3 * w3, cp2), jnp.float32),
        jax.ShapeDtypeStruct((B, ho3 * wo3, cp3), jnp.float32),
    ]

    kernel = functools.partial(_neck_kernel,
                               dims=((h1, w1), (h2, w2), (h3, w3)))

    p0f, p1f, p2f, p3f = pl.pallas_call(
        kernel,
        out_shape=out_shapes,
        grid_spec=pltpu.PrefetchScalarGridSpec(
            num_scalar_prefetch=0,
            grid=(B,),
            in_specs=[_batched_spec(x.shape) for x in acts]
                     + [_param_spec(p.shape) for p in pars],
            out_specs=[_batched_spec(s.shape) for s in out_shapes]),
        compiler_params=pltpu.CompilerParams(
            dimension_semantics=("parallel",)),   # 2 TCs on v7x; free on v5e/v6e
    )(*acts, *pars)

    def to_nchw(x, h, w):
        b, _, c = x.shape
        return jnp.transpose(x.reshape(b, h, w, c), (0, 3, 1, 2))

    return (to_nchw(p0f, h1, w1), to_nchw(p1f, h2, w2),
            to_nchw(p2f, h3, w3), to_nchw(p3f, ho3, wo3))


# ---------------------------------------------------------------------------
# Deterministic synthetic parameters (no checkpoint load)
# ---------------------------------------------------------------------------
def init_neck_params(key, c):
    eps = 1e-3  # BatchNorm2d eps=0.001

    def conv_bn(key, cin, cout, k):
        k1, k2, k3, k4, k5 = jax.random.split(key, 5)
        w = jax.random.normal(k1, (k, k, cin, cout), jnp.float32) * 0.05
        gamma = jax.random.uniform(k2, (cout,), jnp.float32, 0.5, 1.5)
        beta = jax.random.normal(k3, (cout,), jnp.float32) * 0.1
        mean = jax.random.normal(k4, (cout,), jnp.float32) * 0.1
        var = jax.random.uniform(k5, (cout,), jnp.float32, 0.5, 1.5)
        scale = gamma / jnp.sqrt(var + eps)
        bias = beta - mean * scale
        return dict(w=w, scale=scale, bias=bias)

    def plain_conv(key, cin, cout, k):
        k1, k2 = jax.random.split(key)
        w = jax.random.normal(k1, (k, k, cin, cout), jnp.float32) * 0.05
        b = jax.random.normal(k2, (cout,), jnp.float32) * 0.1
        return dict(w=w, scale=jnp.ones((cout,), jnp.float32), bias=b)

    keys = jax.random.split(key, 7)
    return dict(
        f1=conv_bn(keys[0], c * 4, c * 2, 3),      # Focuss T=1
        f2=conv_bn(keys[1], c * 16, c * 4, 3),     # Focuss T=2
        f3=conv_bn(keys[2], c * 64, c * 8, 3),     # Focuss T=3
        ccat1=plain_conv(keys[3], c * 4, c * 2, 1),
        ccat2=plain_conv(keys[4], c * 8, c * 4, 1),
        ccat3=plain_conv(keys[5], c * 16, c * 8, 1),
        c1=plain_conv(keys[6], c * 8, c * 16, 3),
    )


def fold_params(params, c):
    """Fold BN scale into weights, cast matmul operands to bf16, reshape to
    kernel layout (dx-merged 3x3 taps, split 1x1 weights, per-tap c1 weights)."""
    bf16 = jnp.bfloat16

    def fold3x3_merged(p):          # -> (3, 3*cin, cout) bf16, (1, cout) f32
        w = p["w"] * p["scale"][None, None, None, :]
        _, _, cin, cout = w.shape
        return (w.reshape(3, 3 * cin, cout).astype(bf16),
                p["bias"].reshape(1, cout).astype(jnp.float32))

    def fold3x3_taps(p):            # -> (9, cin, cout) bf16, (1, cout) f32
        w = p["w"] * p["scale"][None, None, None, :]
        _, _, cin, cout = w.shape
        return (w.reshape(9, cin, cout).astype(bf16),
                p["bias"].reshape(1, cout).astype(jnp.float32))

    def fold1x1_split(p, split):    # -> (split, cout), (cin-split, cout) bf16
        cin, cout = p["w"].shape[2], p["w"].shape[3]
        w = (p["w"] * p["scale"][None, None, None, :]).reshape(cin, cout)
        return (w[:split, :].astype(bf16), w[split:, :].astype(bf16),
                p["bias"].reshape(1, cout).astype(jnp.float32))

    wf1, bf1 = fold3x3_merged(params["f1"])
    wf2, bf2 = fold3x3_merged(params["f2"])
    wf3, bf3 = fold3x3_merged(params["f3"])
    wc1a, wc1b, bc1 = fold1x1_split(params["ccat1"], c * 2)
    wc2a, wc2b, bc2 = fold1x1_split(params["ccat2"], c * 4)
    wc3a, wc3b, bc3 = fold1x1_split(params["ccat3"], c * 8)
    wdn, bdn = fold3x3_taps(params["c1"])
    return dict(wf1=wf1, bf1=bf1, wf2=wf2, bf2=bf2, wf3=wf3, bf3=bf3,
                wc1a=wc1a, wc1b=wc1b, bc1=bc1,
                wc2a=wc2a, wc2b=wc2b, bc2=bc2,
                wc3a=wc3a, wc3b=wc3b, bc3=bc3,
                wdn=wdn, bdn=bdn)


# ---------------------------------------------------------------------------
# Pure-JAX NCHW reference (mirrors the PyTorch module) for a numerical check
# ---------------------------------------------------------------------------
def neck_reference(params, f0, f1, f2, f3):
    def conv(x, p, s, pad, act):
        y = lax.conv_general_dilated(
            x, p["w"], (s, s), [(pad, pad), (pad, pad)],
            dimension_numbers=("NCHW", "HWIO", "NCHW"),
            precision=lax.Precision.HIGHEST)
        y = y * p["scale"][None, :, None, None] + p["bias"][None, :, None, None]
        return y * jax.nn.sigmoid(y) if act else y

    def s2d(x):
        return jnp.concatenate([x[:, :, ::2, ::2], x[:, :, 1::2, ::2],
                                x[:, :, ::2, 1::2], x[:, :, 1::2, 1::2]], axis=1)

    p0 = conv(s2d(f0), params["f1"], 1, 1, True)
    p1 = conv(s2d(s2d(f0)), params["f2"], 1, 1, True)
    p2 = conv(s2d(s2d(s2d(f0))), params["f3"], 1, 1, True)
    p0 = conv(jnp.concatenate([p0, f1], 1), params["ccat1"], 1, 0, False)
    p1 = conv(jnp.concatenate([p1, f2], 1), params["ccat2"], 1, 0, False)
    p2 = conv(jnp.concatenate([p2, f3], 1), params["ccat3"], 1, 0, False)
    p3 = conv(p2, params["c1"], 2, 1, False)
    return p0, p1, p2, p3


if __name__ == "__main__":
    base_channels = 4
    B, H, W = 2, 16, 16
    key = jax.random.PRNGKey(0)
    k_params, k0, k1, k2, k3 = jax.random.split(key, 5)

    params = init_neck_params(k_params, base_channels)
    kparams = fold_params(params, base_channels)   # BN folded, bf16 operands

    f0 = jax.random.normal(k0, (B, base_channels,      H,      W),      jnp.float32)
    f1 = jax.random.normal(k1, (B, base_channels * 2,  H // 2, W // 2), jnp.float32)
    f2 = jax.random.normal(k2, (B, base_channels * 4,  H // 4, W // 4), jnp.float32)
    f3 = jax.random.normal(k3, (B, base_channels * 8,  H // 8, W // 8), jnp.float32)

    fwd = jax.jit(functools.partial(neck_forward, kparams))
    p0, p1, p2, p3 = fwd(f0, f1, f2, f3)
    jax.block_until_ready((p0, p1, p2, p3))

    assert p0.shape == (B, base_channels * 2,  H // 2,  W // 2)
    assert p1.shape == (B, base_channels * 4,  H // 4,  W // 4)
    assert p2.shape == (B, base_channels * 8,  H // 8,  W // 8)
    assert p3.shape == (B, base_channels * 16, H // 16, W // 16)

    # numerical check against the pure-JAX NCHW reference of the module
    r0, r1, r2, r3 = jax.jit(functools.partial(neck_reference, params))(
        f0, f1, f2, f3)
    for name, a, r in (("p0", p0, r0), ("p1", p1, r1),
                       ("p2", p2, r2), ("p3", p3, r3)):
        err = float(jnp.max(jnp.abs(a - r)))
        ref = float(jnp.max(jnp.abs(r)))
        assert err <= 5e-2 + 5e-2 * ref, (name, err, ref)

    print("KERNEL_OK")
</pallas_src>

<mosaic_0001>
module attributes {stable_mosaic.version = 11 : i64} {
  func.func @_neck_kernel(%arg0: i32, %arg1: memref<1x10x10x16xbf16, #tpu.memory_space<vmem>>, %arg2: memref<1x64x8xbf16, #tpu.memory_space<vmem>>, %arg3: memref<1x6x6x64xbf16, #tpu.memory_space<vmem>>, %arg4: memref<1x16x16xbf16, #tpu.memory_space<vmem>>, %arg5: memref<1x4x4x256xbf16, #tpu.memory_space<vmem>>, %arg6: memref<1x4x32xbf16, #tpu.memory_space<vmem>>, %arg7: memref<3x48x8xbf16, #tpu.memory_space<vmem>>, %arg8: memref<1x8xf32, #tpu.memory_space<vmem>>, %arg9: memref<3x192x16xbf16, #tpu.memory_space<vmem>>, %arg10: memref<1x16xf32, #tpu.memory_space<vmem>>, %arg11: memref<3x768x32xbf16, #tpu.memory_space<vmem>>, %arg12: memref<1x32xf32, #tpu.memory_space<vmem>>, %arg13: memref<8x8xbf16, #tpu.memory_space<vmem>>, %arg14: memref<8x8xbf16, #tpu.memory_space<vmem>>, %arg15: memref<1x8xf32, #tpu.memory_space<vmem>>, %arg16: memref<16x16xbf16, #tpu.memory_space<vmem>>, %arg17: memref<16x16xbf16, #tpu.memory_space<vmem>>, %arg18: memref<1x16xf32, #tpu.memory_space<vmem>>, %arg19: memref<32x32xbf16, #tpu.memory_space<vmem>>, %arg20: memref<32x32xbf16, #tpu.memory_space<vmem>>, %arg21: memref<1x32xf32, #tpu.memory_space<vmem>>, %arg22: memref<9x32x64xbf16, #tpu.memory_space<vmem>>, %arg23: memref<1x64xf32, #tpu.memory_space<vmem>>, %arg24: memref<1x64x8xf32, #tpu.memory_space<vmem>>, %arg25: memref<1x16x16xf32, #tpu.memory_space<vmem>>, %arg26: memref<1x4x32xf32, #tpu.memory_space<vmem>>, %arg27: memref<1x1x64xf32, #tpu.memory_space<vmem>>) attributes {dimension_semantics = [#tpu.dimension_semantics<parallel>], iteration_bounds = array<i64: 2>, scalar_prefetch = 0 : i64, scratch_operands = 0 : i64, tpu.core_type = #tpu.core_type<tc>, window_params = [{transform_indices = @transform_0, window_bounds = array<i64: 1, 10, 10, 16>}, {transform_indices = @transform_1, window_bounds = array<i64: 1, 64, 8>}, {transform_indices = @transform_2, window_bounds = array<i64: 1, 6, 6, 64>}, {transform_indices = @transform_3, window_bounds = array<i64: 1, 16, 16>}, {transform_indices = @transform_4, window_bounds = array<i64: 1, 4, 4, 256>}, {transform_indices = @transform_5, window_bounds = array<i64: 1, 4, 32>}, {pipeline_mode = #tpu.pipeline_mode<synchronous>, transform_indices = @transform_6, window_bounds = array<i64: 3, 48, 8>}, {pipeline_mode = #tpu.pipeline_mode<synchronous>, transform_indices = @transform_7, window_bounds = array<i64: 1, 8>}, {pipeline_mode = #tpu.pipeline_mode<synchronous>, transform_indices = @transform_8, window_bounds = array<i64: 3, 192, 16>}, {pipeline_mode = #tpu.pipeline_mode<synchronous>, transform_indices = @transform_9, window_bounds = array<i64: 1, 16>}, {pipeline_mode = #tpu.pipeline_mode<synchronous>, transform_indices = @transform_10, window_bounds = array<i64: 3, 768, 32>}, {pipeline_mode = #tpu.pipeline_mode<synchronous>, transform_indices = @transform_11, window_bounds = array<i64: 1, 32>}, {pipeline_mode = #tpu.pipeline_mode<synchronous>, transform_indices = @transform_12, window_bounds = array<i64: 8, 8>}, {pipeline_mode = #tpu.pipeline_mode<synchronous>, transform_indices = @transform_13, window_bounds = array<i64: 8, 8>}, {pipeline_mode = #tpu.pipeline_mode<synchronous>, transform_indices = @transform_14, window_bounds = array<i64: 1, 8>}, {pipeline_mode = #tpu.pipeline_mode<synchronous>, transform_indices = @transform_15, window_bounds = array<i64: 16, 16>}, {pipeline_mode = #tpu.pipeline_mode<synchronous>, transform_indices = @transform_16, window_bounds = array<i64: 16, 16>}, {pipeline_mode = #tpu.pipeline_mode<synchronous>, transform_indices = @transform_17, window_bounds = array<i64: 1, 16>}, {pipeline_mode = #tpu.pipeline_mode<synchronous>, transform_indices = @transform_18, window_bounds = array<i64: 32, 32>}, {pipeline_mode = #tpu.pipeline_mode<synchronous>, transform_indices = @transform_19, window_bounds = array<i64: 32, 32>}, {pipeline_mode = #tpu.pipeline_mode<synchronous>, transform_indices = @transform_20, window_bounds = array<i64: 1, 32>}, {pipeline_mode = #tpu.pipeline_mode<synchronous>, transform_indices = @transform_21, window_bounds = array<i64: 9, 32, 64>}, {pipeline_mode = #tpu.pipeline_mode<synchronous>, transform_indices = @transform_22, window_bounds = array<i64: 1, 64>}, {transform_indices = @transform_23, window_bounds = array<i64: 1, 64, 8>}, {transform_indices = @transform_24, window_bounds = array<i64: 1, 16, 16>}, {transform_indices = @transform_25, window_bounds = array<i64: 1, 4, 32>}, {transform_indices = @transform_26, window_bounds = array<i64: 1, 1, 64>}]} {
    %c0 = arith.constant 0 : index
    %c0_0 = arith.constant 0 : index
    %c0_1 = arith.constant 0 : index
    %c0_2 = arith.constant 0 : index
    %0 = vector.load %arg1[%c0, %c0_0, %c0_1, %c0_2] : memref<1x10x10x16xbf16, #tpu.memory_space<vmem>>, vector<1x10x10x16xbf16>
    %1 = vector.shape_cast %0 : vector<1x10x10x16xbf16> to vector<10x10x16xbf16>
    %cst = arith.constant 0.000000e+00 : f32
    %2 = vector.broadcast %cst : f32 to vector<64x8xf32>
    %3 = vector.extract_strided_slice %1 {offsets = [0, 0, 0], sizes = [8, 8, 16], strides = [1, 1, 1]} : vector<10x10x16xbf16> to vector<8x8x16xbf16>
    %4 = vector.extract_strided_slice %1 {offsets = [0, 1, 0], sizes = [8, 8, 16], strides = [1, 1, 1]} : vector<10x10x16xbf16> to vector<8x8x16xbf16>
    %5 = vector.extract_strided_slice %1 {offsets = [0, 2, 0], sizes = [8, 8, 16], strides = [1, 1, 1]} : vector<10x10x16xbf16> to vector<8x8x16xbf16>
    %6 = tpu.concatenate %3, %4, %5 in 2 : vector<8x8x16xbf16>, vector<8x8x16xbf16>, vector<8x8x16xbf16> -> vector<8x8x48xbf16>
    %7 = vector.shape_cast %6 : vector<8x8x48xbf16> to vector<64x48xbf16>
    %c0_3 = arith.constant 0 : index
    %c0_4 = arith.constant 0 : index
    %c0_5 = arith.constant 0 : index
    %8 = vector.load %arg7[%c0_3, %c0_4, %c0_5] : memref<3x48x8xbf16, #tpu.memory_space<vmem>>, vector<1x48x8xbf16>
    %9 = vector.shape_cast %8 : vector<1x48x8xbf16> to vector<48x8xbf16>
    %cst_6 = arith.constant dense<0.000000e+00> : vector<64x8xf32>
    %10 = tpu.matmul %7, %9, %cst_6 {dimension_numbers = #tpu.dot_dimension_numbers<[1], [0], [0], [1], [0, 0, 1, 1], [], []>} : vector<64x48xbf16>, vector<48x8xbf16>, vector<64x8xf32> -> vector<64x8xf32>
    %11 = arith.addf %2, %10 : vector<64x8xf32>
    %12 = vector.extract_strided_slice %1 {offsets = [1, 0, 0], sizes = [8, 8, 16], strides = [1, 1, 1]} : vector<10x10x16xbf16> to vector<8x8x16xbf16>
    %13 = vector.extract_strided_slice %1 {offsets = [1, 1, 0], sizes = [8, 8, 16], strides = [1, 1, 1]} : vector<10x10x16xbf16> to vector<8x8x16xbf16>
    %14 = vector.extract_strided_slice %1 {offsets = [1, 2, 0], sizes = [8, 8, 16], strides = [1, 1, 1]} : vector<10x10x16xbf16> to vector<8x8x16xbf16>
    %15 = tpu.concatenate %12, %13, %14 in 2 : vector<8x8x16xbf16>, vector<8x8x16xbf16>, vector<8x8x16xbf16> -> vector<8x8x48xbf16>
    %16 = vector.shape_cast %15 : vector<8x8x48xbf16> to vector<64x48xbf16>
    %c1 = arith.constant 1 : index
    %c0_7 = arith.constant 0 : index
    %c0_8 = arith.constant 0 : index
    %17 = vector.load %arg7[%c1, %c0_7, %c0_8] : memref<3x48x8xbf16, #tpu.memory_space<vmem>>, vector<1x48x8xbf16>
    %18 = vector.shape_cast %17 : vector<1x48x8xbf16> to vector<48x8xbf16>
    %cst_9 = arith.constant dense<0.000000e+00> : vector<64x8xf32>
    %19 = tpu.matmul %16, %18, %cst_9 {dimension_numbers = #tpu.dot_dimension_numbers<[1], [0], [0], [1], [0, 0, 1, 1], [], []>} : vector<64x48xbf16>, vector<48x8xbf16>, vector<64x8xf32> -> vector<64x8xf32>
    %20 = arith.addf %11, %19 : vector<64x8xf32>
    %21 = vector.extract_strided_slice %1 {offsets = [2, 0, 0], sizes = [8, 8, 16], strides = [1, 1, 1]} : vector<10x10x16xbf16> to vector<8x8x16xbf16>
    %22 = vector.extract_strided_slice %1 {offsets = [2, 1, 0], sizes = [8, 8, 16], strides = [1, 1, 1]} : vector<10x10x16xbf16> to vector<8x8x16xbf16>
    %23 = vector.extract_strided_slice %1 {offsets = [2, 2, 0], sizes = [8, 8, 16], strides = [1, 1, 1]} : vector<10x10x16xbf16> to vector<8x8x16xbf16>
    %24 = tpu.concatenate %21, %22, %23 in 2 : vector<8x8x16xbf16>, vector<8x8x16xbf16>, vector<8x8x16xbf16> -> vector<8x8x48xbf16>
    %25 = vector.shape_cast %24 : vector<8x8x48xbf16> to vector<64x48xbf16>
    %c2 = arith.constant 2 : index
    %c0_10 = arith.constant 0 : index
    %c0_11 = arith.constant 0 : index
    %26 = vector.load %arg7[%c2, %c0_10, %c0_11] : memref<3x48x8xbf16, #tpu.memory_space<vmem>>, vector<1x48x8xbf16>
    %27 = vector.shape_cast %26 : vector<1x48x8xbf16> to vector<48x8xbf16>
    %cst_12 = arith.constant dense<0.000000e+00> : vector<64x8xf32>
    %28 = tpu.matmul %25, %27, %cst_12 {dimension_numbers = #tpu.dot_dimension_numbers<[1], [0], [0], [1], [0, 0, 1, 1], [], []>} : vector<64x48xbf16>, vector<48x8xbf16>, vector<64x8xf32> -> vector<64x8xf32>
    %29 = arith.addf %20, %28 : vector<64x8xf32>
    %c0_13 = arith.constant 0 : index
    %c0_14 = arith.constant 0 : index
    %30 = vector.load %arg8[%c0_13, %c0_14] : memref<1x8xf32, #tpu.memory_space<vmem>>, vector<1x8xf32>
    %31 = vector.broadcast %30 : vector<1x8xf32> to vector<64x8xf32>
    %32 = arith.addf %29, %31 : vector<64x8xf32>
    %cst_15 = arith.constant 0.000000e+00 : f32
    %33 = vector.broadcast %cst_15 : f32 to vector<64x8xf32>
    %34 = arith.subf %33, %32 : vector<64x8xf32>
    %35 = math.exp %34 : vector<64x8xf32>
    %cst_16 = arith.constant 1.000000e+00 : f32
    %36 = vector.broadcast %cst_16 : f32 to vector<64x8xf32>
    %37 = arith.addf %36, %35 : vector<64x8xf32>
    %38 = tpu.reciprocal %37 {approx = true} : vector<64x8xf32> -> vector<64x8xf32>
    %39 = arith.mulf %32, %38 : vector<64x8xf32>
    %c0_17 = arith.constant 0 : index
    %c0_18 = arith.constant 0 : index
    %c0_19 = arith.constant 0 : index
    %40 = vector.load %arg2[%c0_17, %c0_18, %c0_19] : memref<1x64x8xbf16, #tpu.memory_space<vmem>>, vector<1x64x8xbf16>
    %41 = vector.shape_cast %40 : vector<1x64x8xbf16> to vector<64x8xbf16>
    %42 = arith.truncf %39 : vector<64x8xf32> to vector<64x8xbf16>
    %c0_20 = arith.constant 0 : index
    %c0_21 = arith.constant 0 : index
    %43 = vector.load %arg13[%c0_20, %c0_21] : memref<8x8xbf16, #tpu.memory_space<vmem>>, vector<8x8xbf16>
    %cst_22 = arith.constant dense<0.000000e+00> : vector<64x8xf32>
    %44 = tpu.matmul %42, %43, %cst_22 {dimension_numbers = #tpu.dot_dimension_numbers<[1], [0], [0], [1], [0, 0, 1, 1], [], []>} : vector<64x8xbf16>, vector<8x8xbf16>, vector<64x8xf32> -> vector<64x8xf32>
    %c0_23 = arith.constant 0 : index
    %c0_24 = arith.constant 0 : index
    %45 = vector.load %arg14[%c0_23, %c0_24] : memref<8x8xbf16, #tpu.memory_space<vmem>>, vector<8x8xbf16>
    %cst_25 = arith.constant dense<0.000000e+00> : vector<64x8xf32>
    %46 = tpu.matmul %41, %45, %cst_25 {dimension_numbers = #tpu.dot_dimension_numbers<[1], [0], [0], [1], [0, 0, 1, 1], [], []>} : vector<64x8xbf16>, vector<8x8xbf16>, vector<64x8xf32> -> vector<64x8xf32>
    %47 = arith.addf %44, %46 : vector<64x8xf32>
    %c0_26 = arith.constant 0 : index
    %c0_27 = arith.constant 0 : index
    %48 = vector.load %arg15[%c0_26, %c0_27] : memref<1x8xf32, #tpu.memory_space<vmem>>, vector<1x8xf32>
    %49 = vector.broadcast %48 : vector<1x8xf32> to vector<64x8xf32>
    %50 = arith.addf %47, %49 : vector<64x8xf32>
    %c0_28 = arith.constant 0 : index
    %c0_29 = arith.constant 0 : index
    %c0_30 = arith.constant 0 : index
    %51 = vector.load %arg24[%c0_28, %c0_29, %c0_30] : memref<1x64x8xf32, #tpu.memory_space<vmem>>, vector<1x64x8xf32>
    %52 = vector.shape_cast %51 : vector<1x64x8xf32> to vector<64x8xf32>
    %53 = vector.shape_cast %50 : vector<64x8xf32> to vector<1x64x8xf32>
    tpu.vector_store %arg24[%c0_28, %c0_29, %c0_30], %53 {strides = array<i32>} : memref<1x64x8xf32, #tpu.memory_space<vmem>>, vector<1x64x8xf32>,
    %c0_31 = arith.constant 0 : index
    %c0_32 = arith.constant 0 : index
    %c0_33 = arith.constant 0 : index
    %c0_34 = arith.constant 0 : index
    %54 = vector.load %arg3[%c0_31, %c0_32, %c0_33, %c0_34] : memref<1x6x6x64xbf16, #tpu.memory_space<vmem>>, vector<1x6x6x64xbf16>
    %55 = vector.shape_cast %54 : vector<1x6x6x64xbf16> to vector<6x6x64xbf16>
    %cst_35 = arith.constant 0.000000e+00 : f32
    %56 = vector.broadcast %cst_35 : f32 to vector<16x16xf32>
    %57 = vector.extract_strided_slice %55 {offsets = [0, 0, 0], sizes = [4, 4, 64], strides = [1, 1, 1]} : vector<6x6x64xbf16> to vector<4x4x64xbf16>
    %58 = vector.extract_strided_slice %55 {offsets = [0, 1, 0], sizes = [4, 4, 64], strides = [1, 1, 1]} : vector<6x6x64xbf16> to vector<4x4x64xbf16>
    %59 = vector.extract_strided_slice %55 {offsets = [0, 2, 0], sizes = [4, 4, 64], strides = [1, 1, 1]} : vector<6x6x64xbf16> to vector<4x4x64xbf16>
    %60 = tpu.concatenate %57, %58, %59 in 2 : vector<4x4x64xbf16>, vector<4x4x64xbf16>, vector<4x4x64xbf16> -> vector<4x4x192xbf16>
    %61 = vector.shape_cast %60 : vector<4x4x192xbf16> to vector<16x192xbf16>
    %c0_36 = arith.constant 0 : index
    %c0_37 = arith.constant 0 : index
    %c0_38 = arith.constant 0 : index
    %62 = vector.load %arg9[%c0_36, %c0_37, %c0_38] : memref<3x192x16xbf16, #tpu.memory_space<vmem>>, vector<1x192x16xbf16>
    %63 = vector.shape_cast %62 : vector<1x192x16xbf16> to vector<192x16xbf16>
    %cst_39 = arith.constant dense<0.000000e+00> : vector<16x16xf32>
    %64 = tpu.matmul %61, %63, %cst_39 {dimension_numbers = #tpu.dot_dimension_numbers<[1], [0], [0], [1], [0, 0, 1, 1], [], []>} : vector<16x192xbf16>, vector<192x16xbf16>, vector<16x16xf32> -> vector<16x16xf32>
    %65 = arith.addf %56, %64 : vector<16x16xf32>
    %66 = vector.extract_strided_slice %55 {offsets = [1, 0, 0], sizes = [4, 4, 64], strides = [1, 1, 1]} : vector<6x6x64xbf16> to vector<4x4x64xbf16>
    %67 = vector.extract_strided_slice %55 {offsets = [1, 1, 0], sizes = [4, 4, 64], strides = [1, 1, 1]} : vector<6x6x64xbf16> to vector<4x4x64xbf16>
    %68 = vector.extract_strided_slice %55 {offsets = [1, 2, 0], sizes = [4, 4, 64], strides = [1, 1, 1]} : vector<6x6x64xbf16> to vector<4x4x64xbf16>
    %69 = tpu.concatenate %66, %67, %68 in 2 : vector<4x4x64xbf16>, vector<4x4x64xbf16>, vector<4x4x64xbf16> -> vector<4x4x192xbf16>
    %70 = vector.shape_cast %69 : vector<4x4x192xbf16> to vector<16x192xbf16>
    %c1_40 = arith.constant 1 : index
    %c0_41 = arith.constant 0 : index
    %c0_42 = arith.constant 0 : index
    %71 = vector.load %arg9[%c1_40, %c0_41, %c0_42] : memref<3x192x16xbf16, #tpu.memory_space<vmem>>, vector<1x192x16xbf16>
    %72 = vector.shape_cast %71 : vector<1x192x16xbf16> to vector<192x16xbf16>
    %cst_43 = arith.constant dense<0.000000e+00> : vector<16x16xf32>
    %73 = tpu.matmul %70, %72, %cst_43 {dimension_numbers = #tpu.dot_dimension_numbers<[1], [0], [0], [1], [0, 0, 1, 1], [], []>} : vector<16x192xbf16>, vector<192x16xbf16>, vector<16x16xf32> -> vector<16x16xf32>
    %74 = arith.addf %65, %73 : vector<16x16xf32>
    %75 = vector.extract_strided_slice %55 {offsets = [2, 0, 0], sizes = [4, 4, 64], strides = [1, 1, 1]} : vector<6x6x64xbf16> to vector<4x4x64xbf16>
    %76 = vector.extract_strided_slice %55 {offsets = [2, 1, 0], sizes = [4, 4, 64], strides = [1, 1, 1]} : vector<6x6x64xbf16> to vector<4x4x64xbf16>
    %77 = vector.extract_strided_slice %55 {offsets = [2, 2, 0], sizes = [4, 4, 64], strides = [1, 1, 1]} : vector<6x6x64xbf16> to vector<4x4x64xbf16>
    %78 = tpu.concatenate %75, %76, %77 in 2 : vector<4x4x64xbf16>, vector<4x4x64xbf16>, vector<4x4x64xbf16> -> vector<4x4x192xbf16>
    %79 = vector.shape_cast %78 : vector<4x4x192xbf16> to vector<16x192xbf16>
    %c2_44 = arith.constant 2 : index
    %c0_45 = arith.constant 0 : index
    %c0_46 = arith.constant 0 : index
    %80 = vector.load %arg9[%c2_44, %c0_45, %c0_46] : memref<3x192x16xbf16, #tpu.memory_space<vmem>>, vector<1x192x16xbf16>
    %81 = vector.shape_cast %80 : vector<1x192x16xbf16> to vector<192x16xbf16>
    %cst_47 = arith.constant dense<0.000000e+00> : vector<16x16xf32>
    %82 = tpu.matmul %79, %81, %cst_47 {dimension_numbers = #tpu.dot_dimension_numbers<[1], [0], [0], [1], [0, 0, 1, 1], [], []>} : vector<16x192xbf16>, vector<192x16xbf16>, vector<16x16xf32> -> vector<16x16xf32>
    %83 = arith.addf %74, %82 : vector<16x16xf32>
    %c0_48 = arith.constant 0 : index
    %c0_49 = arith.constant 0 : index
    %84 = vector.load %arg10[%c0_48, %c0_49] : memref<1x16xf32, #tpu.memory_space<vmem>>, vector<1x16xf32>
    %85 = vector.broadcast %84 : vector<1x16xf32> to vector<16x16xf32>
    %86 = arith.addf %83, %85 : vector<16x16xf32>
    %cst_50 = arith.constant 0.000000e+00 : f32
    %87 = vector.broadcast %cst_50 : f32 to vector<16x16xf32>
    %88 = arith.subf %87, %86 : vector<16x16xf32>
    %89 = math.exp %88 : vector<16x16xf32>
    %cst_51 = arith.constant 1.000000e+00 : f32
    %90 = vector.broadcast %cst_51 : f32 to vector<16x16xf32>
    %91 = arith.addf %90, %89 : vector<16x16xf32>
    %92 = tpu.reciprocal %91 {approx = true} : vector<16x16xf32> -> vector<16x16xf32>
    %93 = arith.mulf %86, %92 : vector<16x16xf32>
    %c0_52 = arith.constant 0 : index
    %c0_53 = arith.constant 0 : index
    %c0_54 = arith.constant 0 : index
    %94 = vector.load %arg4[%c0_52, %c0_53, %c0_54] : memref<1x16x16xbf16, #tpu.memory_space<vmem>>, vector<1x16x16xbf16>
    %95 = vector.shape_cast %94 : vector<1x16x16xbf16> to vector<16x16xbf16>
    %96 = arith.truncf %93 : vector<16x16xf32> to vector<16x16xbf16>
    %c0_55 = arith.constant 0 : index
    %c0_56 = arith.constant 0 : index
    %97 = vector.load %arg16[%c0_55, %c0_56] : memref<16x16xbf16, #tpu.memory_space<vmem>>, vector<16x16xbf16>
    %cst_57 = arith.constant dense<0.000000e+00> : vector<16x16xf32>
    %98 = tpu.matmul %96, %97, %cst_57 {dimension_numbers = #tpu.dot_dimension_numbers<[1], [0], [0], [1], [0, 0, 1, 1], [], []>} : vector<16x16xbf16>, vector<16x16xbf16>, vector<16x16xf32> -> vector<16x16xf32>
    %c0_58 = arith.constant 0 : index
    %c0_59 = arith.constant 0 : index
    %99 = vector.load %arg17[%c0_58, %c0_59] : memref<16x16xbf16, #tpu.memory_space<vmem>>, vector<16x16xbf16>
    %cst_60 = arith.constant dense<0.000000e+00> : vector<16x16xf32>
    %100 = tpu.matmul %95, %99, %cst_60 {dimension_numbers = #tpu.dot_dimension_numbers<[1], [0], [0], [1], [0, 0, 1, 1], [], []>} : vector<16x16xbf16>, vector<16x16xbf16>, vector<16x16xf32> -> vector<16x16xf32>
    %101 = arith.addf %98, %100 : vector<16x16xf32>
    %c0_61 = arith.constant 0 : index
    %c0_62 = arith.constant 0 : index
    %102 = vector.load %arg18[%c0_61, %c0_62] : memref<1x16xf32, #tpu.memory_space<vmem>>, vector<1x16xf32>
    %103 = vector.broadcast %102 : vector<1x16xf32> to vector<16x16xf32>
    %104 = arith.addf %101, %103 : vector<16x16xf32>
    %c0_63 = arith.constant 0 : index
    %c0_64 = arith.constant 0 : index
    %c0_65 = arith.constant 0 : index
    %105 = vector.load %arg25[%c0_63, %c0_64, %c0_65] : memref<1x16x16xf32, #tpu.memory_space<vmem>>, vector<1x16x16xf32>
    %106 = vector.shape_cast %105 : vector<1x16x16xf32> to vector<16x16xf32>
    %107 = vector.shape_cast %104 : vector<16x16xf32> to vector<1x16x16xf32>
    tpu.vector_store %arg25[%c0_63, %c0_64, %c0_65], %107 {strides = array<i32>} : memref<1x16x16xf32, #tpu.memory_space<vmem>>, vector<1x16x16xf32>,
    %c0_66 = arith.constant 0 : index
    %c0_67 = arith.constant 0 : index
    %c0_68 = arith.constant 0 : index
    %c0_69 = arith.constant 0 : index
    %108 = vector.load %arg5[%c0_66, %c0_67, %c0_68, %c0_69] : memref<1x4x4x256xbf16, #tpu.memory_space<vmem>>, vector<1x4x4x256xbf16>
    %109 = vector.shape_cast %108 : vector<1x4x4x256xbf16> to vector<4x4x256xbf16>
    %cst_70 = arith.constant 0.000000e+00 : f32
    %110 = vector.broadcast %cst_70 : f32 to vector<4x32xf32>
    %111 = vector.extract_strided_slice %109 {offsets = [0, 0, 0], sizes = [2, 2, 256], strides = [1, 1, 1]} : vector<4x4x256xbf16> to vector<2x2x256xbf16>
    %112 = vector.extract_strided_slice %109 {offsets = [0, 1, 0], sizes = [2, 2, 256], strides = [1, 1, 1]} : vector<4x4x256xbf16> to vector<2x2x256xbf16>
    %113 = vector.extract_strided_slice %109 {offsets = [0, 2, 0], sizes = [2, 2, 256], strides = [1, 1, 1]} : vector<4x4x256xbf16> to vector<2x2x256xbf16>
    %114 = tpu.concatenate %111, %112, %113 in 2 : vector<2x2x256xbf16>, vector<2x2x256xbf16>, vector<2x2x256xbf16> -> vector<2x2x768xbf16>
    %115 = vector.shape_cast %114 : vector<2x2x768xbf16> to vector<4x768xbf16>
    %c0_71 = arith.constant 0 : index
    %c0_72 = arith.constant 0 : index
    %c0_73 = arith.constant 0 : index
    %116 = vector.load %arg11[%c0_71, %c0_72, %c0_73] : memref<3x768x32xbf16, #tpu.memory_space<vmem>>, vector<1x768x32xbf16>
    %117 = vector.shape_cast %116 : vector<1x768x32xbf16> to vector<768x32xbf16>
    %cst_74 = arith.constant dense<0.000000e+00> : vector<4x32xf32>
    %118 = tpu.matmul %115, %117, %cst_74 {dimension_numbers = #tpu.dot_dimension_numbers<[1], [0], [0], [1], [0, 0, 1, 1], [], []>} : vector<4x768xbf16>, vector<768x32xbf16>, vector<4x32xf32> -> vector<4x32xf32>
    %119 = arith.addf %110, %118 : vector<4x32xf32>
    %120 = vector.extract_strided_slice %109 {offsets = [1, 0, 0], sizes = [2, 2, 256], strides = [1, 1, 1]} : vector<4x4x256xbf16> to vector<2x2x256xbf16>
    %121 = vector.extract_strided_slice %109 {offsets = [1, 1, 0], sizes = [2, 2, 256], strides = [1, 1, 1]} : vector<4x4x256xbf16> to vector<2x2x256xbf16>
    %122 = vector.extract_strided_slice %109 {offsets = [1, 2, 0], sizes = [2, 2, 256], strides = [1, 1, 1]} : vector<4x4x256xbf16> to vector<2x2x256xbf16>
    %123 = tpu.concatenate %120, %121, %122 in 2 : vector<2x2x256xbf16>, vector<2x2x256xbf16>, vector<2x2x256xbf16> -> vector<2x2x768xbf16>
    %124 = vector.shape_cast %123 : vector<2x2x768xbf16> to vector<4x768xbf16>
    %c1_75 = arith.constant 1 : index
    %c0_76 = arith.constant 0 : index
    %c0_77 = arith.constant 0 : index
    %125 = vector.load %arg11[%c1_75, %c0_76, %c0_77] : memref<3x768x32xbf16, #tpu.memory_space<vmem>>, vector<1x768x32xbf16>
    %126 = vector.shape_cast %125 : vector<1x768x32xbf16> to vector<768x32xbf16>
    %cst_78 = arith.constant dense<0.000000e+00> : vector<4x32xf32>
    %127 = tpu.matmul %124, %126, %cst_78 {dimension_numbers = #tpu.dot_dimension_numbers<[1], [0], [0], [1], [0, 0, 1, 1], [], []>} : vector<4x768xbf16>, vector<768x32xbf16>, vector<4x32xf32> -> vector<4x32xf32>
    %128 = arith.addf %119, %127 : vector<4x32xf32>
    %129 = vector.extract_strided_slice %109 {offsets = [2, 0, 0], sizes = [2, 2, 256], strides = [1, 1, 1]} : vector<4x4x256xbf16> to vector<2x2x256xbf16>
    %130 = vector.extract_strided_slice %109 {offsets = [2, 1, 0], sizes = [2, 2, 256], strides = [1, 1, 1]} : vector<4x4x256xbf16> to vector<2x2x256xbf16>
    %131 = vector.extract_strided_slice %109 {offsets = [2, 2, 0], sizes = [2, 2, 256], strides = [1, 1, 1]} : vector<4x4x256xbf16> to vector<2x2x256xbf16>
    %132 = tpu.concatenate %129, %130, %131 in 2 : vector<2x2x256xbf16>, vector<2x2x256xbf16>, vector<2x2x256xbf16> -> vector<2x2x768xbf16>
    %133 = vector.shape_cast %132 : vector<2x2x768xbf16> to vector<4x768xbf16>
    %c2_79 = arith.constant 2 : index
    %c0_80 = arith.constant 0 : index
    %c0_81 = arith.constant 0 : index
    %134 = vector.load %arg11[%c2_79, %c0_80, %c0_81] : memref<3x768x32xbf16, #tpu.memory_space<vmem>>, vector<1x768x32xbf16>
    %135 = vector.shape_cast %134 : vector<1x768x32xbf16> to vector<768x32xbf16>
    %cst_82 = arith.constant dense<0.000000e+00> : vector<4x32xf32>
    %136 = tpu.matmul %133, %135, %cst_82 {dimension_numbers = #tpu.dot_dimension_numbers<[1], [0], [0], [1], [0, 0, 1, 1], [], []>} : vector<4x768xbf16>, vector<768x32xbf16>, vector<4x32xf32> -> vector<4x32xf32>
    %137 = arith.addf %128, %136 : vector<4x32xf32>
    %c0_83 = arith.constant 0 : index
    %c0_84 = arith.constant 0 : index
    %138 = vector.load %arg12[%c0_83, %c0_84] : memref<1x32xf32, #tpu.memory_space<vmem>>, vector<1x32xf32>
    %139 = vector.broadcast %138 : vector<1x32xf32> to vector<4x32xf32>
    %140 = arith.addf %137, %139 : vector<4x32xf32>
    %cst_85 = arith.constant 0.000000e+00 : f32
    %141 = vector.broadcast %cst_85 : f32 to vector<4x32xf32>
    %142 = arith.subf %141, %140 : vector<4x32xf32>
    %143 = math.exp %142 : vector<4x32xf32>
    %cst_86 = arith.constant 1.000000e+00 : f32
    %144 = vector.broadcast %cst_86 : f32 to vector<4x32xf32>
    %145 = arith.addf %144, %143 : vector<4x32xf32>
    %146 = tpu.reciprocal %145 {approx = true} : vector<4x32xf32> -> vector<4x32xf32>
    %147 = arith.mulf %140, %146 : vector<4x32xf32>
    %c0_87 = arith.constant 0 : index
    %c0_88 = arith.constant 0 : index
    %c0_89 = arith.constant 0 : index
    %148 = vector.load %arg6[%c0_87, %c0_88, %c0_89] : memref<1x4x32xbf16, #tpu.memory_space<vmem>>, vector<1x4x32xbf16>
    %149 = vector.shape_cast %148 : vector<1x4x32xbf16> to vector<4x32xbf16>
    %150 = arith.truncf %147 : vector<4x32xf32> to vector<4x32xbf16>
    %c0_90 = arith.constant 0 : index
    %c0_91 = arith.constant 0 : index
    %151 = vector.load %arg19[%c0_90, %c0_91] : memref<32x32xbf16, #tpu.memory_space<vmem>>, vector<32x32xbf16>
    %cst_92 = arith.constant dense<0.000000e+00> : vector<4x32xf32>
    %152 = tpu.matmul %150, %151, %cst_92 {dimension_numbers = #tpu.dot_dimension_numbers<[1], [0], [0], [1], [0, 0, 1, 1], [], []>} : vector<4x32xbf16>, vector<32x32xbf16>, vector<4x32xf32> -> vector<4x32xf32>
    %c0_93 = arith.constant 0 : index
    %c0_94 = arith.constant 0 : index
    %153 = vector.load %arg20[%c0_93, %c0_94] : memref<32x32xbf16, #tpu.memory_space<vmem>>, vector<32x32xbf16>
    %cst_95 = arith.constant dense<0.000000e+00> : vector<4x32xf32>
    %154 = tpu.matmul %149, %153, %cst_95 {dimension_numbers = #tpu.dot_dimension_numbers<[1], [0], [0], [1], [0, 0, 1, 1], [], []>} : vector<4x32xbf16>, vector<32x32xbf16>, vector<4x32xf32> -> vector<4x32xf32>
    %155 = arith.addf %152, %154 : vector<4x32xf32>
    %c0_96 = arith.constant 0 : index
    %c0_97 = arith.constant 0 : index
    %156 = vector.load %arg21[%c0_96, %c0_97] : memref<1x32xf32, #tpu.memory_space<vmem>>, vector<1x32xf32>
    %157 = vector.broadcast %156 : vector<1x32xf32> to vector<4x32xf32>
    %158 = arith.addf %155, %157 : vector<4x32xf32>
    %c0_98 = arith.constant 0 : index
    %c0_99 = arith.constant 0 : index
    %c0_100 = arith.constant 0 : index
    %159 = vector.load %arg26[%c0_98, %c0_99, %c0_100] : memref<1x4x32xf32, #tpu.memory_space<vmem>>, vector<1x4x32xf32>
    %160 = vector.shape_cast %159 : vector<1x4x32xf32> to vector<4x32xf32>
    %161 = vector.shape_cast %158 : vector<4x32xf32> to vector<1x4x32xf32>
    tpu.vector_store %arg26[%c0_98, %c0_99, %c0_100], %161 {strides = array<i32>} : memref<1x4x32xf32, #tpu.memory_space<vmem>>, vector<1x4x32xf32>,
    %162 = vector.shape_cast %158 : vector<4x32xf32> to vector<2x2x32xf32>
    %163 = arith.truncf %162 : vector<2x2x32xf32> to vector<2x2x32xbf16>
    %cst_101 = arith.constant 0.000000e+00 : bf16
    %164 = vector.broadcast %cst_101 : bf16 to vector<2x1x32xbf16>
    %165 = tpu.concatenate %164, %163, %164 in 1 : vector<2x1x32xbf16>, vector<2x2x32xbf16>, vector<2x1x32xbf16> -> vector<2x4x32xbf16>
    %cst_102 = arith.constant 0.000000e+00 : bf16
    %166 = vector.broadcast %cst_102 : bf16 to vector<1x4x32xbf16>
    %167 = tpu.concatenate %166, %165, %166 in 0 : vector<1x4x32xbf16>, vector<2x4x32xbf16>, vector<1x4x32xbf16> -> vector<4x4x32xbf16>
    %168 = vector.extract_strided_slice %167 {offsets = [0, 0, 0], sizes = [4, 1, 32], strides = [1, 1, 1]} : vector<4x4x32xbf16> to vector<4x1x32xbf16>
    %169 = vector.extract_strided_slice %167 {offsets = [0, 2, 0], sizes = [4, 1, 32], strides = [1, 1, 1]} : vector<4x4x32xbf16> to vector<4x1x32xbf16>
    %170 = tpu.concatenate %168, %169 in 1 : vector<4x1x32xbf16>, vector<4x1x32xbf16> -> vector<4x2x32xbf16>
    %171 = vector.extract_strided_slice %167 {offsets = [0, 1, 0], sizes = [4, 1, 32], strides = [1, 1, 1]} : vector<4x4x32xbf16> to vector<4x1x32xbf16>
    %172 = vector.extract_strided_slice %167 {offsets = [0, 3, 0], sizes = [4, 1, 32], strides = [1, 1, 1]} : vector<4x4x32xbf16> to vector<4x1x32xbf16>
    %173 = tpu.concatenate %171, %172 in 1 : vector<4x1x32xbf16>, vector<4x1x32xbf16> -> vector<4x2x32xbf16>
    %174 = vector.extract_strided_slice %170 {offsets = [0, 0, 0], sizes = [1, 2, 32], strides = [1, 1, 1]} : vector<4x2x32xbf16> to vector<1x2x32xbf16>
    %175 = vector.extract_strided_slice %170 {offsets = [2, 0, 0], sizes = [1, 2, 32], strides = [1, 1, 1]} : vector<4x2x32xbf16> to vector<1x2x32xbf16>
    %176 = tpu.concatenate %174, %175 in 0 : vector<1x2x32xbf16>, vector<1x2x32xbf16> -> vector<2x2x32xbf16>
    %177 = vector.extract_strided_slice %173 {offsets = [0, 0, 0], sizes = [1, 2, 32], strides = [1, 1, 1]} : vector<4x2x32xbf16> to vector<1x2x32xbf16>
    %178 = vector.extract_strided_slice %173 {offsets = [2, 0, 0], sizes = [1, 2, 32], strides = [1, 1, 1]} : vector<4x2x32xbf16> to vector<1x2x32xbf16>
    %179 = tpu.concatenate %177, %178 in 0 : vector<1x2x32xbf16>, vector<1x2x32xbf16> -> vector<2x2x32xbf16>
    %180 = vector.extract_strided_slice %170 {offsets = [1, 0, 0], sizes = [1, 2, 32], strides = [1, 1, 1]} : vector<4x2x32xbf16> to vector<1x2x32xbf16>
    %181 = vector.extract_strided_slice %170 {offsets = [3, 0, 0], sizes = [1, 2, 32], strides = [1, 1, 1]} : vector<4x2x32xbf16> to vector<1x2x32xbf16>
    %182 = tpu.concatenate %180, %181 in 0 : vector<1x2x32xbf16>, vector<1x2x32xbf16> -> vector<2x2x32xbf16>
    %183 = vector.extract_strided_slice %173 {offsets = [1, 0, 0], sizes = [1, 2, 32], strides = [1, 1, 1]} : vector<4x2x32xbf16> to vector<1x2x32xbf16>
    %184 = vector.extract_strided_slice %173 {offsets = [3, 0, 0], sizes = [1, 2, 32], strides = [1, 1, 1]} : vector<4x2x32xbf16> to vector<1x2x32xbf16>
    %185 = tpu.concatenate %183, %184 in 0 : vector<1x2x32xbf16>, vector<1x2x32xbf16> -> vector<2x2x32xbf16>
    %cst_103 = arith.constant 0.000000e+00 : f32
    %186 = vector.broadcast %cst_103 : f32 to vector<1x64xf32>
    %187 = vector.extract_strided_slice %176 {offsets = [0, 0, 0], sizes = [1, 1, 32], strides = [1, 1, 1]} : vector<2x2x32xbf16> to vector<1x1x32xbf16>
    %188 = vector.shape_cast %187 : vector<1x1x32xbf16> to vector<1x32xbf16>
    %c0_104 = arith.constant 0 : index
    %c0_105 = arith.constant 0 : index
    %c0_106 = arith.constant 0 : index
    %189 = vector.load %arg22[%c0_104, %c0_105, %c0_106] : memref<9x32x64xbf16, #tpu.memory_space<vmem>>, vector<1x32x64xbf16>
    %190 = vector.shape_cast %189 : vector<1x32x64xbf16> to vector<32x64xbf16>
    %cst_107 = arith.constant dense<0.000000e+00> : vector<1x64xf32>
    %191 = tpu.matmul %188, %190, %cst_107 {dimension_numbers = #tpu.dot_dimension_numbers<[1], [0], [0], [1], [0, 0, 1, 1], [], []>} : vector<1x32xbf16>, vector<32x64xbf16>, vector<1x64xf32> -> vector<1x64xf32>
    %192 = arith.addf %186, %191 : vector<1x64xf32>
    %193 = vector.extract_strided_slice %179 {offsets = [0, 0, 0], sizes = [1, 1, 32], strides = [1, 1, 1]} : vector<2x2x32xbf16> to vector<1x1x32xbf16>
    %194 = vector.shape_cast %193 : vector<1x1x32xbf16> to vector<1x32xbf16>
    %c1_108 = arith.constant 1 : index
    %c0_109 = arith.constant 0 : index
    %c0_110 = arith.constant 0 : index
    %195 = vector.load %arg22[%c1_108, %c0_109, %c0_110] : memref<9x32x64xbf16, #tpu.memory_space<vmem>>, vector<1x32x64xbf16>
    %196 = vector.shape_cast %195 : vector<1x32x64xbf16> to vector<32x64xbf16>
    %cst_111 = arith.constant dense<0.000000e+00> : vector<1x64xf32>
    %197 = tpu.matmul %194, %196, %cst_111 {dimension_numbers = #tpu.dot_dimension_numbers<[1], [0], [0], [1], [0, 0, 1, 1], [], []>} : vector<1x32xbf16>, vector<32x64xbf16>, vector<1x64xf32> -> vector<1x64xf32>
    %198 = arith.addf %192, %197 : vector<1x64xf32>
    %199 = vector.extract_strided_slice %176 {offsets = [0, 1, 0], sizes = [1, 1, 32], strides = [1, 1, 1]} : vector<2x2x32xbf16> to vector<1x1x32xbf16>
    %200 = vector.shape_cast %199 : vector<1x1x32xbf16> to vector<1x32xbf16>
    %c2_112 = arith.constant 2 : index
    %c0_113 = arith.constant 0 : index
    %c0_114 = arith.constant 0 : index
    %201 = vector.load %arg22[%c2_112, %c0_113, %c0_114] : memref<9x32x64xbf16, #tpu.memory_space<vmem>>, vector<1x32x64xbf16>
    %202 = vector.shape_cast %201 : vector<1x32x64xbf16> to vector<32x64xbf16>
    %cst_115 = arith.constant dense<0.000000e+00> : vector<1x64xf32>
    %203 = tpu.matmul %200, %202, %cst_115 {dimension_numbers = #tpu.dot_dimension_numbers<[1], [0], [0], [1], [0, 0, 1, 1], [], []>} : vector<1x32xbf16>, vector<32x64xbf16>, vector<1x64xf32> -> vector<1x64xf32>
    %204 = arith.addf %198, %203 : vector<1x64xf32>
    %205 = vector.extract_strided_slice %182 {offsets = [0, 0, 0], sizes = [1, 1, 32], strides = [1, 1, 1]} : vector<2x2x32xbf16> to vector<1x1x32xbf16>
    %206 = vector.shape_cast %205 : vector<1x1x32xbf16> to vector<1x32xbf16>
    %c3 = arith.constant 3 : index
    %c0_116 = arith.constant 0 : index
    %c0_117 = arith.constant 0 : index
    %207 = vector.load %arg22[%c3, %c0_116, %c0_117] : memref<9x32x64xbf16, #tpu.memory_space<vmem>>, vector<1x32x64xbf16>
    %208 = vector.shape_cast %207 : vector<1x32x64xbf16> to vector<32x64xbf16>
    %cst_118 = arith.constant dense<0.000000e+00> : vector<1x64xf32>
    %209 = tpu.matmul %206, %208, %cst_118 {dimension_numbers = #tpu.dot_dimension_numbers<[1], [0], [0], [1], [0, 0, 1, 1], [], []>} : vector<1x32xbf16>, vector<32x64xbf16>, vector<1x64xf32> -> vector<1x64xf32>
    %210 = arith.addf %204, %209 : vector<1x64xf32>
    %211 = vector.extract_strided_slice %185 {offsets = [0, 0, 0], sizes = [1, 1, 32], strides = [1, 1, 1]} : vector<2x2x32xbf16> to vector<1x1x32xbf16>
    %212 = vector.shape_cast %211 : vector<1x1x32xbf16> to vector<1x32xbf16>
    %c4 = arith.constant 4 : index
    %c0_119 = arith.constant 0 : index
    %c0_120 = arith.constant 0 : index
    %213 = vector.load %arg22[%c4, %c0_119, %c0_120] : memref<9x32x64xbf16, #tpu.memory_space<vmem>>, vector<1x32x64xbf16>
    %214 = vector.shape_cast %213 : vector<1x32x64xbf16> to vector<32x64xbf16>
    %cst_121 = arith.constant dense<0.000000e+00> : vector<1x64xf32>
    %215 = tpu.matmul %212, %214, %cst_121 {dimension_numbers = #tpu.dot_dimension_numbers<[1], [0], [0], [1], [0, 0, 1, 1], [], []>} : vector<1x32xbf16>, vector<32x64xbf16>, vector<1x64xf32> -> vector<1x64xf32>
    %216 = arith.addf %210, %215 : vector<1x64xf32>
    %217 = vector.extract_strided_slice %182 {offsets = [0, 1, 0], sizes = [1, 1, 32], strides = [1, 1, 1]} : vector<2x2x32xbf16> to vector<1x1x32xbf16>
    %218 = vector.shape_cast %217 : vector<1x1x32xbf16> to vector<1x32xbf16>
    %c5 = arith.constant 5 : index
    %c0_122 = arith.constant 0 : index
    %c0_123 = arith.constant 0 : index
    %219 = vector.load %arg22[%c5, %c0_122, %c0_123] : memref<9x32x64xbf16, #tpu.memory_space<vmem>>, vector<1x32x64xbf16>
    %220 = vector.shape_cast %219 : vector<1x32x64xbf16> to vector<32x64xbf16>
    %cst_124 = arith.constant dense<0.000000e+00> : vector<1x64xf32>
    %221 = tpu.matmul %218, %220, %cst_124 {dimension_numbers = #tpu.dot_dimension_numbers<[1], [0], [0], [1], [0, 0, 1, 1], [], []>} : vector<1x32xbf16>, vector<32x64xbf16>, vector<1x64xf32> -> vector<1x64xf32>
    %222 = arith.addf %216, %221 : vector<1x64xf32>
    %223 = vector.extract_strided_slice %176 {offsets = [1, 0, 0], sizes = [1, 1, 32], strides = [1, 1, 1]} : vector<2x2x32xbf16> to vector<1x1x32xbf16>
    %224 = vector.shape_cast %223 : vector<1x1x32xbf16> to vector<1x32xbf16>
    %c6 = arith.constant 6 : index
    %c0_125 = arith.constant 0 : index
    %c0_126 = arith.constant 0 : index
    %225 = vector.load %arg22[%c6, %c0_125, %c0_126] : memref<9x32x64xbf16, #tpu.memory_space<vmem>>, vector<1x32x64xbf16>
    %226 = vector.shape_cast %225 : vector<1x32x64xbf16> to vector<32x64xbf16>
    %cst_127 = arith.constant dense<0.000000e+00> : vector<1x64xf32>
    %227 = tpu.matmul %224, %226, %cst_127 {dimension_numbers = #tpu.dot_dimension_numbers<[1], [0], [0], [1], [0, 0, 1, 1], [], []>} : vector<1x32xbf16>, vector<32x64xbf16>, vector<1x64xf32> -> vector<1x64xf32>
    %228 = arith.addf %222, %227 : vector<1x64xf32>
    %229 = vector.extract_strided_slice %179 {offsets = [1, 0, 0], sizes = [1, 1, 32], strides = [1, 1, 1]} : vector<2x2x32xbf16> to vector<1x1x32xbf16>
    %230 = vector.shape_cast %229 : vector<1x1x32xbf16> to vector<1x32xbf16>
    %c7 = arith.constant 7 : index
    %c0_128 = arith.constant 0 : index
    %c0_129 = arith.constant 0 : index
    %231 = vector.load %arg22[%c7, %c0_128, %c0_129] : memref<9x32x64xbf16, #tpu.memory_space<vmem>>, vector<1x32x64xbf16>
    %232 = vector.shape_cast %231 : vector<1x32x64xbf16> to vector<32x64xbf16>
    %cst_130 = arith.constant dense<0.000000e+00> : vector<1x64xf32>
    %233 = tpu.matmul %230, %232, %cst_130 {dimension_numbers = #tpu.dot_dimension_numbers<[1], [0], [0], [1], [0, 0, 1, 1], [], []>} : vector<1x32xbf16>, vector<32x64xbf16>, vector<1x64xf32> -> vector<1x64xf32>
    %234 = arith.addf %228, %233 : vector<1x64xf32>
    %235 = vector.extract_strided_slice %176 {offsets = [1, 1, 0], sizes = [1, 1, 32], strides = [1, 1, 1]} : vector<2x2x32xbf16> to vector<1x1x32xbf16>
    %236 = vector.shape_cast %235 : vector<1x1x32xbf16> to vector<1x32xbf16>
    %c8 = arith.constant 8 : index
    %c0_131 = arith.constant 0 : index
    %c0_132 = arith.constant 0 : index
    %237 = vector.load %arg22[%c8, %c0_131, %c0_132] : memref<9x32x64xbf16, #tpu.memory_space<vmem>>, vector<1x32x64xbf16>
    %238 = vector.shape_cast %237 : vector<1x32x64xbf16> to vector<32x64xbf16>
    %cst_133 = arith.constant dense<0.000000e+00> : vector<1x64xf32>
    %239 = tpu.matmul %236, %238, %cst_133 {dimension_numbers = #tpu.dot_dimension_numbers<[1], [0], [0], [1], [0, 0, 1, 1], [], []>} : vector<1x32xbf16>, vector<32x64xbf16>, vector<1x64xf32> -> vector<1x64xf32>
    %240 = arith.addf %234, %239 : vector<1x64xf32>
    %c0_134 = arith.constant 0 : index
    %c0_135 = arith.constant 0 : index
    %241 = vector.load %arg23[%c0_134, %c0_135] : memref<1x64xf32, #tpu.memory_space<vmem>>, vector<1x64xf32>
    %242 = arith.addf %240, %241 : vector<1x64xf32>
    %c0_136 = arith.constant 0 : index
    %c0_137 = arith.constant 0 : index
    %c0_138 = arith.constant 0 : index
    %243 = vector.load %arg27[%c0_136, %c0_137, %c0_138] : memref<1x1x64xf32, #tpu.memory_space<vmem>>, vector<1x1x64xf32>
    %244 = vector.shape_cast %243 : vector<1x1x64xf32> to vector<1x64xf32>
    %245 = vector.shape_cast %242 : vector<1x64xf32> to vector<1x1x64xf32>
    tpu.vector_store %arg27[%c0_136, %c0_137, %c0_138], %245 {strides = array<i32>} : memref<1x1x64xf32, #tpu.memory_space<vmem>>, vector<1x1x64xf32>,
    return
  }
  func.func @transform_0(%arg0: i32) -> (i32, i32, i32, i32) {
    %c0_i32 = arith.constant 0 : i32
    %c0_i32_0 = arith.constant 0 : i32
    %c0_i32_1 = arith.constant 0 : i32
    %c0_i32_2 = arith.constant 0 : i32
    return %arg0, %c0_i32, %c0_i32_0, %c0_i32_1 : i32, i32, i32, i32
  }
  func.func @transform_1(%arg0: i32) -> (i32, i32, i32) {
    %c0_i32 = arith.constant 0 : i32
    %c0_i32_0 = arith.constant 0 : i32
    %c0_i32_1 = arith.constant 0 : i32
    return %arg0, %c0_i32, %c0_i32_0 : i32, i32, i32
  }
  func.func @transform_2(%arg0: i32) -> (i32, i32, i32, i32) {
    %c0_i32 = arith.constant 0 : i32
    %c0_i32_0 = arith.constant 0 : i32
    %c0_i32_1 = arith.constant 0 : i32
    %c0_i32_2 = arith.constant 0 : i32
    return %arg0, %c0_i32, %c0_i32_0, %c0_i32_1 : i32, i32, i32, i32
  }
  func.func @transform_3(%arg0: i32) -> (i32, i32, i32) {
    %c0_i32 = arith.constant 0 : i32
    %c0_i32_0 = arith.constant 0 : i32
    %c0_i32_1 = arith.constant 0 : i32
    return %arg0, %c0_i32, %c0_i32_0 : i32, i32, i32
  }
  func.func @transform_4(%arg0: i32) -> (i32, i32, i32, i32) {
    %c0_i32 = arith.constant 0 : i32
    %c0_i32_0 = arith.constant 0 : i32
    %c0_i32_1 = arith.constant 0 : i32
    %c0_i32_2 = arith.constant 0 : i32
    return %arg0, %c0_i32, %c0_i32_0, %c0_i32_1 : i32, i32, i32, i32
  }
  func.func @transform_5(%arg0: i32) -> (i32, i32, i32) {
    %c0_i32 = arith.constant 0 : i32
    %c0_i32_0 = arith.constant 0 : i32
    %c0_i32_1 = arith.constant 0 : i32
    return %arg0, %c0_i32, %c0_i32_0 : i32, i32, i32
  }
  func.func @transform_6(%arg0: i32) -> (i32, i32, i32) {
    %c0_i32 = arith.constant 0 : i32
    %c0_i32_0 = arith.constant 0 : i32
    %c0_i32_1 = arith.constant 0 : i32
    %c0_i32_2 = arith.constant 0 : i32
    return %c0_i32, %c0_i32_0, %c0_i32_1 : i32, i32, i32
  }
  func.func @transform_7(%arg0: i32) -> (i32, i32) {
    %c0_i32 = arith.constant 0 : i32
    %c0_i32_0 = arith.constant 0 : i32
    %c0_i32_1 = arith.constant 0 : i32
    return %c0_i32, %c0_i32_0 : i32, i32
  }
  func.func @transform_8(%arg0: i32) -> (i32, i32, i32) {
    %c0_i32 = arith.constant 0 : i32
    %c0_i32_0 = arith.constant 0 : i32
    %c0_i32_1 = arith.constant 0 : i32
    %c0_i32_2 = arith.constant 0 : i32
    return %c0_i32, %c0_i32_0, %c0_i32_1 : i32, i32, i32
  }
  func.func @transform_9(%arg0: i32) -> (i32, i32) {
    %c0_i32 = arith.constant 0 : i32
    %c0_i32_0 = arith.constant 0 : i32
    %c0_i32_1 = arith.constant 0 : i32
    return %c0_i32, %c0_i32_0 : i32, i32
  }
  func.func @transform_10(%arg0: i32) -> (i32, i32, i32) {
    %c0_i32 = arith.constant 0 : i32
    %c0_i32_0 = arith.constant 0 : i32
    %c0_i32_1 = arith.constant 0 : i32
    %c0_i32_2 = arith.constant 0 : i32
    return %c0_i32, %c0_i32_0, %c0_i32_1 : i32, i32, i32
  }
  func.func @transform_11(%arg0: i32) -> (i32, i32) {
    %c0_i32 = arith.constant 0 : i32
    %c0_i32_0 = arith.constant 0 : i32
    %c0_i32_1 = arith.constant 0 : i32
    return %c0_i32, %c0_i32_0 : i32, i32
  }
  func.func @transform_12(%arg0: i32) -> (i32, i32) {
    %c0_i32 = arith.constant 0 : i32
    %c0_i32_0 = arith.constant 0 : i32
    %c0_i32_1 = arith.constant 0 : i32
    return %c0_i32, %c0_i32_0 : i32, i32
  }
  func.func @transform_13(%arg0: i32) -> (i32, i32) {
    %c0_i32 = arith.constant 0 : i32
    %c0_i32_0 = arith.constant 0 : i32
    %c0_i32_1 = arith.constant 0 : i32
    return %c0_i32, %c0_i32_0 : i32, i32
  }
  func.func @transform_14(%arg0: i32) -> (i32, i32) {
    %c0_i32 = arith.constant 0 : i32
    %c0_i32_0 = arith.constant 0 : i32
    %c0_i32_1 = arith.constant 0 : i32
    return %c0_i32, %c0_i32_0 : i32, i32
  }
  func.func @transform_15(%arg0: i32) -> (i32, i32) {
    %c0_i32 = arith.constant 0 : i32
    %c0_i32_0 = arith.constant 0 : i32
    %c0_i32_1 = arith.constant 0 : i32
    return %c0_i32, %c0_i32_0 : i32, i32
  }
  func.func @transform_16(%arg0: i32) -> (i32, i32) {
    %c0_i32 = arith.constant 0 : i32
    %c0_i32_0 = arith.constant 0 : i32
    %c0_i32_1 = arith.constant 0 : i32
    return %c0_i32, %c0_i32_0 : i32, i32
  }
  func.func @transform_17(%arg0: i32) -> (i32, i32) {
    %c0_i32 = arith.constant 0 : i32
    %c0_i32_0 = arith.constant 0 : i32
    %c0_i32_1 = arith.constant 0 : i32
    return %c0_i32, %c0_i32_0 : i32, i32
  }
  func.func @transform_18(%arg0: i32) -> (i32, i32) {
    %c0_i32 = arith.constant 0 : i32
    %c0_i32_0 = arith.constant 0 : i32
    %c0_i32_1 = arith.constant 0 : i32
    return %c0_i32, %c0_i32_0 : i32, i32
  }
  func.func @transform_19(%arg0: i32) -> (i32, i32) {
    %c0_i32 = arith.constant 0 : i32
    %c0_i32_0 = arith.constant 0 : i32
    %c0_i32_1 = arith.constant 0 : i32
    return %c0_i32, %c0_i32_0 : i32, i32
  }
  func.func @transform_20(%arg0: i32) -> (i32, i32) {
    %c0_i32 = arith.constant 0 : i32
    %c0_i32_0 = arith.constant 0 : i32
    %c0_i32_1 = arith.constant 0 : i32
    return %c0_i32, %c0_i32_0 : i32, i32
  }
  func.func @transform_21(%arg0: i32) -> (i32, i32, i32) {
    %c0_i32 = arith.constant 0 : i32
    %c0_i32_0 = arith.constant 0 : i32
    %c0_i32_1 = arith.constant 0 : i32
    %c0_i32_2 = arith.constant 0 : i32
    return %c0_i32, %c0_i32_0, %c0_i32_1 : i32, i32, i32
  }
  func.func @transform_22(%arg0: i32) -> (i32, i32) {
    %c0_i32 = arith.constant 0 : i32
    %c0_i32_0 = arith.constant 0 : i32
    %c0_i32_1 = arith.constant 0 : i32
    return %c0_i32, %c0_i32_0 : i32, i32
  }
  func.func @transform_23(%arg0: i32) -> (i32, i32, i32) {
    %c0_i32 = arith.constant 0 : i32
    %c0_i32_0 = arith.constant 0 : i32
    %c0_i32_1 = arith.constant 0 : i32
    return %arg0, %c0_i32, %c0_i32_0 : i32, i32, i32
  }
  func.func @transform_24(%arg0: i32) -> (i32, i32, i32) {
    %c0_i32 = arith.constant 0 : i32
    %c0_i32_0 = arith.constant 0 : i32
    %c0_i32_1 = arith.constant 0 : i32
    return %arg0, %c0_i32, %c0_i32_0 : i32, i32, i32
  }
  func.func @transform_25(%arg0: i32) -> (i32, i32, i32) {
    %c0_i32 = arith.constant 0 : i32
    %c0_i32_0 = arith.constant 0 : i32
    %c0_i32_1 = arith.constant 0 : i32
    return %arg0, %c0_i32, %c0_i32_0 : i32, i32, i32
  }
  func.func @transform_26(%arg0: i32) -> (i32, i32, i32) {
    %c0_i32 = arith.constant 0 : i32
    %c0_i32_0 = arith.constant 0 : i32
    %c0_i32_1 = arith.constant 0 : i32
    return %arg0, %c0_i32, %c0_i32_0 : i32, i32, i32
  }
}

</mosaic_0001>

<bundles_post_ra>
// kernel: neck_forward.1
= control target key start
LH: loop header
LB: loop body
LE: loop exit
PB: predicated region body
PF: predicated region fallthrough
CT: control target
= control target key end

     0   :  { %s8661_s0 = inlined_call_operand.vmem [shape: bf16[2,10,10,16], index: 0, kind: input, shape index: {}]   ;;  %s8662_s1 = inlined_call_operand.vmem [shape: bf16[2,64,8], index: 1, kind: input, shape index: {}]   ;;  %s8663_s2 = inlined_call_operand.vmem [shape: bf16[2,6,6,64], index: 2, kind: input, shape index: {}]   ;;  %s8664_s3 = inlined_call_operand.vmem [shape: bf16[2,16,16], index: 3, kind: input, shape index: {}]   ;;  %s8665_s4 = inlined_call_operand.vmem [shape: bf16[2,4,4,256], index: 4, kind: input, shape index: {}]   ;;  %s8666_s5 = inlined_call_operand.vmem [shape: bf16[2,4,32], index: 5, kind: input, shape index: {}]   ;;  %s8667_s6 = inlined_call_operand.vmem [shape: bf16[3,48,8], index: 6, kind: input, shape index: {}]   ;;  %s8668_s7 = inlined_call_operand.vmem [shape: f32[1,8], index: 7, kind: input, shape index: {}]   ;;  %s8669_s8 = inlined_call_operand.vmem [shape: bf16[3,192,16], index: 8, kind: input, shape index: {}]   ;;  %s8670_s9 = inlined_call_operand.vmem [shape: f32[1,16], index: 9, kind: input, shape index: {}]   ;;  %s8671_s10 = inlined_call_operand.vmem [shape: bf16[3,768,32], index: 10, kind: input, shape index: {}]   ;;  %s8672_s11 = inlined_call_operand.vmem [shape: f32[1,32], index: 11, kind: input, shape index: {}]   ;;  %s8673_s12 = inlined_call_operand.vmem [shape: bf16[8,8], index: 12, kind: input, shape index: {}]   ;;  %s8674_s13 = inlined_call_operand.vmem [shape: bf16[8,8], index: 13, kind: input, shape index: {}]   ;;  %s8675_s14 = inlined_call_operand.vmem [shape: f32[1,8], index: 14, kind: input, shape index: {}]   ;;  %s8676_s15 = inlined_call_operand.vmem [shape: bf16[16,16], index: 15, kind: input, shape index: {}]   ;;  %s8677_s16 = inlined_call_operand.vmem [shape: bf16[16,16], index: 16, kind: input, shape index: {}]   ;;  %s8678_s17 = inlined_call_operand.vmem [shape: f32[1,16], index: 17, kind: input, shape index: {}]   ;;  %s8679_s18 = inlined_call_operand.vmem [shape: bf16[32,32], index: 18, kind: input, shape index: {}]   ;;  %s8680_s19 = inlined_call_operand.vmem [shape: bf16[32,32], index: 19, kind: input, shape index: {}]   ;;  %s8681_s20 = inlined_call_operand.vmem [shape: f32[1,32], index: 20, kind: input, shape index: {}]   ;;  %s8682_s21 = inlined_call_operand.vmem [shape: bf16[9,32,64], index: 21, kind: input, shape index: {}]   ;;  %s8683_s22 = inlined_call_operand.vmem [shape: f32[1,64], index: 22, kind: input, shape index: {}]   ;;  %s8684_s23 = inlined_call_operand.vmem [shape: f32[2,64,8], index: 23, kind: output, shape index: {0}]   ;;  %s8685_s24 = inlined_call_operand.hbm [shape: f32[2,16,16], index: 24, kind: output, shape index: {1}]   ;;  %s8686_s25 = inlined_call_operand.hbm [shape: f32[2,4,32], index: 25, kind: output, shape index: {2}]   ;;  %s8687_s26 = inlined_call_operand.hbm [shape: f32[2,1,64], index: 26, kind: output, shape index: {3}]  }
   0x1   :  { %8699 = sst [smem:[#allocation13_spill]] %s8661_s0 }
   0x2   :  { %8700 = sst [smem:[#allocation14_spill]] %s8662_s1 }
   0x3   :  { %8701 = sst [smem:[#allocation15_spill]] %s8663_s2 }
   0x4   :  { %8702 = sst [smem:[#allocation16_spill]] %s8664_s3 }
   0x5   :  { %8703 = sst [smem:[#allocation17_spill]] %s8665_s4 }
   0x6   :  { %8704 = sst [smem:[#allocation18_spill]] %s8666_s5 }
   0x7   :  { %8705 = sst [smem:[#allocation19_spill]] %s8667_s6 }
   0x8   :  { %8706 = sst [smem:[#allocation20_spill]] %s8668_s7 }
   0x9   :  { %8707 = sst [smem:[#allocation21_spill]] %s8669_s8 }
   0xa   :  { %8708 = sst [smem:[#allocation22_spill]] %s8670_s9 }
   0xb   :  { %8709 = sst [smem:[#allocation23_spill]] %s8671_s10 }
   0xc   :  { %8710 = sst [smem:[#allocation24_spill]] %s8672_s11 }
   0xd   :  { %8711 = sst [smem:[#allocation25_spill]] %s8673_s12 }
   0xe   :  { %8712 = sst [smem:[#allocation26_spill]] %s8674_s13 }
   0xf   :  { %8713 = sst [smem:[#allocation27_spill]] %s8675_s14 }
  0x10   :  { %32 = vsyncpa [#allocation3], 0 }
  0x11   :  { %34 = vsyncpa [#allocation3 + $0x1], 0 }
  0x12   :  { %35 = vsyncpa [#allocation5], 0 }
  0x13   :  { %37 = vsyncpa [#allocation5 + $0x1], 0  ;;  %s7210_s27 = smov 0   ;;  %s7212_s3 = smov 0  }
  0x14   :  { %s7214_s7 = smov 0   ;;  %s7216_s28 = smov 0  }
  0x15 LB: > { %8714 = sst [smem:[#allocation9_spill]] %s7056_s7  ;;  %s7231_s8 = sadd.s32 4294967295, %s7060_s28   ;;  %s7060_s28 = sphi %s7216_s28, %s8740_s28   ;;  %s7056_s7 = sphi %s7214_s7, %s8742_s7   ;;  %s7052_s3 = sphi %s7212_s3, %s8744_s3   ;;  %s7048_s27 = sphi %s7210_s27, %s8743_s27  }
  0x16   : > { %s8691_s4 = sadd.s32 4294967294, %s7060_s28   ;;  %s7235_s29 = sadd.s32 1, %s7060_s28  }
  0x17   : > { %8715 = sst [smem:[#allocation10_spill]] %s7235_s29  ;;  %s589_s0 = sadd.s32 1, %s7056_s7 }
  0x18   : > { %s586_s9 = ssub.s32 %s7060_s28, %s7235_s29  ;;  %p599_p0 = scmp.ne.s32.totalorder %s7056_s7, %s7052_s3 }
  0x19   : > { %p587_p1 = scmp.eq.s32.totalorder %s586_s9, 0  ;;  %p600_p2 = scmp.eq.s32.totalorder %s7231_s8, 1 }
  0x1a   : > { %p605_p3 = scmp.ne.s32.totalorder %s7052_s3, %s7048_s27  ;;  %p606_p4 = scmp.eq.s32.totalorder %s8691_s4, 1 }
  0x1b   : > { %s7248_s30 = scalar_select %p587_p1, %s7056_s7, %s589_s0  }
  0x1c   : > { %p7250_p5 = por %p600_p2, %p599_p0  ;;  %p7254_p6 = por %p606_p4, %p605_p3 }
  0x1d   : > { %8716 = sst [smem:[#allocation11_spill]] %s7248_s30  ;;  %p5532_p7 = scmp.ge.s32.totalorder %s7060_s28, 1 }
  0x1e   : > { %s8718_s5 = scalar_select %p7254_p6, 1, 0 }
  0x1f   : > { %p774_p8 = scmp.lt.s32.totalorder %s7060_s28, 3 }
  0x20   : > { %8719 = sst [smem:[#allocation12_spill]] %s8718_s5 }
  0x21   : > { %p775_p9 = pnand %p5532_p7, %p774_p8 }
  0x22   : > { %p882_p10 = scmp.lt.s32.totalorder (!%p775_p9), %s7231_s8, 1  ;;  %s8720_s0 = sld [smem:[#allocation19_spill]] (!%p775_p9)  ;;  %vm1073_vm0 = vcmask (!%p775_p9), 130048   ;;  %vm1098_vm1 = vcmask (!%p775_p9), 261120   ;;  %vm1188_vm2 = vcmask (!%p775_p9), 392192   ;;  %vm1603_vm3 = vcmask (!%p775_p9), 1043456  }
  0x23   : > { %778 = sbr.rel (%p775_p9) target bundleno = 1713 (0x6b1), region = 112  ;;  %s8721_s7 = sld [smem:[#allocation13_spill]] (!%p775_p9)  ;;  %vm1590_vm4 = vcmask (!%p775_p9), 64512   ;;  %vm1833_vm5 = vcmask (!%p775_p9), 523264   ;;  %vm7068_vm6 = vmmov (!%p775_p9), 0   ;;  %vm4663_vm7 = vcmask (!%p775_p9), 1040384  }
  0x24   : > { %s7062_s30 = smov (!%p775_p9), 32   ;;  %s8722_s4 = sld [smem:[#allocation15_spill]] (!%p775_p9)  ;;  %vm4664_vm8 = vsmask.f32 (!%p775_p9), 256  ;;  %vm4632_vm10 = vcmask (!%p775_p9), 257024   ;;  %vm4668_vm11 = vcmask (!%p775_p9), 1041408  }
  0x25   : > { %s8723_s13 = sld [smem:[#allocation26_spill]] (!%p775_p9)  ;;  %s8724_s1 = sld [smem:[#allocation14_spill]] (!%p775_p9)  ;;  %vm8432_vm9 = vmand (!%p775_p9), %vm4663_vm7, %vm4664_vm8  ;;  %vm4669_vm12 = vsmask.f32 (!%p775_p9), 1280 }
  0x26   : > { %s8726_s12 = sld [smem:[#allocation25_spill]] (!%p775_p9)  ;;  %s8729_s14 = sld [smem:[#allocation27_spill]] (!%p775_p9)  ;;  %vm4670_vm13 = vmand (!%p775_p9), %vm4668_vm11, %vm4669_vm12 }
  0x27   : > { %s8734_s11 = sld [smem:[#allocation24_spill]] (!%p775_p9) }
  0x28   : > { %v6663_v0 = vld [vmem:[%s8720_s0 + $0x18] sm:$0xff] (!%p775_p9)   ;;  %v6664_v16 = vld [vmem:[%s8720_s0 + $0x20] sm:$0xff] (!%p775_p9)   ;;  %v6665_v30 = vld [vmem:[%s8720_s0 + $0x28] sm:$0xff] (!%p775_p9)  }
  0x29   : > { %6404 = vmatprep.subr.bf16.mxu0 (!%p775_p9), %v6663_v0  ;;  %v7320_v52 = vld [vmem:[%s8720_s0] sm:$0xff] (!%p775_p9)  }
  0x2a   : > { %s7262_s10 = scalar_select %p882_p10, %s7231_s8, 1  ;;  %6405 = vmatpush3.bf16.msra.mxu0 %v6663_v0 }
  0x2b   : > { %6406 = vmatprep.subr.bf16.mxu0 %v6664_v16 }
  0x2c   : > { %s6592_s9 = smul.u32 80, %s7262_s10 }
  0x2d   : > { %s6593_s6 = smul.u32 24, %s7262_s10 }
  0x2e   : > { %s7271_s29 = scalar_lea.vmem %s8721_s7, %s6592_s9  ;;  %6407 = vmatpush3.bf16.msra.mxu0 %v6664_v16  ;;  %s7063_s9 = smov 16  }
  0x2f   : > { %v7274_v1 = vld [vmem:[%s7271_s29 + $0x10] sm:$0xf]  ;;  %v922_v2 = vld [vmem:[%s7271_s29 + $0x14] sm:$0x1]  ;;  %v7278_v3 = vld [vmem:[%s7271_s29 + $0x8] sm:$0xf]  ;;  %6408 = vmatprep.subr.bf16.mxu0 %v6665_v30  ;;  %s7346_s5 = scalar_lea.vmem %s8722_s4, %s6593_s6 }
  0x30   : > { %v5548_v4 = vcombine.low %v7274_v1, %v922_v2  ;;  %v920_v5 = vld [vmem:[%s7271_s29 + $0xc] sm:$0x1]  ;;  %v7283_v6 = vld [vmem:[%s7271_s29 + $0x20] sm:$0xf]  ;;  %v926_v7 = vld [vmem:[%s7271_s29 + $0x24] sm:$0x1] }
  0x31   : > { %v5547_v8 = vcombine.low %v7278_v3, %v920_v5  ;;  %v5550_v9 = vcombine.low %v7283_v6, %v926_v7  ;;  %v7289_v10 = vld [vmem:[%s7271_s29 + $0x18] sm:$0xf]  ;;  %v924_v11 = vld [vmem:[%s7271_s29 + $0x1c] sm:$0x1]  ;;  %v929_v14 = vld [vmem:[%s7271_s29 + $0x30] sm:$0xf] }
  0x32   : > { %v1051_v12 = vrot.slane %v5548_v4, 1  ;;  %v5549_v13 = vcombine.low %v7289_v10, %v924_v11  ;;  %v930_v15 = vld [vmem:[%s7271_s29 + $0x34] sm:$0x1]  ;;  %v994_v19 = vshll.u32 %v5548_v4, 16  ;;  %v927_v20 = vld [vmem:[%s7271_s29 + $0x28] sm:$0xf]  ;;  %6409 = vmatpush3.bf16.msra.mxu0 %v6665_v30 }
  0x33   : > { %v1050_v17 = vrot.slane %v5547_v8, 1  ;;  %v987_v18 = vshll.u32 %v5547_v8, 16  ;;  %v1053_v21 = vrot.slane %v5550_v9, 1  ;;  %v985_v24 = vshrl.u32 %v5547_v8, 16  ;;  %v928_v25 = vld [vmem:[%s7271_s29 + $0x2c] sm:$0x1]  ;;  %6418 = vmatprep.subr.bf16.mxu0 %v7320_v52 }
  0x34   : > { %1061 = vrot.lane.b32.xlu1 %v1051_v12, %s7062_s30  ;;  %v999_v22 = vshrl.u32 %v5549_v13, 16  ;;  %v1001_v23 = vshll.u32 %v5549_v13, 16  ;;  %v1052_v26 = vrot.slane %v5549_v13, 1  ;;  %v1008_v28 = vshll.u32 %v5550_v9, 16  ;;  %v931_v33 = vld [vmem:[%s7271_s29 + $0x38] sm:$0xf] }
  0x35   : > { %1059 = vrot.lane.b32.xlu0 %v1050_v17, %s7062_s30  ;;  %v989_v27 = vrot.slane %v987_v18, 1  ;;  %v7302_v29 = vcombine.low %v929_v14, %v930_v15  ;;  %v5551_v32 = vcombine.low %v927_v20, %v928_v25  ;;  %v932_v34 = vld [vmem:[%s7271_s29 + $0x3c] sm:$0x1]  ;;  %v992_v35 = vshrl.u32 %v5548_v4, 16  ;;  %v933_v36 = vld [vmem:[%s7271_s29 + $0x40] sm:$0xf] }
  0x36   : > { %v1003_v31 = vrot.slane %v1001_v23, 1  ;;  %v934_v37 = vld [vmem:[%s7271_s29 + $0x44] sm:$0x1]  ;;  %v1006_v39 = vshrl.u32 %v5550_v9, 16  ;;  %v1010_v40 = vrot.slane %v1008_v28, 1  ;;  %v996_v43 = vrot.slane %v994_v19, 1 }
  0x37   : > { %v1022_v41 = vshll.u32 %v7302_v29, 16  ;;  %v990_v42 = vor.u32 %v989_v27, %v985_v24  ;;  %v1015_v44 = vshll.u32 %v5551_v32, 16  ;;  %v5553_v45 = vcombine.low %v931_v33, %v932_v34  ;;  %v917_v51 = vld [vmem:[%s7271_s29] sm:$0xf]  ;;  %v918_v56 = vld [vmem:[%s7271_s29 + $0x4] sm:$0x1] }
  0x38   : > { %1065 = vrot.lane.b32.xlu1 %v1053_v21, %s7062_s30  ;;  %v1004_v38 = vor.u32 %v1003_v31, %v999_v22  ;;  %v5554_v46 = vcombine.low %v933_v36, %v934_v37  ;;  %v1011_v47 = vor.u32 %v1010_v40, %v1006_v39  ;;  %v1020_v48 = vshrl.u32 %v7302_v29, 16  ;;  %v935_v2 = vld [vmem:[%s7271_s29 + $0x48] sm:$0xf]  ;;  %v936_v4 = vld [vmem:[%s7271_s29 + $0x4c] sm:$0x1]  ;;  %s8727_s4 = sld [smem:[#allocation20_spill]] }
  0x39   : > { %1063 = vrot.lane.b32.xlu0 %v1052_v26, %s7062_s30  ;;  %v1024_v49 = vrot.slane %v1022_v41, 1  ;;  %v1029_v50 = vshll.u32 %v5553_v45, 16  ;;  %v997_v53 = vor.u32 %v996_v43, %v992_v35  ;;  %v1013_v54 = vshrl.u32 %v5551_v32, 16  ;;  %v7349_v24 = vld [vmem:[%s7346_s5 + $0x4] sm:$0x7] }
  0x3a   : > { %v1017_v55 = vrot.slane %v1015_v44, 1  ;;  %v1054_v57 = vrot.slane %v5551_v32, 1  ;;  %v1129_v58 = vshll.u32 %v5554_v46, 16  ;;  %v1027_v59 = vshrl.u32 %v5553_v45, 16  ;;  %v7352_v25 = vld [vmem:[%s7346_s5 + $0x8] sm:$0x7] }
  0x3b   : > { %v1055_v60 = vrot.slane %v7302_v29, 1  ;;  %v1025_v61 = vor.u32 %v1024_v49, %v1020_v48  ;;  %v1031_v62 = vrot.slane %v1029_v50, 1  ;;  %v1127_v63 = vshrl.u32 %v5554_v46, 16  ;;  %v7355_v26 = vld [vmem:[%s7346_s5 + $0xc] sm:$0x7] }
  0x3c   : > { %1039 = vrot.lane.b32.xlu1 %v1004_v38, %s7063_s9  ;;  %v1135_v0 = vrot.slane %v5554_v46, 1  ;;  %v1018_v5 = vor.u32 %v1017_v55, %v1013_v54  ;;  %v5546_v7 = vcombine.low %v917_v51, %v918_v56  ;;  %v1131_v8 = vrot.slane %v1129_v58, 1  ;;  %v7370_v30 = vld [vmem:[%s7346_s5 + $0x10] sm:$0x7]  ;;  %v7373_v31 = vld [vmem:[%s7346_s5] sm:$0x7] }
  0x3d   : > { %1035 = vrot.lane.b32.xlu0 %v990_v42, %s7063_s9  ;;  %v1056_v9 = vrot.slane %v5553_v45, 1  ;;  %v1032_v11 = vor.u32 %v1031_v62, %v1027_v59  ;;  %v5583_v14 = vcombine.low %v935_v2, %v936_v4  ;;  %v7359_v27 = vcombine.low %v7349_v24, %v7349_v24  ;;  %v1780_v32 = vld [vmem:[%s7346_s5 + $0x14] sm:$0x7] }
  0x3e   : > { %v978_v12 = vshrl.u32 %v5546_v7, 16  ;;  %v980_v13 = vshll.u32 %v5546_v7, 16  ;;  %v1132_v15 = vor.u32 %v1131_v8, %v1127_v63  ;;  %v1049_v18 = vrot.slane %v5546_v7, 1 }
  0x3f   : > { %v1375_v17 = vshll.u32 %v5583_v14, 16  ;;  %v1373_v19 = vshrl.u32 %v5583_v14, 16  ;;  %v1381_v21 = vrot.slane %v5583_v14, 1  ;;  %v7363_v28 = vcombine.low %v7352_v25, %v7352_v25 }
  0x40   : > { %1041 = vrot.lane.b32.xlu1 %v1011_v47, %s7063_s9  ;;  %v982_v16 = vrot.slane %v980_v13, 1  ;;  %v7367_v29 = vcombine.low %v7355_v26, %v7355_v26  ;;  %v7378_v33 = vcombine.low %v7370_v30, %v7370_v30  ;;  %v7382_v34 = vcombine.low %v7373_v31, %v7373_v31 }
  0x41   : > { %1037 = vrot.lane.b32.xlu0 %v997_v53, %s7063_s9  ;;  %v1377_v20 = vrot.slane %v1375_v17, 1  ;;  %v7384_v35 = vcombine.low %v1780_v32, %v1780_v32  ;;  %v1801_v36 = vshrl.u32 %v7359_v27, 16  ;;  %v1803_v37 = vshll.u32 %v7359_v27, 16 }
  0x42   : > { %v983_v22 = vor.u32 %v982_v16, %v978_v12  ;;  %v1808_v38 = vshrl.u32 %v7363_v28, 16  ;;  %v1810_v39 = vshll.u32 %v7363_v28, 16  ;;  %v1815_v40 = vshrl.u32 %v7367_v29, 16 }
  0x43   : > { %v1378_v23 = vor.u32 %v1377_v20, %v1373_v19  ;;  %v1817_v41 = vshll.u32 %v7367_v29, 16  ;;  %v1912_v42 = vshll.u32 %v7378_v33, 16  ;;  %v1805_v43 = vrot.slane %v1803_v37, 1 }
  0x44   : > { %1045 = vrot.lane.b32.xlu1 %v1025_v61, %s7063_s9  ;;  %v1812_v44 = vrot.slane %v1810_v39, 1  ;;  %v1910_v45 = vshrl.u32 %v7378_v33, 16  ;;  %v1796_v46 = vshll.u32 %v7382_v34, 16  ;;  %v2232_v49 = vshll.u32 %v7384_v35, 16 }
  0x45   : > { %1043 = vrot.lane.b32.xlu0 %v1018_v5, %s7063_s9  ;;  %v1819_v47 = vrot.slane %v1817_v41, 1  ;;  %v1914_v48 = vrot.slane %v1912_v42, 1  ;;  %v1806_v50 = vor.u32 %v1805_v43, %v1801_v36  ;;  %v1794_v53 = vshrl.u32 %v7382_v34, 16  ;;  %v6932_v36 = vld [vmem:[%s7271_s29 + $0x28] sm:$0xf] }
  0x46   : > { %v1813_v51 = vor.u32 %v1812_v44, %v1808_v38  ;;  %v2230_v54 = vshrl.u32 %v7384_v35, 16  ;;  %v2234_v58 = vrot.slane %v2232_v49, 1  ;;  %v6933_v41 = vld [vmem:[%s7271_s29 + $0x40] sm:$0xf]  ;;  %v6934_v44 = vld [vmem:[%s7271_s29 + $0x38] sm:$0xf] }
  0x47   : > { %v1820_v55 = vor.u32 %v1819_v47, %v1815_v40  ;;  %v1915_v56 = vor.u32 %v1914_v48, %v1910_v45 }
  0x48   : > { %1067 = vrot.lane.b32.xlu1 %v1054_v57, %s7062_s30  ;;  %v1798_v57 = vrot.slane %v1796_v46, 1 }
  0x49   : > { %1047 = vrot.lane.b32.xlu0 %v1032_v11, %s7063_s9 }
  0x4a   : > { %v1799_v59 = vor.u32 %v1798_v57, %v1794_v53  ;;  %v6935_v53 = vld [vmem:[%s7271_s29] sm:$0xf]  ;;  %v6670_v57 = vld [vmem:[%s8720_s0 + $0x38] sm:$0xff]  }
  0x4c   : > { %1133 = vrot.lane.b32.xlu1 %v1132_v15, %s7063_s9 }
  0x4d   : > { %1069 = vrot.lane.b32.xlu0 %v1055_v60, %s7062_s30  ;;  %v2235_v60 = vor.u32 %v2234_v58, %v2230_v54 }
  0x50   : > { %1136 = vrot.lane.b32.xlu1 %v1135_v0, %s7062_s30 }
  0x51   : > { %1071 = vrot.lane.b32.xlu0 %v1056_v9, %s7062_s30 }
  0x54   : > { %1057 = vrot.lane.b32.xlu1 %v1049_v18, %s7062_s30 }
  0x55   : > { %1033 = vrot.lane.b32.xlu0 %v983_v22, %s7063_s9 }
  0x58   : > { %1382 = vrot.lane.b32.xlu1 %v1381_v21, %s7062_s30  ;;  %s7064_s30 = smov 64   ;;  %v6669_v21 = vld [vmem:[%s8720_s0 + $0x30] sm:$0xff]  }
  0x59   : > { %1379 = vrot.lane.b32.xlu0 %v1378_v23, %s7063_s9  ;;  %v6931_v23 = vld [vmem:[%s7271_s29 + $0x30] sm:$0xf]  ;;  %s6133_s9 = sshll.u32 %s7262_s10, 5 }
  0x5a   : > { %s891_s7 = scalar_lea.vmem %s8724_s1, %s6133_s9  ;;  %s6134_s1 = sshll.u32 %s7262_s10, 3 }
  0x5b   : > { %s6136_s9 = sshll.u32 %s7262_s10, 6 }
  0x5c   : > { %1825 = vrot.lane.b32.xlu1 %v1813_v51, %s7064_s30 }
  0x5d   : > { %1823 = vrot.lane.b32.xlu0 %v1806_v50, %s7064_s30 }
  0x60   : > { %1916 = vrot.lane.b32.xlu1 %v1915_v56, %s7064_s30 }
  0x61   : > { %1827 = vrot.lane.b32.xlu0 %v1820_v55, %s7064_s30 }
  0x64   : > { %2236 = vrot.lane.b32.xlu1 %v2235_v60, %s7064_s30  ;;  %v6671_v60 = vld [vmem:[%s8720_s0 + $0x40] sm:$0xff]  }
  0x65   : > { %1821 = vrot.lane.b32.xlu0 %v1799_v59, %s7064_s30 }
  0xa6   : > { %v1062_v61 = vpop.permute.xlu1 %1061 }
  0xa7   : > { %v1060_v62 = vpop.permute.xlu0 %1059 }
  0xaa   : > { %v1066_v63 = vpop.permute.xlu1 %1065 }
  0xab   : > { %v1064_v0 = vpop.permute.xlu0 %1063 }
  0xae   : > { %v1040_v2 = vpop.permute.xlu1 %1039 }
  0xaf   : > { %v1036_v4 = vpop.permute.xlu0 %1035  ;;  %v1085_v5 = vsel %vm1073_vm0, %v7289_v10, %v1040_v2 }
  0xb0   : > { %v1079_v7 = vsel %vm1073_vm0, %v7278_v3, %v1036_v4  ;;  %v1106_v12 = vsel %vm1098_vm1, %v1085_v5, %v1064_v0  ;;  %v6667_v3 = vld [vmem:[%s8720_s0 + $0x8] sm:$0xff]  }
  0xb1   : > { %v1102_v16 = vsel %vm1098_vm1, %v1079_v7, %v1060_v62  ;;  %v1569_v7 = vld [vmem:[%s8723_s13] sm:$0xf] }
  0xb2   : > { %v1042_v8 = vpop.permute.xlu1 %1041  ;;  %6590 = vmatprep.subr.msk.bf16.mxu1 %vm1603_vm3, %v1569_v7 }
  0xb3   : > { %v1088_v9 = vsel %vm1073_vm0, %v7283_v6, %v1042_v8  ;;  %v1038_v11 = vpop.permute.xlu0 %1037  ;;  %v1605_v8 = vsel %vm1603_vm3, %v1569_v7, 0 }
  0xb4   : > { %v1108_v13 = vsel %vm1098_vm1, %v1088_v9, %v1066_v63  ;;  %v1082_v14 = vsel %vm1073_vm0, %v7274_v1, %v1038_v11  ;;  %v6668_v1 = vld [vmem:[%s8720_s0 + $0x10] sm:$0xff]   ;;  %v6936_v63 = vld [vmem:[%s7271_s29 + $0x48] sm:$0xf]  ;;  %6447 = vmatpush3.bf16.msra.mxu1 %v1605_v8  ;;  %v6678_v9 = vld [vmem:[%s891_s7] sm:$0xff]   ;;  %s8725_s0 = sld [smem:[#allocation21_spill]]  ;;  %s6129_s29 = sshll.u32 %s7231_s8, 6 }
  0xb5   : > { %v5562_v15 = vcombine.low %v1106_v12, %v1108_v13  ;;  %v1104_v10 = vsel %vm1098_vm1, %v1082_v14, %v1062_v61  ;;  %v6679_v11 = vld [vmem:[%s891_s7 + $0x8] sm:$0xff]   ;;  %6448 = vmatprep.mubr.msk.bf16.mxu1 %vm1590_vm4, %v6678_v9  ;;  %v5598_v8 = vld [vmem:[%s8727_s4] ss:$0 sm:$0xff]  ;;  %s8728_s4 = sld [smem:[#allocation16_spill]] }
  0xb6   : > { %v1046_v6 = vpop.permute.xlu1 %1045  ;;  %v5561_v17 = vcombine.low %v1102_v16, %v1104_v10  ;;  %v5573_v58 = vcombine.low %v1104_v10, %v1106_v12  ;;  %v6680_v12 = vld [vmem:[%s891_s7 + $0x10] sm:$0xff]  }
  0xb7   : > { %v1044_v18 = vpop.permute.xlu0 %1043  ;;  %v1094_v32 = vsel %vm1073_vm0, %v6931_v23, %v1046_v6  ;;  %6449 = vmatmul.mubr.msk.bf16.vlgmr.msra.gmra.mrb[0].mxu1 %vm1590_vm4, %v6679_v11  ;;  %v7066_v23 = vmov 1983009808  }
  0xb8   : > { %6410 = vmatprep.mubr.msk.bf16.mxu0 %vm1188_vm2, %v5561_v17  ;;  %v1091_v37 = vsel %vm1073_vm0, %v6932_v36, %v1044_v18  ;;  %6452 = vmatprep.mubr.msk.bf16.mxu1 %vm1590_vm4, %v6680_v12 }
  0xb9   : > { %6411 = vmatmul.mubr.msk.bf16.vlgmr.msra.gmra.mrb[0].mxu0 %vm1188_vm2, %v5562_v15  ;;  %v7065_v15 = vmov 0  }
  0xba   : > { %v1068_v19 = vpop.permute.xlu1 %1067  ;;  %6419 = vmatpush3.bf16.msra.mxu0 %v7320_v52  ;;  %v6682_v14 = vld [vmem:[%s8725_s0] sm:$0xff]   ;;  %v6685_v6 = vld [vmem:[%s8725_s0 + $0x10] sm:$0xff]   ;;  %v6687_v17 = vld [vmem:[%s8725_s0 + $0x18] sm:$0xff]  }
  0xbb   : > { %v1048_v20 = vpop.permute.xlu0 %1047  ;;  %6420 = vmatprep.subr.bf16.mxu0 %v6667_v3  ;;  %v1110_v39 = vsel %vm1098_vm1, %v1091_v37, %v1068_v19  ;;  %v6689_v18 = vld [vmem:[%s8725_s0 + $0x20] sm:$0xff]   ;;  %v6693_v19 = vld [vmem:[%s8725_s0 + $0x30] sm:$0xff]   ;;  %s901_s30 = scalar_lea.vmem %s8728_s4, %s6134_s1  ;;  %s7731_s1 = scalar_lea.vmem %s8684_s23, %s6136_s9 }
  0xbc   : > { %v1097_v45 = vsel %vm1073_vm0, %v6934_v44, %v1048_v20  ;;  %v5574_v59 = vcombine.low %v1108_v13, %v1110_v39  ;;  %v6681_v13 = vld [vmem:[%s891_s7 + $0x18] sm:$0xff]   ;;  %v1830_v20 = vrot.slane %v7359_v27, 1  ;;  %v1831_v27 = vrot.slane %v7363_v28, 1  ;;  %v6697_v28 = vld [vmem:[%s8725_s0 + $0x40] sm:$0xff]   ;;  %s8730_s9 = sld [smem:[#allocation23_spill]]  ;;  %s8376_s4 = sand.u32 1, %s7052_s3  }
  0xbd   : > { %s8548_s7 = scalar_lea.hbm %s8686_s25, %s6129_s29 }
  0xbe   : > { %v1134_v22 = vpop.permute.xlu1 %1133  ;;  %6421 = vmatpush3.bf16.msra.mxu0 %v6667_v3  ;;  %v6683_v3 = vld [vmem:[%s8725_s0 + $0x8] sm:$0xff]  }
  0xbf   : > { %v1070_v38 = vpop.permute.xlu0 %1069  ;;  %6422 = vmatprep.subr.bf16.mxu0 %v6668_v1  ;;  %v1140_v42 = vsel %vm1073_vm0, %v6933_v41, %v1134_v22  ;;  %6453 = vmatmul.mubr.msk.bf16.gmra.mrb[4].mxu1 %vm1590_vm4, %v6681_v13 }
  0xc0   : > { %v1112_v52 = vsel %vm1098_vm1, %v1094_v32, %v1070_v38  ;;  %v1852_v32 = vunpack.c.l.s4 %v7066_v23  ;;  %v6695_v38 = vld [vmem:[%s8725_s0 + $0x38] sm:$0xff]  }
  0xc1   : > { %v5563_v40 = vcombine.low %v1110_v39, %v1112_v52 }
  0xc2   : > { %v1137_v43 = vpop.permute.xlu1 %1136  ;;  %6423 = vmatpush3.bf16.msra.mxu0 %v6668_v1  ;;  %v6691_v1 = vld [vmem:[%s8725_s0 + $0x28] sm:$0xff]   ;;  %v1853_v39 = vunpack.c.0.s8 %v1852_v32 }
  0xc3   : > { %v1142_v46 = vsel %vm1098_vm1, %v1140_v42, %v1137_v43  ;;  %6414 = vmatprep.mubr.msk.bf16.mxu0 %vm1188_vm2, %v5563_v40  ;;  %v1072_v47 = vpop.permute.xlu0 %1071  ;;  %6432 = vmatprep.subr.bf16.mxu0 %v6669_v21  ;;  %v1832_v42 = vrot.slane %v7367_v29, 1  ;;  %v1918_v29 = vrot.slane %v7378_v33, 1  ;;  %v6699_v33 = vld [vmem:[%s8725_s0 + $0x48] sm:$0xff]  }
  0xc4   : > { %v1114_v48 = vsel %vm1098_vm1, %v1097_v45, %v1072_v47 }
  0xc5   : > { %v5564_v49 = vcombine.low %v1114_v48, %v1142_v46  ;;  %v5575_v61 = vcombine.low %v1112_v52, %v1114_v48 }
  0xc6   : > { %v1058_v50 = vpop.permute.xlu1 %1057 }
  0xc7   : > { %6415 = vmatmul.mubr.msk.bf16.gmra.mrb[4].mxu0 %vm1188_vm2, %v5564_v49  ;;  %v1034_v51 = vpop.permute.xlu0 %1033 }
  0xc8   : > { %v1076_v54 = vsel %vm1073_vm0, %v6935_v53, %v1034_v51 }
  0xc9   : > { %v1100_v55 = vsel %vm1098_vm1, %v1076_v54, %v1058_v50  ;;  %v1829_v50 = vrot.slane %v7382_v34, 1 }
  0xca   : > { %v5572_v56 = vcombine.low %v1100_v55, %v1102_v16  ;;  %v1383_v2 = vpop.permute.xlu1 %1382  ;;  %v1568_v16 = vld [vmem:[%s8726_s12] sm:$0xf]  ;;  %s8731_s12 = sld [smem:[#allocation17_spill]] }
  0xcb   : > { %v1380_v62 = vpop.permute.xlu0 %1379  ;;  %6591 = vmatprep.subr.msk.bf16.mxu1 %vm1603_vm3, %v1568_v16  ;;  %v1685_v10 = vsel %vm1603_vm3, %v1568_v16, 0 }
  0xcc   : > { %6424 = vmatprep.mubr.msk.bf16.mxu0 %vm1188_vm2, %v5572_v56  ;;  %v1386_v0 = vsel %vm1073_vm0, %v6936_v63, %v1380_v62  ;;  %6457 = vmatpush3.bf16.msra.mxu1 %v1685_v10 }
  0xcd   : > { %v1388_v4 = vsel %vm1098_vm1, %v1386_v0, %v1383_v2  ;;  %2050 = vmatprep.subr.bf16.mxu1 %v7065_v15  ;;  %v6703_v2 = vld [vmem:[%s8725_s0 + $0x58] sm:$0xff]  }
  0xce   : > { %v5590_v5 = vcombine.low %v1142_v46, %v1388_v4  ;;  %v1826_v40 = vpop.permute.xlu1 %1825 }
  0xcf   : > { %6425 = vmatmul.mubr.msk.bf16.vlgmr.msra.gmra.mrb[0].mxu0 %vm1188_vm2, %v5573_v58  ;;  %v1824_v22 = vpop.permute.xlu0 %1823  ;;  %v1842_v41 = vsel %vm1833_vm5, %v7352_v25, %v1826_v40 }
  0xd0   : > { %6433 = vmatpush3.bf16.msra.mxu0 %v6669_v21  ;;  %6428 = vmatprep.mubr.msk.bf16.mxu0 %vm1188_vm2, %v5574_v59  ;;  %v1854_v21 = vlaneseq  ;;  %v1839_v36 = vsel %vm1833_vm5, %v7349_v24, %v1824_v22  ;;  %v1866_v44 = vcombine.low %v1842_v41, %v1831_v27 }
  0xd1   : > { %6434 = vmatprep.subr.bf16.mxu0 %v6670_v57  ;;  %v1858_v52 = vcombine.low %v1839_v36, %v1830_v20 }
  0xd2   : > { %v7507_v37 = vshrl.u32 %v1854_v21, 7  ;;  %v1917_v48 = vpop.permute.xlu1 %1916 }
  0xd3   : > { %v1828_v24 = vpop.permute.xlu0 %1827 }
  0xd4   : > { %6435 = vmatpush3.bf16.msra.mxu0 %v6670_v57  ;;  %v7517_v43 = vsub.s32 %v1853_v39, %v7507_v37  ;;  %v1845_v45 = vsel %vm1833_vm5, %v7355_v26, %v1828_v24  ;;  %v1921_v26 = vsel %vm1833_vm5, %v7370_v30, %v1917_v48 }
  0xd5   : > { %6436 = vmatprep.subr.bf16.mxu0 %v6671_v60  ;;  %v1874_v46 = vcombine.low %v1845_v45, %v1832_v42  ;;  %v1923_v54 = vcombine.low %v1921_v26, %v1918_v29 }
  0xd6   : > { %v1865_v47 = vrot.slane %v1858_v52, %v7517_v43  ;;  %v1873_v25 = vrot.slane %v1866_v44, %v7517_v43 }
  0xd7   : > { %6429 = vmatmul.mubr.msk.bf16.gmra.mrb[4].mxu0 %vm1188_vm2, %v5575_v61  ;;  %v1881_v49 = vrot.slane %v1874_v46, %v7517_v43  ;;  %v1822_v51 = vpop.permute.xlu0 %1821 }
  0xd8   : > { %6438 = vmatprep.mubr.msk.bf16.mxu0 %vm1188_vm2, %v5573_v58  ;;  %6437 = vmatpush3.bf16.msra.mxu0 %v6671_v60  ;;  %v1956_v53 = vcombine.low %v1865_v47, %v1873_v25  ;;  %v1836_v55 = vsel %vm1833_vm5, %v7373_v31, %v1822_v51  ;;  %v7539_v58 = vrot.slane %v1923_v54, %v7517_v43  ;;  %v6701_v60 = vld [vmem:[%s8725_s0 + $0x50] sm:$0xff]  }
  0xd9   : > { %2185 = vmatprep.subr.bf16.mxu0 %v7065_v15  ;;  %v1850_v56 = vcombine.low %v1836_v55, %v1829_v50  ;;  %v2092_v57 = vcombine.low %v1873_v25, %v1881_v49 }
  0xda   : > { %v7543_v34 = vrot.slane %v1956_v53, %v7517_v43 }
  0xdb   : > { %v1857_v30 = vrot.slane %v1850_v56, %v7517_v43 }
  0xdd   : > { %v2091_v31 = vcombine.low %v1857_v30, %v1865_v47 }
  0xdf   : > { %6439 = vmatmul.mubr.msk.bf16.vlgmr.msra.gmra.mrb[0].mxu0 %vm1188_vm2, %v5574_v59  ;;  %v1957_v59 = vcombine.low %v1881_v49, %v7539_v58  ;;  %v2099_v63 = vrot.slane %v2091_v31, %v7517_v43 }
  0xe0   : > { %6442 = vmatprep.mubr.msk.bf16.mxu0 %vm1188_vm2, %v5575_v61  ;;  %2186 = vmatpush1.bf16.msra.mxu0 %v6682_v14  ;;  %v7551_v61 = vrot.slane %v2092_v57, %v7517_v43 }
  0xe1   : > { %2187 = vmatprep.subr.bf16.mxu0 %v7065_v15  ;;  %v7554_v62 = vrot.slane %v1957_v59, %v7517_v43 }
  0xe2   : > { %v2107_v4 = vcombine.low %v2099_v63, %v7551_v61 }
  0xe3   : > { %v1972_v0 = vcombine.low %v7543_v34, %v7554_v62  ;;  %v1973_v7 = vcombine.high %v7543_v34, %v7554_v62  ;;  %v6709_v34 = vld [vmem:[%s8725_s0 + $0xd8] sm:$0xff]   ;;  %v6710_v62 = vld [vmem:[%s8725_s0 + $0xe0] sm:$0xff]  }
  0xe4   : > { %2188 = vmatpush1.bf16.msra.mxu0 %v6683_v3 }
  0xe5   : > { %2189 = vmatprep.subr.bf16.mxu0 %v7065_v15 }
  0xe7   : > { %6443 = vmatmul.mubr.msk.bf16.gmra.mrb[4].mxu0 %vm1188_vm2, %v5590_v5  ;;  %v2108_v5 = vcombine.high %v2099_v63, %v7551_v61 }
  0xe8   : > { %2190 = vmatpush1.bf16.msra.mxu0 %v6685_v6 }
  0xe9   : > { %2191 = vmatprep.subr.bf16.mxu0 %v7065_v15  ;;  %5666 = vmatprep.mubr.msk.bf16.mxu0 %vm1833_vm5, %v2108_v5 }
  0xec   : > { %2192 = vmatpush1.bf16.msra.mxu0 %v6687_v17 }
  0xed   : > { %2193 = vmatprep.subr.bf16.mxu0 %v7065_v15 }
  0xf0   : > { %2194 = vmatpush1.bf16.msra.mxu0 %v6689_v18 }
  0xf1   : > { %2195 = vmatprep.subr.bf16.mxu0 %v7065_v15 }
  0xf4   : > { %2196 = vmatpush1.bf16.msra.mxu0 %v6691_v1 }
  0xf5   : > { %2197 = vmatprep.subr.bf16.mxu0 %v7065_v15 }
  0xf8   : > { %2198 = vmatpush1.bf16.msra.mxu0 %v6693_v19 }
  0xf9   : > { %2199 = vmatprep.subr.bf16.mxu0 %v7065_v15 }
  0xfc   : > { %2200 = vmatpush1.bf16.msra.mxu0 %v6695_v38 }
  0xfd   : > { %2201 = vmatprep.subr.bf16.mxu0 %v7065_v15 }
 0x100   : > { %2202 = vmatpush1.bf16.msra.mxu0 %v6697_v28 }
 0x101   : > { %2203 = vmatprep.subr.bf16.mxu0 %v7065_v15 }
 0x104   : > { %2204 = vmatpush1.bf16.msra.mxu0 %v6699_v33 }
 0x105   : > { %2205 = vmatprep.subr.bf16.mxu0 %v7065_v15 }
 0x108   : > { %2206 = vmatpush1.bf16.msra.mxu0 %v6701_v60 }
 0x109   : > { %2207 = vmatprep.subr.bf16.mxu0 %v7065_v15 }
 0x10c   : > { %2208 = vmatpush1.bf16.msra.mxu0 %v6703_v2 }
 0x10f   : > { %2218 = vmatmul.mubr.bf16.vlgmr.msra.gmra.mrb[8].mxu0 %v2107_v4 }
 0x1b2   : > { %v6440_v9 = vpop.f32.mrb[0].mxu0 }
 0x1b3   : > { %v7571_v11 = vadd.f32 %v6440_v9, %v5598_v8  ;;  %v1454_v12 = vpop.f32.mrb[1].mxu0 }
 0x1b4   : > { %v7573_v13 = vadd.f32 %v5598_v8, %v1454_v12  ;;  %v6441_v14 = vpop.f32.mrb[2].mxu0 }
 0x1b5   : > { %v1510_v16 = vsub.f32 0.0, %v7571_v11  ;;  %v7576_v10 = vadd.f32 %v6441_v14, %v5598_v8  ;;  %v1457_v3 = vpop.f32.mrb[3].mxu0 }
 0x1b6   : > { %v1508_v6 = vsub.f32 0.0, %v7573_v13  ;;  %v1501_v17 = vadd.f32 %v5598_v8, %v1457_v3  ;;  %v6684_v3 = vld [vmem:[%s8725_s0 + $0x60] sm:$0xff]  }
 0x1b7   : > { %v1520_v18 = vmul.f32 1.442695, %v1510_v16  ;;  %v1511_v1 = vsub.f32 0.0, %v7576_v10 }
 0x1b8   : > { %v1516_v19 = vmul.f32 1.442695, %v1508_v6  ;;  %v1509_v20 = vsub.f32 0.0, %v1501_v17 }
 0x1b9   : > { %6887 = vpow2.f32 %v1520_v18  ;;  %v1522_v21 = vmul.f32 1.442695, %v1511_v1 }
 0x1ba   : > { %6889 = vpow2.f32 %v1516_v19  ;;  %v1518_v22 = vmul.f32 1.442695, %v1509_v20  ;;  %v6444_v23 = vpop.f32.mrb[4].mxu0 }
 0x1bb   : > { %6891 = vpow2.f32 %v1522_v21  ;;  %v7580_v32 = vadd.f32 %v6444_v23, %v5598_v8  ;;  %v1470_v36 = vpop.f32.mrb[5].mxu0  ;;  %v6688_v23 = vld [vmem:[%s8725_s0 + $0x70] sm:$0xff]  }
 0x1bc   : > { %6893 = vpow2.f32 %v1518_v22  ;;  %v7582_v38 = vadd.f32 %v5598_v8, %v1470_v36  ;;  %v6445_v39 = vpop.f32.mrb[6].mxu0  ;;  %v6692_v36 = vld [vmem:[%s8725_s0 + $0x80] sm:$0xff]  }
 0x1bd   : > { %v1514_v52 = vsub.f32 0.0, %v7580_v32  ;;  %v1507_v27 = vadd.f32 %v6445_v39, %v5598_v8  ;;  %v1473_v40 = vpop.f32.mrb[7].mxu0  ;;  %v6698_v39 = vld [vmem:[%s8725_s0 + $0x98] sm:$0xff]  }
 0x1be   : > { %v1512_v41 = vsub.f32 0.0, %v7582_v38  ;;  %v1505_v42 = vadd.f32 %v5598_v8, %v1473_v40  ;;  %v6937_v40 = vld [vmem:[%s7346_s5 + $0x14] sm:$0x7] }
 0x1bf   : > { %v1528_v24 = vmul.f32 1.442695, %v1514_v52  ;;  %v1515_v44 = vsub.f32 0.0, %v1507_v27  ;;  %v2237_v52 = vpop.permute.xlu1 %2236 }
 0x1c0   : > { %v1524_v45 = vmul.f32 1.442695, %v1512_v41  ;;  %v1513_v46 = vsub.f32 0.0, %v1505_v42  ;;  %v2241_v41 = vsel %vm1833_vm5, %v6937_v40, %v2237_v52  ;;  %v6730_v52 = vld [vmem:[%s8730_s9 + $0x250] sm:$0xff]  }
 0x1c1   : > { %6895 = vpow2.f32 %v1528_v24  ;;  %v1530_v28 = vmul.f32 1.442695, %v1515_v44  ;;  %v6702_v44 = vld [vmem:[%s8725_s0 + $0xa8] sm:$0xff]  }
 0x1c2   : > { %6897 = vpow2.f32 %v1524_v45  ;;  %v1526_v47 = vmul.f32 1.442695, %v1513_v46  ;;  %v6704_v45 = vld [vmem:[%s8725_s0 + $0xb0] sm:$0xff]  }
 0x1c3   : > { %v6888_v25 = vpop.eup %6887  ;;  %6899 = vpow2.f32 %v1530_v28  ;;  %v6705_v28 = vld [vmem:[%s8725_s0 + $0xb8] sm:$0xff]  }
 0x1c4   : > { %v6890_v29 = vpop.eup %6889  ;;  %v1534_v48 = vadd.f32 1.0, %v6888_v25  ;;  %6901 = vpow2.f32 %v1526_v47  ;;  %v6706_v25 = vld [vmem:[%s8725_s0 + $0xc0] sm:$0xff]  }
 0x1c5   : > { %v6892_v49 = vpop.eup %6891  ;;  %v1532_v26 = vadd.f32 1.0, %v6890_v29 }
 0x1c6   : > { %v6894_v50 = vpop.eup %6893  ;;  %6903 = vrcp.f32 %v1534_v48  ;;  %v1535_v51 = vadd.f32 1.0, %v6892_v49  ;;  %v6708_v48 = vld [vmem:[%s8725_s0 + $0xd0] sm:$0xff]  }
 0x1c7   : > { %6905 = vrcp.f32 %v1532_v26  ;;  %v1533_v53 = vadd.f32 1.0, %v6894_v50  ;;  %v6712_v49 = vld [vmem:[%s8725_s0 + $0xf0] sm:$0xff]   ;;  %v6713_v26 = vld [vmem:[%s8725_s0 + $0xf8] sm:$0xff]   ;;  %v6714_v50 = vld [vmem:[%s8725_s0 + $0x100] sm:$0xff]  }
 0x1c8   : > { %6907 = vrcp.f32 %v1535_v51  ;;  %v6715_v51 = vld [vmem:[%s8725_s0 + $0x108] sm:$0xff]  }
 0x1c9   : > { %6909 = vrcp.f32 %v1533_v53  ;;  %v6716_v53 = vld [vmem:[%s8725_s0 + $0x110] sm:$0xff]  }
 0x1cb   : > { %v6896_v54 = vpop.eup %6895 }
 0x1cc   : > { %v6898_v55 = vpop.eup %6897  ;;  %v1538_v56 = vadd.f32 1.0, %v6896_v54  ;;  %v6717_v54 = vld [vmem:[%s8725_s0 + $0x118] sm:$0xff]  }
 0x1cd   : > { %v6900_v33 = vpop.eup %6899  ;;  %v1536_v57 = vadd.f32 1.0, %v6898_v55 }
 0x1ce   : > { %v6902_v30 = vpop.eup %6901  ;;  %6911 = vrcp.f32 %v1538_v56  ;;  %v1539_v59 = vadd.f32 1.0, %v6900_v33 }
 0x1cf   : > { %6913 = vrcp.f32 %v1536_v57  ;;  %v1537_v31 = vadd.f32 1.0, %v6902_v30 }
 0x1d0   : > { %v6904_v60 = vpop.eup %6903  ;;  %6915 = vrcp.f32 %v1539_v59  ;;  %v6718_v59 = vld [vmem:[%s8677_s16] sm:$0xff]  }
 0x1d1   : > { %v6906_v63 = vpop.eup %6905  ;;  %6917 = vrcp.f32 %v1537_v31  ;;  %v1550_v5 = vmul.f32 %v6904_v60, %v7571_v11  ;;  %v6686_v11 = vld [vmem:[%s8725_s0 + $0x68] sm:$0xff]   ;;  %v7067_v31 = vmov 0.0   ;;  %v5611_v60 = vld [vmem:[%s8729_s14] ss:$0 sm:$0xff] }
 0x1d2   : > { %v6908_v2 = vpop.eup %6907  ;;  %v1548_v9 = vmul.f32 %v6906_v63, %v7573_v13  ;;  %6466 = vmatprep.subr.bf16.mxu0 %v7067_v31  ;;  %6468 = vmatprep.mubr.msk.bf16.mxu0 %vm7068_vm6, %v7067_v31 }
 0x1d3   : > { %v6910_v4 = vpop.eup %6909  ;;  %v1551_v8 = vmul.f32 %v6908_v2, %v7576_v10  ;;  %6467 = vmatpush3.bf16.msra.mxu0 %v6718_v59 }
 0x1d4   : > { %v1549_v12 = vmul.f32 %v6910_v4, %v1501_v17  ;;  %6472 = vmatprep.subr.bf16.mxu0 %v7067_v31 }
 0x1d5   : > { %v1565_v14 = vpack.c.bf16 %v1551_v8, %v1550_v5  ;;  %v6720_v5 = vld [vmem:[%s8676_s15] sm:$0xff]  }
 0x1d6   : > { %v1564_v16 = vpack.c.bf16 %v1549_v12, %v1548_v9 }
 0x1d8   : > { %v6912_v6 = vpop.eup %6911  ;;  %6458 = vmatprep.mubr.msk.bf16.mxu1 %vm1590_vm4, %v1564_v16 }
 0x1d9   : > { %v6914_v18 = vpop.eup %6913  ;;  %6459 = vmatmul.mubr.msk.bf16.vlgmr.msra.gmra.mrb[0].mxu1 %vm1590_vm4, %v1565_v14  ;;  %v1554_v10 = vmul.f32 %v6912_v6, %v7580_v32  ;;  %v6690_v32 = vld [vmem:[%s8725_s0 + $0x78] sm:$0xff]   ;;  %v6722_v6 = vld [vmem:[%s8730_s9 + $0x240] sm:$0xff]  }
 0x1da   : > { %v6916_v1 = vpop.eup %6915  ;;  %2051 = vmatpush1.bf16.msra.mxu1 %v6684_v3  ;;  %v1552_v19 = vmul.f32 %v6914_v18, %v7582_v38  ;;  %v6694_v38 = vld [vmem:[%s8725_s0 + $0x88] sm:$0xff]   ;;  %v6721_v3 = vld [vmem:[%s8730_s9 + $0x1c0] sm:$0xff]  }
 0x1db   : > { %v6918_v13 = vpop.eup %6917  ;;  %v1555_v17 = vmul.f32 %v6916_v1, %v1507_v27  ;;  %2052 = vmatprep.subr.bf16.mxu1 %v7065_v15  ;;  %v2238_v27 = vrot.slane %v7384_v35, 1  ;;  %v6724_v18 = vld [vmem:[%s8730_s9 + $0x200] sm:$0xff]  }
 0x1dc   : > { %v1553_v20 = vmul.f32 %v6918_v13, %v1505_v42  ;;  %v6700_v42 = vld [vmem:[%s8725_s0 + $0xa0] sm:$0xff]  }
 0x1dd   : > { %v1567_v21 = vpack.c.bf16 %v1555_v17, %v1554_v10  ;;  %v2243_v24 = vcombine.low %v2241_v41, %v2238_v27  ;;  %v6726_v10 = vld [vmem:[%s8730_s9 + $0x248] sm:$0xff]   ;;  %v7069_v17 = vmov 1966171168   ;;  %v6732_v41 = vld [vmem:[%s8730_s9 + $0x210] sm:$0xff]  }
 0x1de   : > { %v1566_v22 = vpack.c.bf16 %v1553_v20, %v1552_v19  ;;  %2053 = vmatpush1.bf16.msra.mxu1 %v6686_v11  ;;  %v2607_v19 = vunpack.c.l.s4 %v7069_v17 }
 0x1df   : > { %2054 = vmatprep.subr.bf16.mxu1 %v7065_v15  ;;  %v2250_v35 = vrot.slane %v2243_v24, %v7517_v43 }
 0x1e0   : > { %6462 = vmatprep.mubr.msk.bf16.mxu1 %vm1590_vm4, %v1566_v22  ;;  %v6728_v22 = vld [vmem:[%s8730_s9 + $0x208] sm:$0xff]   ;;  %v2608_v40 = vunpack.c.0.s8 %v2607_v19 }
 0x1e1   : > { %6463 = vmatmul.mubr.msk.bf16.gmra.mrb[4].mxu1 %vm1590_vm4, %v1567_v21  ;;  %v2276_v46 = vcombine.low %v7539_v58, %v2250_v35  ;;  %v6707_v58 = vld [vmem:[%s8725_s0 + $0xc8] sm:$0xff]  }
 0x1e2   : > { %2055 = vmatpush1.bf16.msra.mxu1 %v6688_v23  ;;  %5653 = vmatprep.mubr.msk.bf16.mxu1 %vm1833_vm5, %v1973_v7  ;;  %v6696_v7 = vld [vmem:[%s8725_s0 + $0x90] sm:$0xff]   ;;  %v7706_v56 = vpop.f32.mrb[8].mxu0 }
 0x1e3   : > { %2056 = vmatprep.subr.bf16.mxu1 %v7065_v15  ;;  %v2283_v47 = vrot.slane %v2276_v46, %v7517_v43  ;;  %v2221_v33 = vpop.f32.mrb[9].mxu0 }
 0x1e4   : > { %v7708_v57 = vpop.f32.mrb[10].mxu0 }
 0x1e5   : > { %v2285_v29 = vcombine.high %v7551_v61, %v2283_v47  ;;  %v2284_v55 = vcombine.low %v7551_v61, %v2283_v47  ;;  %v2224_v30 = vpop.f32.mrb[11].mxu0  ;;  %v6719_v61 = vld [vmem:[%s901_s30] sm:$0xff]   ;;  %s6135_s30 = sshll.u32 %s7262_s10, 4 }
 0x1e6   : > { %2057 = vmatpush1.bf16.msra.mxu1 %v6690_v32  ;;  %6469 = vmatmul.mubr.msk.bf16.vlgmr.msra.gmra.mrb[12].mxu0 %vm1073_vm0, %v6719_v61  ;;  %s7763_s13 = scalar_lea.vmem %s8731_s12, %s6135_s30  ;;  %v6740_v30 = vld [vmem:[%s8730_s9 + $0x220] sm:$0xff]   ;;  %s8732_s30 = sld [smem:[#allocation22_spill]] }
 0x1e7   : > { %2058 = vmatprep.subr.bf16.mxu1 %v7065_v15  ;;  %6474 = vmatprep.mubr.msk.bf16.mxu0 %vm7068_vm6, %v7067_v31  ;;  %s5534_s12 = sshll.u32 %s8376_s4, 2 }
 0x1e8   : > { %6473 = vmatpush3.bf16.msra.mxu0 %v6720_v5 }
 0x1e9   : > { %6173 = vmatprep.subr.bf16.mxu0 %v6721_v3  ;;  %v6748_v3 = vld [vmem:[%s8730_s9 + $0x230] sm:$0xff]  }
 0x1ea   : > { %2059 = vmatpush1.bf16.msra.mxu1 %v6692_v36  ;;  %v7768_v36 = vld.sshfl [vmem:[%s7763_s13 + $0x4] sm:$0x33 pattern:$0x76325410] }
 0x1eb   : > { %2060 = vmatprep.subr.bf16.mxu1 %v7065_v15 }
 0x1ee   : > { %2061 = vmatpush1.bf16.msra.mxu1 %v6694_v38 }
 0x1ef   : > { %2062 = vmatprep.subr.bf16.mxu1 %v7065_v15 }
 0x1f2   : > { %2063 = vmatpush1.bf16.msra.mxu1 %v6696_v7  ;;  %v7773_v7 = vld.sshfl [vmem:[%s7763_s13 + $0x8] sm:$0x33 pattern:$0x76325410] }
 0x1f3   : > { %2064 = vmatprep.subr.bf16.mxu1 %v7065_v15  ;;  %v7786_v27 = vcombine.high %v7773_v7, %v7773_v7 }
 0x1f5   : > { %v2798_v35 = vshll.u32 %v7786_v27, 16 }
 0x1f6   : > { %2065 = vmatpush1.bf16.msra.mxu1 %v6698_v39  ;;  %v7777_v39 = vcombine.high %v7768_v36, %v7768_v36 }
 0x1f7   : > { %2066 = vmatprep.subr.bf16.mxu1 %v7065_v15 }
 0x1f8   : > { %v2595_v24 = vshll.u32 %v7777_v39, 16 }
 0x1fa   : > { %2067 = vmatpush1.bf16.msra.mxu1 %v6700_v42  ;;  %v2588_v42 = vshll.u32 %v7768_v36, 16  ;;  %v2597_v47 = vrot.slane %v2595_v24, 1 }
 0x1fb   : > { %2068 = vmatprep.subr.bf16.mxu1 %v7065_v15 }
 0x1fc   : > { %v2590_v46 = vrot.slane %v2588_v42, 1 }
 0x1fe   : > { %2069 = vmatpush1.bf16.msra.mxu1 %v6702_v44  ;;  %v2791_v44 = vshll.u32 %v7773_v7, 16 }
 0x1ff   : > { %2070 = vmatprep.subr.bf16.mxu1 %v7065_v15 }
 0x202   : > { %2071 = vmatpush1.bf16.msra.mxu1 %v6704_v45  ;;  %v2586_v45 = vshrl.u32 %v7768_v36, 16 }
 0x203   : > { %2072 = vmatprep.subr.bf16.mxu1 %v7065_v15 }
 0x206   : > { %2073 = vmatpush1.bf16.msra.mxu1 %v6705_v28  ;;  %v2593_v28 = vshrl.u32 %v7777_v39, 16 }
 0x207   : > { %2362 = vmatprep.subr.bf16.mxu1 %v7065_v15 }
 0x209   : > { %2083 = vmatmul.mubr.bf16.vlgmr.msra.gmra.mrb[8].mxu1 %v1972_v0  ;;  %v6711_v0 = vld [vmem:[%s8725_s0 + $0xe8] sm:$0xff]   ;;  %s5533_s0 = sshll.u32 %s8376_s4, 4 }
 0x20a   : > { %2363 = vmatpush1.bf16.msra.mxu1 %v6706_v25  ;;  %5704 = vmatprep.mubr.msk.bf16.mxu1 %vm1833_vm5, %v2285_v29  ;;  %v6734_v25 = vld [vmem:[%s8730_s9 + $0x258] sm:$0xff]   ;;  %v2789_v29 = vshrl.u32 %v7773_v7, 16 }
 0x20b   : > { %2364 = vmatprep.subr.bf16.mxu1 %v7065_v15 }
 0x20e   : > { %2365 = vmatpush1.bf16.msra.mxu1 %v6707_v58  ;;  %v2793_v58 = vrot.slane %v2791_v44, 1  ;;  %v6766_v44 = vld [vmem:[%s8730_s9 + $0x58] sm:$0xff]  }
 0x20f   : > { %2366 = vmatprep.subr.bf16.mxu1 %v7065_v15 }
 0x212   : > { %2367 = vmatpush1.bf16.msra.mxu1 %v6708_v48  ;;  %v2796_v48 = vshrl.u32 %v7786_v27, 16 }
 0x213   : > { %2368 = vmatprep.subr.bf16.mxu1 %v7065_v15 }
 0x216   : > { %2369 = vmatpush1.bf16.msra.mxu1 %v6709_v34  ;;  %v2800_v34 = vrot.slane %v2798_v35, 1 }
 0x217   : > { %2370 = vmatprep.subr.bf16.mxu1 %v7065_v15 }
 0x21a   : > { %2371 = vmatpush1.bf16.msra.mxu1 %v6710_v62  ;;  %v7805_v62 = vsub.s32 %v2608_v40, %v7507_v37  ;;  %v6738_v37 = vld [vmem:[%s8730_s9 + $0x260] sm:$0xff]  }
 0x21b   : > { %2372 = vmatprep.subr.bf16.mxu1 %v7065_v15 }
 0x21e   : > { %2373 = vmatpush1.bf16.msra.mxu1 %v6711_v0  ;;  %v6736_v0 = vld [vmem:[%s8730_s9 + $0x218] sm:$0xff]  }
 0x21f   : > { %2374 = vmatprep.subr.bf16.mxu1 %v7065_v15 }
 0x222   : > { %2375 = vmatpush1.bf16.msra.mxu1 %v6712_v49  ;;  %v2591_v49 = vor.u32 %v2590_v46, %v2586_v45 }
 0x223   : > { %2376 = vmatprep.subr.bf16.mxu1 %v7065_v15 }
 0x226   : > { %2377 = vmatpush1.bf16.msra.mxu1 %v6713_v26  ;;  %v2598_v26 = vor.u32 %v2597_v47, %v2593_v28  ;;  %v6768_v28 = vld [vmem:[%s8730_s9 + $0x18] sm:$0xff]  }
 0x227   : > { %2378 = vmatprep.subr.bf16.mxu1 %v7065_v15 }
 0x22a   : > { %2379 = vmatpush1.bf16.msra.mxu1 %v6714_v50  ;;  %v2794_v50 = vor.u32 %v2793_v58, %v2789_v29 }
 0x22b   : > { %2380 = vmatprep.subr.bf16.mxu1 %v7065_v15 }
 0x22e   : > { %2381 = vmatpush1.bf16.msra.mxu1 %v6715_v51  ;;  %v2801_v51 = vor.u32 %v2800_v34, %v2796_v48  ;;  %v6770_v34 = vld [vmem:[%s8730_s9 + $0x60] sm:$0xff]  }
 0x22f   : > { %2382 = vmatprep.subr.bf16.mxu1 %v7065_v15 }
 0x230   : > { %v2805_v33 = vcombine.low %v2794_v50, %v2801_v51  ;;  %v2802_v50 = vrot.slane %v7773_v7, 1  ;;  %v2803_v51 = vrot.slane %v7786_v27, 1 }
 0x232   : > { %2383 = vmatpush1.bf16.msra.mxu1 %v6716_v53  ;;  %v2643_v53 = vcombine.low %v7768_v36, %v7777_v39 }
 0x233   : > { %2384 = vmatprep.subr.bf16.mxu1 %v7065_v15 }
 0x234   : > { %v2652_v59 = vrot.slane %v2643_v53, %v7805_v62 }
 0x236   : > { %2385 = vmatpush1.bf16.msra.mxu1 %v6717_v54  ;;  %v2644_v54 = vcombine.low %v2591_v49, %v2598_v26  ;;  %v6772_v49 = vld [vmem:[%s8730_s9 + $0x20] sm:$0xff]   ;;  %v2602_v26 = vrot.slane %v7777_v39, 1 }
 0x237   : > { %6195 = vmatprep.subr.bf16.mxu1 %v6722_v6 }
 0x238   : > { %v2659_v61 = vrot.slane %v2644_v54, %v7805_v62 }
 0x239   : > { %2395 = vmatmul.mubr.bf16.vlgmr.msra.gmra.mrb[12].mxu1 %v2284_v55  ;;  %v2804_v55 = vcombine.low %v7773_v7, %v7786_v27  ;;  %v6776_v7 = vld [vmem:[%s8730_s9 + $0x28] sm:$0xff]  }
 0x23a   : > { %6196 = vmatpush3.bf16.msra.mxu1 %v6724_v18  ;;  %v6750_v18 = vld [vmem:[%s8730_s9 + $0x278] sm:$0xff]  }
 0x23b   : > { %6197 = vmatprep.subr.bf16.mxu1 %v6726_v10 }
 0x23e   : > { %6198 = vmatpush3.bf16.msra.mxu1 %v6728_v22  ;;  %v6758_v22 = vld [vmem:[%s8730_s9 + $0x48] sm:$0xff]  }
 0x23f   : > { %6199 = vmatprep.subr.bf16.mxu1 %v6730_v52  ;;  %v7880_v52 = vld.sshfl [vmem:[%s7763_s13] sm:$0x33 pattern:$0x76325410] }
 0x240   : > { %v7884_v40 = vcombine.high %v7880_v52, %v7880_v52  ;;  %v2574_v35 = vshll.u32 %v7880_v52, 16 }
 0x242   : > { %6200 = vmatpush3.bf16.msra.mxu1 %v6732_v41  ;;  %v2581_v45 = vshll.u32 %v7884_v40, 16  ;;  %v2576_v29 = vrot.slane %v2574_v35, 1  ;;  %v2579_v58 = vshrl.u32 %v7884_v40, 16  ;;  %v2603_v54 = vcombine.low %v7880_v52, %v7884_v40 }
 0x243   : > { %6201 = vmatprep.subr.bf16.mxu1 %v6734_v25  ;;  %v2572_v25 = vshrl.u32 %v7880_v52, 16 }
 0x244   : > { %v2583_v48 = vrot.slane %v2581_v45, 1  ;;  %v2612_v39 = vrot.slane %v2603_v54, %v7805_v62  ;;  %v6812_v45 = vld [vmem:[%s8730_s9 + $0x130] sm:$0xff]   ;;  %v6818_v54 = vld [vmem:[%s8730_s9 + $0x3c0] sm:$0xff]  }
 0x246   : > { %6202 = vmatpush3.bf16.msra.mxu1 %v6736_v0  ;;  %v2577_v0 = vor.u32 %v2576_v29, %v2572_v25  ;;  %v2584_v53 = vor.u32 %v2583_v48, %v2579_v58  ;;  %v6814_v58 = vld [vmem:[%s8730_s9 + $0x178] sm:$0xff]  }
 0x247   : > { %6203 = vmatprep.subr.bf16.mxu1 %v6738_v37  ;;  %v7914_v37 = vcombine.low %v2802_v50, %v2803_v51 }
 0x24a   : > { %6204 = vmatpush3.bf16.msra.mxu1 %v6740_v30  ;;  %v6778_v30 = vld [vmem:[%s8730_s9 + $0x70] sm:$0xff]  }
 0x2ac   : > { %v6460_v63 = vpop.f32.mrb[0].mxu1 }
 0x2ad   : > { %v1761_v2 = vadd.f32 %v6460_v63, %v5611_v60  ;;  %v1721_v4 = vpop.f32.mrb[1].mxu1  ;;  %v2820_v63 = vrot.slane %v2805_v33, %v7805_v62  ;;  %v6774_v33 = vld [vmem:[%s8730_s9 + $0x68] sm:$0xff]  }
 0x2ae   : > { %v1759_v8 = vadd.f32 %v5611_v60, %v1721_v4  ;;  %v6461_v9 = vpop.f32.mrb[2].mxu1  ;;  %v6742_v4 = vld [vmem:[%s8730_s9 + $0x268] sm:$0xff]  }
 0x2af   : > { %1769 = vst.msk [vmem:[%s7731_s1 + $0x10] sm:$0xff] %vm1590_vm4, %v1761_v2  ;;  %v1762_v12 = vadd.f32 %v6461_v9, %v5611_v60  ;;  %v1724_v14 = vpop.f32.mrb[3].mxu1  ;;  %v2667_v2 = vcombine.low %v2652_v59, %v2659_v61  ;;  %6205 = vmatprep.subr.bf16.mxu1 %v6742_v4  ;;  %v6780_v61 = vld [vmem:[%s8730_s9 + $0x30] sm:$0xff]   ;;  %v6784_v4 = vld [vmem:[%s8730_s9 + $0x38] sm:$0xff]  }
 0x2b0   : > { %1767 = vst.msk [vmem:[%s7731_s1] sm:$0xff] %vm1590_vm4, %v1759_v8  ;;  %v1760_v16 = vadd.f32 %v5611_v60, %v1724_v14  ;;  %v6744_v8 = vld [vmem:[%s8730_s9 + $0x228] sm:$0xff]   ;;  %v6746_v14 = vld [vmem:[%s8730_s9 + $0x270] sm:$0xff]  }
 0x2b1   : > { %1770 = vst.msk [vmem:[%s7731_s1 + $0x18] sm:$0xff] %vm1590_vm4, %v1762_v12  ;;  %v7831_v9 = vrot.slane %v2667_v2, %v7805_v62  ;;  %6206 = vmatpush3.bf16.msra.mxu1 %v6744_v8 }
 0x2b2   : > { %1768 = vst.msk [vmem:[%s7731_s1 + $0x8] sm:$0xff] %vm1590_vm4, %v1760_v16  ;;  %6207 = vmatprep.subr.bf16.mxu1 %v6746_v14  ;;  %v6786_v14 = vld [vmem:[%s8730_s9 + $0x140] sm:$0xff]  }
 0x2b4   : > { %v6464_v1 = vpop.f32.mrb[4].mxu1 }
 0x2b5   : > { %v1765_v11 = vadd.f32 %v6464_v1, %v5611_v60  ;;  %v1737_v13 = vpop.f32.mrb[5].mxu1  ;;  %6208 = vmatpush3.bf16.msra.mxu1 %v6748_v3 }
 0x2b6   : > { %v1763_v20 = vadd.f32 %v5611_v60, %v1737_v13  ;;  %v6465_v21 = vpop.f32.mrb[6].mxu1  ;;  %6209 = vmatprep.subr.bf16.mxu1 %v6750_v18  ;;  %v6792_v18 = vld [vmem:[%s8730_s9 + $0x108] sm:$0xff]  }
 0x2b7   : > { %1773 = vst.msk [vmem:[%s7731_s1 + $0x30] sm:$0xff] %vm1590_vm4, %v1765_v11  ;;  %v1766_v23 = vadd.f32 %v6465_v21, %v5611_v60  ;;  %v1740_v32 = vpop.f32.mrb[7].mxu1  ;;  %v6752_v11 = vld [vmem:[%s8730_s9 + $0x238] sm:$0xff]   ;;  %v6756_v21 = vld [vmem:[%s8730_s9] sm:$0xff]  }
 0x2b8   : > { %1771 = vst.msk [vmem:[%s7731_s1 + $0x20] sm:$0xff] %vm1590_vm4, %v1763_v20  ;;  %v1764_v38 = vadd.f32 %v5611_v60, %v1740_v32  ;;  %v2813_v60 = vrot.slane %v2804_v55, %v7805_v62  ;;  %v6754_v20 = vld [vmem:[%s8730_s9 + $0x40] sm:$0xff]   ;;  %v6762_v32 = vld [vmem:[%s8730_s9 + $0x50] sm:$0xff]  }
 0x2b9   : > { %1774 = vst.msk [vmem:[%s7731_s1 + $0x38] sm:$0xff] %vm1590_vm4, %v1766_v23  ;;  %6210 = vmatpush3.bf16.msra.mxu1 %v6752_v11  ;;  %v6760_v23 = vld [vmem:[%s8730_s9 + $0x8] sm:$0xff]   ;;  %v6796_v11 = vld [vmem:[%s8730_s9 + $0x110] sm:$0xff]  }
 0x2ba   : > { %1772 = vst.msk [vmem:[%s7731_s1 + $0x28] sm:$0xff] %vm1590_vm4, %v1764_v38  ;;  %v2828_v5 = vcombine.low %v2813_v60, %v2820_v63  ;;  %6239 = vmatprep.subr.bf16.mxu1 %v6754_v20  ;;  %v6764_v38 = vld [vmem:[%s8730_s9 + $0x10] sm:$0xff]   ;;  %v6782_v63 = vld [vmem:[%s8730_s9 + $0x78] sm:$0xff]   ;;  %v6802_v20 = vld [vmem:[%s8730_s9 + $0x160] sm:$0xff]   ;;  %s8384_s1 = scalar_lea.vmem [#allocation2], %s5533_s0  ;;  %s7070_s0 = smov [#allocation4]  }
 0x2bc   : > { %v7834_v12 = vrot.slane %v2828_v5, %v7805_v62 }
 0x2be   : > { %v5811_v16 = vcombine.low %v7831_v9, %v7834_v12 }
 0x2c0   : > { %v2949_v6 = vrot.slane %v5811_v16, %v7805_v62 }
 0x2c2   : > { %v2957_v1 = vcombine.high %v2949_v6, %v2949_v6  ;;  %v7855_v10 = vrot.slane %v2949_v6, %v7805_v62  ;;  %v6790_v6 = vld [vmem:[%s8730_s9 + $0x148] sm:$0xff]  }
 0x2c4   : > { %v7852_v13 = vrot.slane %v2957_v1, %v7805_v62  ;;  %v2987_v19 = vcombine.high %v7855_v10, %v7855_v10  ;;  %v6794_v1 = vld [vmem:[%s8730_s9 + $0x150] sm:$0xff]  }
 0x2c6   : > { %v2988_v17 = vcombine.high %v7852_v13, %v7852_v13 }
 0x2c8   : > { %3355 = vmatprep.mubr.bf16.mxu1 %v2988_v17  ;;  %v6798_v17 = vld [vmem:[%s8730_s9 + $0x158] sm:$0xff]  }
 0x2c9   : > { %3356 = vmatmul.mubr.bf16.vlgmr.msra.gmra.mrb[16].mxu1 %v2987_v19  ;;  %v6800_v19 = vld [vmem:[%s8730_s9 + $0x118] sm:$0xff]  }
 0x2ca   : > { %6240 = vmatpush3.bf16.msra.mxu1 %v6756_v21  ;;  %v6804_v21 = vld [vmem:[%s8730_s9 + $0x120] sm:$0xff]  }
 0x2cb   : > { %6241 = vmatprep.subr.bf16.mxu1 %v6758_v22  ;;  %v2599_v22 = vrot.slane %v7880_v52, 1 }
 0x2ce   : > { %6242 = vmatpush3.bf16.msra.mxu1 %v6760_v23  ;;  %v2600_v23 = vrot.slane %v7884_v40, 1  ;;  %v6810_v40 = vld [vmem:[%s8730_s9 + $0x170] sm:$0xff]  }
 0x2cf   : > { %6243 = vmatprep.subr.bf16.mxu1 %v6762_v32 }
 0x2d2   : > { %6244 = vmatpush3.bf16.msra.mxu1 %v6764_v38  ;;  %v6806_v38 = vld [vmem:[%s8730_s9 + $0x168] sm:$0xff]  }
 0x2d3   : > { %6245 = vmatprep.subr.bf16.mxu1 %v6766_v44 }
 0x2d6   : > { %6246 = vmatpush3.bf16.msra.mxu1 %v6768_v28 }
 0x2d7   : > { %6247 = vmatprep.subr.bf16.mxu1 %v6770_v34 }
 0x2da   : > { %6248 = vmatpush3.bf16.msra.mxu1 %v6772_v49 }
 0x2db   : > { %6249 = vmatprep.subr.bf16.mxu1 %v6774_v33 }
 0x2dc   : > { %v2084_v41 = vpop.f32.mrb[8].mxu1 }
 0x2dd   : > { %v7887_v42 = vadd.f32 %v7706_v56, %v2084_v41  ;;  %v2086_v24 = vpop.f32.mrb[9].mxu1  ;;  %v2605_v41 = vcombine.low %v2599_v22, %v2600_v23  ;;  %v6834_v22 = vld [vmem:[%s8730_s9 + $0x3e0] sm:$0xff]  }
 0x2de   : > { %v2087_v46 = vpop.f32.mrb[10].mxu1  ;;  %6250 = vmatpush3.bf16.msra.mxu1 %v6776_v7  ;;  %v6808_v24 = vld [vmem:[%s8730_s9 + $0x128] sm:$0xff]  }
 0x2df   : > { %v7898_v47 = vadd.f32 %v7708_v57, %v2087_v46  ;;  %v2089_v56 = vpop.f32.mrb[11].mxu1  ;;  %v2601_v57 = vrot.slane %v7768_v36, 1  ;;  %v2604_v36 = vcombine.low %v2577_v0, %v2584_v53  ;;  %6251 = vmatprep.subr.bf16.mxu1 %v6778_v30  ;;  %v2626_v44 = vrot.slane %v2605_v41, %v7805_v62  ;;  %v6822_v7 = vld [vmem:[%s8730_s9 + $0x3c8] sm:$0xff]   ;;  %v6836_v41 = vld [vmem:[%s8730_s9 + $0x3a0] sm:$0xff]  }
 0x2e0   : > { %v5705_v56 = vld [vmem:[%s8732_s30] ss:$0 sm:$0xff]  ;;  %v8031_v30 = vld.sshfl [vmem:[%s7763_s13 + $0xc] sm:$0x33 pattern:$0x76325410] }
 0x2e1   : > { %v2645_v55 = vcombine.low %v2601_v57, %v2602_v26  ;;  %v2619_v27 = vrot.slane %v2604_v36, %v7805_v62  ;;  %v2641_v35 = vrot.slane %v2626_v44, %v7805_v62  ;;  %v6816_v26 = vld [vmem:[%s8730_s9 + $0x138] sm:$0xff]   ;;  %v6820_v36 = vld [vmem:[%s8730_s9 + $0x380] sm:$0xff]   ;;  %v6838_v44 = vld [vmem:[%s8730_s9 + $0x3e8] sm:$0xff]   ;;  %s5543_s13 = sshll.u32 %s7262_s10, 1  ;;  %s8733_s30 = sld [smem:[#allocation18_spill]] }
 0x2e2   : > { %6252 = vmatpush3.bf16.msra.mxu1 %v6780_v61  ;;  %v6826_v61 = vld [vmem:[%s8730_s9 + $0x3d0] sm:$0xff]  }
 0x2e3   : > { %v2627_v59 = vcombine.low %v2612_v39, %v2619_v27  ;;  %6253 = vmatprep.subr.bf16.mxu1 %v6782_v63  ;;  %v2666_v32 = vrot.slane %v2645_v55, %v7805_v62  ;;  %v6824_v27 = vld [vmem:[%s8730_s9 + $0x388] sm:$0xff]  }
 0x2e5   : > { %v2634_v60 = vrot.slane %v2627_v59, %v7805_v62  ;;  %v7988_v52 = vrot.slane %v2666_v32, %v7805_v62  ;;  %v8035_v59 = vcombine.high %v8031_v30, %v8031_v30 }
 0x2e6   : > { %6254 = vmatpush3.bf16.msra.mxu1 %v6784_v4  ;;  %v3875_v4 = vshrl.u32 %v8031_v30, 16 }
 0x2e7   : > { %v5861_v2 = vcombine.low %v2634_v60, %v7831_v9  ;;  %6283 = vmatprep.subr.bf16.mxu1 %v6786_v14  ;;  %v6788_v9 = vld [vmem:[%s8730_s9 + $0x100] sm:$0xff]   ;;  %v5862_v46 = vcombine.low %v2641_v35, %v7988_v52  ;;  %v3877_v60 = vshll.u32 %v8031_v30, 16  ;;  %v3884_v63 = vshll.u32 %v8035_v59, 16  ;;  %v6840_v35 = vld [vmem:[%s8730_s9 + $0x3a8] sm:$0xff]   ;;  %s910_s14 = scalar_lea.vmem %s8733_s30, %s5543_s13  ;;  %s5278_s30 = sand.u32 1, %s7231_s8  }
 0x2e8   : > { %s6137_s13 = sshll.u32 %s7231_s8, 8 }
 0x2e9   : > { %v3411_v5 = vrot.slane %v5861_v2, %v7805_v62  ;;  %v3418_v48 = vrot.slane %v5862_v46, %v7805_v62  ;;  %v6828_v2 = vld [vmem:[%s8730_s9 + $0x390] sm:$0xff]   ;;  %v3886_v14 = vrot.slane %v3884_v63, 1  ;;  %v6743_v63 = vld [vmem:[%s8730_s9 + $0x1a8] sm:$0xff]  }
 0x2ea   : > { %v6842_v46 = vld [vmem:[%s8730_s9 + $0x3f0] sm:$0xff]  }
 0x2eb   : > { %v3419_v8 = vcombine.high %v3411_v5, %v3411_v5  ;;  %v7943_v16 = vrot.slane %v3411_v5, %v7805_v62  ;;  %v3420_v50 = vcombine.high %v3418_v48, %v3418_v48  ;;  %v3879_v5 = vrot.slane %v3877_v60, 1 }
 0x2ec   : > { %v3889_v60 = vrot.slane %v8035_v59, 1 }
 0x2ed   : > { %v7946_v3 = vrot.slane %v3419_v8, %v7805_v62  ;;  %v3448_v53 = vrot.slane %v3420_v50, %v7805_v62  ;;  %v3882_v8 = vshrl.u32 %v8035_v59, 16  ;;  %v6723_v50 = vld [vmem:[%s8730_s9 + $0x180] sm:$0xff]  }
 0x2ef   : > { %3777 = vmatprep.mubr.bf16.mxu1 %v7946_v3 }
 0x2f0   : > { %3778 = vmatmul.mubr.bf16.vlgmr.msra.gmra.mrb[20].mxu1 %v7943_v16 }
 0x2f1   : > { %6284 = vmatpush3.bf16.msra.mxu1 %v6788_v9  ;;  %3857 = vmatprep.mubr.bf16.mxu1 %v3448_v53  ;;  %v6830_v9 = vld [vmem:[%s8730_s9 + $0x3d8] sm:$0xff]  }
 0x2f2   : > { %6285 = vmatprep.subr.bf16.mxu1 %v6790_v6  ;;  %v3880_v6 = vor.u32 %v3879_v5, %v3875_v4  ;;  %v6745_v5 = vld [vmem:[%s8730_s9 + $0x1f0] sm:$0xff]  }
 0x2f5   : > { %6286 = vmatpush3.bf16.msra.mxu1 %v6792_v18  ;;  %v3887_v18 = vor.u32 %v3886_v14, %v3882_v8  ;;  %v6749_v8 = vld [vmem:[%s8730_s9 + $0x1f8] sm:$0xff]  }
 0x2f6   : > { %6287 = vmatprep.subr.bf16.mxu1 %v6794_v1 }
 0x2f9   : > { %6288 = vmatpush3.bf16.msra.mxu1 %v6796_v11  ;;  %v6832_v11 = vld [vmem:[%s8730_s9 + $0x398] sm:$0xff]  }
 0x2fa   : > { %6289 = vmatprep.subr.bf16.mxu1 %v6798_v17 }
 0x2fd   : > { %6290 = vmatpush3.bf16.msra.mxu1 %v6800_v19  ;;  %v3890_v19 = vcombine.low %v8031_v30, %v8035_v59 }
 0x2fe   : > { %6291 = vmatprep.subr.bf16.mxu1 %v6802_v20  ;;  %v3891_v20 = vcombine.low %v3880_v6, %v3887_v18  ;;  %v6755_v6 = vld [vmem:[%s8730_s9 + $0x280] sm:$0xff]  }
 0x2ff   : > { %v3899_v32 = vrot.slane %v3890_v19, %v7805_v62  ;;  %v6763_v19 = vld [vmem:[%s8730_s9 + $0x290] sm:$0xff]  }
 0x301   : > { %6292 = vmatpush3.bf16.msra.mxu1 %v6804_v21 }
 0x302   : > { %6293 = vmatprep.subr.bf16.mxu1 %v6806_v38  ;;  %v3906_v38 = vrot.slane %v3891_v20, %v7805_v62  ;;  %v6767_v20 = vld [vmem:[%s8730_s9 + $0x298] sm:$0xff]  }
 0x305   : > { %6294 = vmatpush3.bf16.msra.mxu1 %v6808_v24  ;;  %v3914_v24 = vcombine.low %v3899_v32, %v3906_v38  ;;  %v6775_v32 = vld [vmem:[%s8730_s9 + $0x2a8] sm:$0xff]   ;;  %v6777_v38 = vld [vmem:[%s8730_s9 + $0x2f0] sm:$0xff]  }
 0x306   : > { %6295 = vmatprep.subr.bf16.mxu1 %v6810_v40 }
 0x307   : > { %v3921_v40 = vrot.slane %v3914_v24, %v7805_v62  ;;  %v6781_v24 = vld [vmem:[%s8730_s9 + $0x2f8] sm:$0xff]  }
 0x309   : > { %6296 = vmatpush3.bf16.msra.mxu1 %v6812_v45  ;;  %v6008_v45 = vcombine.low %v7834_v12, %v3921_v40  ;;  %v6785_v40 = vld [vmem:[%s8730_s9 + $0xc0] sm:$0xff]  }
 0x30a   : > { %6297 = vmatprep.subr.bf16.mxu1 %v6814_v58  ;;  %v6846_v58 = vld [vmem:[%s8730_s9 + $0x3f8] sm:$0xff]  }
 0x30c   : > { %v2396_v28 = vpop.f32.mrb[12].mxu1 }
 0x30d   : > { %v2403_v25 = vadd.f32 %v2396_v28, %v7887_v42  ;;  %v2398_v29 = vpop.f32.mrb[13].mxu1  ;;  %6298 = vmatpush3.bf16.msra.mxu1 %v6816_v26  ;;  %v4035_v28 = vrot.slane %v6008_v45, %v7805_v62  ;;  %v6787_v45 = vld [vmem:[%s8730_s9 + $0x80] sm:$0xff]  }
 0x30e   : > { %v2399_v34 = vpop.f32.mrb[14].mxu1  ;;  %6327 = vmatprep.subr.bf16.mxu1 %v6818_v54  ;;  %v6727_v54 = vld [vmem:[%s8730_s9 + $0x188] sm:$0xff]  }
 0x30f   : > { %v8006_v0 = vadd.f32 %v5705_v56, %v2403_v25  ;;  %v2404_v49 = vadd.f32 %v2399_v34, %v7898_v47  ;;  %v2401_v57 = vpop.f32.mrb[15].mxu1  ;;  %v3434_v47 = vrot.slane %v3418_v48, %v7805_v62  ;;  %v4043_v29 = vcombine.high %v4035_v28, %v4035_v28 }
 0x310   : > { %v6848_v57 = vld [vmem:[%s8730_s9 + $0x3b8] sm:$0xff]   ;;  %v8090_v26 = vrot.slane %v4035_v28, %v7805_v62  ;;  %v6789_v28 = vld [vmem:[%s8730_s9 + $0xc8] sm:$0xff]  }
 0x311   : > { %v2414_v42 = vsub.f32 0.0, %v8006_v0  ;;  %v8013_v51 = vadd.f32 %v5705_v56, %v2404_v49  ;;  %3858 = vmatmul.mubr.bf16.vlgmr.msra.gmra.mrb[24].mxu1 %v3434_v47  ;;  %v6844_v56 = vld [vmem:[%s8730_s9 + $0x3b0] sm:$0xff]   ;;  %v8082_v12 = vrot.slane %v4043_v29, %v7805_v62  ;;  %v6797_v29 = vld [vmem:[%s8730_s9 + $0xd8] sm:$0xff]  }
 0x312   : > { %6328 = vmatpush3.bf16.msra.mxu1 %v6820_v36  ;;  %v6729_v47 = vld [vmem:[%s8730_s9 + $0x1d0] sm:$0xff]   ;;  %v2827_v36 = vrot.slane %v7914_v37, %v7805_v62  ;;  %v3888_v37 = vrot.slane %v8031_v30, 1 }
 0x313   : > { %v2416_v55 = vmul.f32 1.442695, %v2414_v42  ;;  %v2415_v33 = vsub.f32 0.0, %v8013_v51  ;;  %6329 = vmatprep.subr.bf16.mxu1 %v6822_v7  ;;  %v4074_v42 = vcombine.high %v8082_v12, %v8082_v12  ;;  %v6739_v7 = vld [vmem:[%s8730_s9 + $0x1a0] sm:$0xff]   ;;  %v6747_v30 = vld [vmem:[%s8730_s9 + $0x1b0] sm:$0xff]  }
 0x314   : > { %v8143_v4 = vcombine.low %v3888_v37, %v3889_v60  ;;  %v6829_v37 = vld [vmem:[%s8730_s9 + $0x358] sm:$0xff]  }
 0x315   : > { %6919 = vpow2.f32 %v2416_v55  ;;  %v2418_v39 = vmul.f32 1.442695, %v2415_v33  ;;  %4441 = vmatprep.mubr.bf16.mxu1 %v4074_v42  ;;  %v6731_v55 = vld [vmem:[%s8730_s9 + $0x190] sm:$0xff]   ;;  %v6735_v33 = vld [vmem:[%s8730_s9 + $0x198] sm:$0xff]   ;;  %v6803_v42 = vld [vmem:[%s8730_s9 + $0xa0] sm:$0xff]  }
 0x316   : > { %6330 = vmatpush3.bf16.msra.mxu1 %v6824_v27  ;;  %v8131_v27 = vrot.slane %v2827_v36, %v7805_v62  ;;  %v6819_v36 = vld [vmem:[%s8730_s9 + $0x300] sm:$0xff]   ;;  %v3913_v60 = vrot.slane %v8143_v4, %v7805_v62  ;;  %v6839_v4 = vld [vmem:[%s8730_s9 + $0x328] sm:$0xff]  }
 0x317   : > { %6921 = vpow2.f32 %v2418_v39  ;;  %6331 = vmatprep.subr.bf16.mxu1 %v6826_v61  ;;  %v6737_v39 = vld [vmem:[%s8730_s9 + $0x1e0] sm:$0xff]   ;;  %v6741_v61 = vld [vmem:[%s8730_s9 + $0x1e8] sm:$0xff]  }
 0x31a   : > { %6332 = vmatpush3.bf16.msra.mxu1 %v6828_v2  ;;  %v5812_v2 = vcombine.low %v7988_v52, %v8131_v27  ;;  %v6751_v52 = vld [vmem:[%s8730_s9 + $0x1b8] sm:$0xff]  }
 0x31b   : > { %6333 = vmatprep.subr.bf16.mxu1 %v6830_v9  ;;  %v6753_v9 = vld [vmem:[%s8730_s9 + $0x2c0] sm:$0xff]  }
 0x31c   : > { %v2956_v59 = vrot.slane %v5812_v2, %v7805_v62  ;;  %v6835_v2 = vld [vmem:[%s8730_s9 + $0x320] sm:$0xff]  }
 0x31e   : > { %6334 = vmatpush3.bf16.msra.mxu1 %v6832_v11  ;;  %v2958_v14 = vcombine.high %v2956_v59, %v2956_v59  ;;  %v6759_v11 = vld [vmem:[%s8730_s9 + $0x288] sm:$0xff]  }
 0x31f   : > { %v6920_v1 = vpop.eup %6919  ;;  %6335 = vmatprep.subr.bf16.mxu1 %v6834_v22  ;;  %v6771_v22 = vld [vmem:[%s8730_s9 + $0x2a0] sm:$0xff]  }
 0x320   : > { %v2420_v17 = vadd.f32 1.0, %v6920_v1  ;;  %v2986_v18 = vrot.slane %v2958_v14, %v7805_v62  ;;  %v6757_v1 = vld [vmem:[%s8730_s9 + $0x2c8] sm:$0xff]   ;;  %v6843_v14 = vld [vmem:[%s8730_s9 + $0x330] sm:$0xff]  }
 0x321   : > { %v6922_v21 = vpop.eup %6921 }
 0x322   : > { %6923 = vrcp.f32 %v2420_v17  ;;  %v2421_v23 = vadd.f32 1.0, %v6922_v21  ;;  %6336 = vmatpush3.bf16.msra.mxu1 %v6836_v41  ;;  %v6761_v17 = vld [vmem:[%s8730_s9 + $0x2d0] sm:$0xff]   ;;  %v6769_v21 = vld [vmem:[%s8730_s9 + $0x2e0] sm:$0xff]  }
 0x323   : > { %6337 = vmatprep.subr.bf16.mxu1 %v6838_v44  ;;  %v6779_v41 = vld [vmem:[%s8730_s9 + $0x2b0] sm:$0xff]   ;;  %v6783_v44 = vld [vmem:[%s8730_s9 + $0x2b8] sm:$0xff]  }
 0x324   : > { %6925 = vrcp.f32 %v2421_v23  ;;  %v6773_v23 = vld [vmem:[%s8730_s9 + $0x2e8] sm:$0xff]  }
 0x326   : > { %6338 = vmatpush3.bf16.msra.mxu1 %v6840_v35  ;;  %v2972_v35 = vrot.slane %v2956_v59, %v7805_v62 }
 0x327   : > { %6339 = vmatprep.subr.bf16.mxu1 %v6842_v46  ;;  %v3450_v46 = vcombine.high %v7946_v3, %v7946_v3  ;;  %v6795_v3 = vld [vmem:[%s8730_s9 + $0x90] sm:$0xff]  }
 0x32a   : > { %6340 = vmatpush3.bf16.msra.mxu1 %v6844_v56  ;;  %v6791_v56 = vld [vmem:[%s8730_s9 + $0x88] sm:$0xff]  }
 0x32b   : > { %6341 = vmatprep.subr.bf16.mxu1 %v6846_v58  ;;  %v8232_v58 = vpop.f32.mrb[12].mxu0 }
 0x32c   : > { %v6924_v25 = vpop.eup %6923 }
 0x32d   : > { %v2424_v34 = vmul.f32 %v6924_v25, %v8006_v0  ;;  %v6725_v0 = vld [vmem:[%s8730_s9 + $0x1c8] sm:$0xff]   ;;  %v6793_v25 = vld [vmem:[%s8730_s9 + $0xd0] sm:$0xff]  }
 0x32e   : > { %v6926_v48 = vpop.eup %6925  ;;  %6342 = vmatpush3.bf16.msra.mxu1 %v6848_v57 }
 0x32f   : > { %v2425_v49 = vmul.f32 %v6926_v48, %v8013_v51  ;;  %v4073_v51 = vcombine.high %v8090_v26, %v8090_v26  ;;  %6478 = vmatprep.subr.bf16.mxu1 %v7067_v31  ;;  %v6799_v48 = vld [vmem:[%s8730_s9 + $0x98] sm:$0xff]  }
 0x331   : > { %v2428_v53 = vpack.c.bf16 %v2425_v49, %v2424_v34  ;;  %4442 = vmatmul.mubr.bf16.vlgmr.msra.gmra.mrb[28].mxu1 %v4073_v51  ;;  %v6470_v34 = vpop.f32.mrb[13].mxu0  ;;  %v6801_v49 = vld [vmem:[%s8730_s9 + $0xe0] sm:$0xff]   ;;  %v6809_v51 = vld [vmem:[%s8730_s9 + $0xf0] sm:$0xff]  }
 0x332   : > { %6482 = vmatprep.mubr.msk.bf16.mxu1 %vm7068_vm6, %v7067_v31  ;;  %v8240_v57 = vpop.f32.mrb[14].mxu0 }
 0x333   : > { %6475 = vmatmul.mubr.msk.bf16.vlgmr.msra.gmra.mrb[16].mxu0 %vm1073_vm0, %v2428_v53  ;;  %v6805_v53 = vld [vmem:[%s8730_s9 + $0xe8] sm:$0xff]  }
 0x334   : > { %6174 = vmatpush3.bf16.msra.mxu0 %v6723_v50  ;;  %3315 = vmatprep.mubr.bf16.mxu0 %v7852_v13  ;;  %v6733_v13 = vld [vmem:[%s8730_s9 + $0x1d8] sm:$0xff]   ;;  %v6471_v50 = vpop.f32.mrb[15].mxu0 }
 0x335   : > { %6175 = vmatprep.subr.bf16.mxu0 %v6725_v0  ;;  %v6807_v0 = vld [vmem:[%s8730_s9 + $0xa8] sm:$0xff]  }
 0x338   : > { %6176 = vmatpush3.bf16.msra.mxu0 %v6727_v54  ;;  %v6811_v54 = vld [vmem:[%s8730_s9 + $0xb0] sm:$0xff]  }
 0x339   : > { %6177 = vmatprep.subr.bf16.mxu0 %v6729_v47  ;;  %v6813_v47 = vld [vmem:[%s8730_s9 + $0xf8] sm:$0xff]  }
 0x33c   : > { %6178 = vmatpush3.bf16.msra.mxu0 %v6731_v55  ;;  %v6815_v55 = vld [vmem:[%s8730_s9 + $0xb8] sm:$0xff]  }
 0x33d   : > { %6179 = vmatprep.subr.bf16.mxu0 %v6733_v13  ;;  %v6817_v13 = vld [vmem:[%s8730_s9 + $0x340] sm:$0xff]  }
 0x340   : > { %6180 = vmatpush3.bf16.msra.mxu0 %v6735_v33  ;;  %v3449_v33 = vcombine.high %v7943_v16, %v7943_v16  ;;  %v6825_v16 = vld [vmem:[%s8730_s9 + $0x350] sm:$0xff]  }
 0x341   : > { %6181 = vmatprep.subr.bf16.mxu0 %v6737_v39  ;;  %v6821_v39 = vld [vmem:[%s8730_s9 + $0x348] sm:$0xff]  }
 0x344   : > { %6182 = vmatpush3.bf16.msra.mxu0 %v6739_v7  ;;  %v6823_v7 = vld [vmem:[%s8730_s9 + $0x308] sm:$0xff]  }
 0x345   : > { %6183 = vmatprep.subr.bf16.mxu0 %v6741_v61  ;;  %v6827_v61 = vld [vmem:[%s8730_s9 + $0x310] sm:$0xff]  }
 0x348   : > { %6184 = vmatpush3.bf16.msra.mxu0 %v6743_v63  ;;  %v6833_v63 = vld [vmem:[%s8730_s9 + $0x360] sm:$0xff]  }
 0x349   : > { %6185 = vmatprep.subr.bf16.mxu0 %v6745_v5  ;;  %v3928_v5 = vrot.slane %v3913_v60, %v7805_v62 }
 0x34b   : > { %v6009_v59 = vcombine.low %v8131_v27, %v3928_v5 }
 0x34c   : > { %6186 = vmatpush3.bf16.msra.mxu0 %v6747_v30  ;;  %v6837_v30 = vld [vmem:[%s8730_s9 + $0x368] sm:$0xff]  }
 0x34d   : > { %6187 = vmatprep.subr.bf16.mxu0 %v6749_v8  ;;  %v6841_v8 = vld [vmem:[%s8730_s9 + $0x370] sm:$0xff]  }
 0x350   : > { %6188 = vmatpush3.bf16.msra.mxu0 %v6751_v52 }
 0x351   : > { %6217 = vmatprep.subr.bf16.mxu0 %v6753_v9  ;;  %v4042_v9 = vrot.slane %v6009_v59, %v7805_v62  ;;  %v6866_v59 = vld [vmem:[%s8680_s19 + $0x8] sm:$0xff]  }
 0x353   : > { %3316 = vmatmul.mubr.bf16.vlgmr.msra.gmra.mrb[20].mxu0 %v7855_v10  ;;  %v6765_v10 = vld [vmem:[%s8730_s9 + $0x2d8] sm:$0xff]  }
 0x354   : > { %6218 = vmatpush3.bf16.msra.mxu0 %v6755_v6  ;;  %3395 = vmatprep.mubr.bf16.mxu0 %v2986_v18  ;;  %v6845_v18 = vld [vmem:[%s8730_s9 + $0x378] sm:$0xff]  }
 0x355   : > { %6219 = vmatprep.subr.bf16.mxu0 %v6757_v1 }
 0x358   : > { %6220 = vmatpush3.bf16.msra.mxu0 %v6759_v11 }
 0x359   : > { %6221 = vmatprep.subr.bf16.mxu0 %v6761_v17  ;;  %v6847_v17 = vld [vmem:[%s8730_s9 + $0x338] sm:$0xff]  }
 0x35c   : > { %6222 = vmatpush3.bf16.msra.mxu0 %v6763_v19  ;;  %v4044_v19 = vcombine.high %v4042_v9, %v4042_v9 }
 0x35d   : > { %6223 = vmatprep.subr.bf16.mxu0 %v6765_v10  ;;  %v6849_v10 = vld [vmem:[%s8730_s9 + $0x440] sm:$0xff]  }
 0x360   : > { %6224 = vmatpush3.bf16.msra.mxu0 %v6767_v20  ;;  %v6850_v20 = vld [vmem:[%s8730_s9 + $0x400] sm:$0xff]  }
 0x361   : > { %6225 = vmatprep.subr.bf16.mxu0 %v6769_v21  ;;  %v4072_v21 = vrot.slane %v4044_v19, %v7805_v62 }
 0x364   : > { %6226 = vmatpush3.bf16.msra.mxu0 %v6771_v22  ;;  %v6851_v22 = vld [vmem:[%s8730_s9 + $0x448] sm:$0xff]  }
 0x365   : > { %6227 = vmatprep.subr.bf16.mxu0 %v6773_v23  ;;  %v6852_v23 = vld [vmem:[%s8730_s9 + $0x408] sm:$0xff]  }
 0x368   : > { %6228 = vmatpush3.bf16.msra.mxu0 %v6775_v32  ;;  %v6853_v32 = vld [vmem:[%s8730_s9 + $0x450] sm:$0xff]  }
 0x369   : > { %6229 = vmatprep.subr.bf16.mxu0 %v6777_v38  ;;  %v6854_v38 = vld [vmem:[%s8730_s9 + $0x410] sm:$0xff]  }
 0x36c   : > { %6230 = vmatpush3.bf16.msra.mxu0 %v6779_v41  ;;  %v6856_v41 = vld [vmem:[%s8730_s9 + $0x418] sm:$0xff]  }
 0x36d   : > { %6231 = vmatprep.subr.bf16.mxu0 %v6781_v24  ;;  %v6857_v24 = vld [vmem:[%s8730_s9 + $0x460] sm:$0xff]  }
 0x370   : > { %6232 = vmatpush3.bf16.msra.mxu0 %v6783_v44  ;;  %v6858_v44 = vld [vmem:[%s8730_s9 + $0x420] sm:$0xff]  }
 0x371   : > { %6261 = vmatprep.subr.bf16.mxu0 %v6785_v40  ;;  %v6859_v40 = vld [vmem:[%s8730_s9 + $0x468] sm:$0xff]  }
 0x373   : > { %3396 = vmatmul.mubr.bf16.vlgmr.msra.gmra.mrb[24].mxu0 %v2972_v35  ;;  %v6860_v35 = vld [vmem:[%s8730_s9 + $0x428] sm:$0xff]  }
 0x374   : > { %6262 = vmatpush3.bf16.msra.mxu0 %v6787_v45  ;;  %3817 = vmatprep.mubr.bf16.mxu0 %v3450_v46  ;;  %v6861_v45 = vld [vmem:[%s8730_s9 + $0x470] sm:$0xff]  }
 0x375   : > { %6263 = vmatprep.subr.bf16.mxu0 %v6789_v28  ;;  %v6862_v46 = vld [vmem:[%s8730_s9 + $0x430] sm:$0xff]   ;;  %v6863_v28 = vld [vmem:[%s8730_s9 + $0x478] sm:$0xff]  }
 0x378   : > { %6264 = vmatpush3.bf16.msra.mxu0 %v6791_v56 }
 0x379   : > { %6265 = vmatprep.subr.bf16.mxu0 %v6793_v25 }
 0x37c   : > { %6266 = vmatpush3.bf16.msra.mxu0 %v6795_v3 }
 0x37d   : > { %6267 = vmatprep.subr.bf16.mxu0 %v6797_v29 }
 0x380   : > { %6268 = vmatpush3.bf16.msra.mxu0 %v6799_v48  ;;  %v6864_v48 = vld [vmem:[%s8730_s9 + $0x438] sm:$0xff]  }
 0x381   : > { %6269 = vmatprep.subr.bf16.mxu0 %v6801_v49  ;;  %v4058_v49 = vrot.slane %v4042_v9, %v7805_v62  ;;  %v5711_v62 = vld [vmem:[%s8678_s17] ss:$0 sm:$0xff] }
 0x382   : > { %v6867_v9 = vld [vmem:[%s8679_s18] sm:$0xff]  }
 0x384   : > { %6270 = vmatpush3.bf16.msra.mxu0 %v6803_v42 }
 0x385   : > { %6271 = vmatprep.subr.bf16.mxu0 %v6805_v53 }
 0x388   : > { %6272 = vmatpush3.bf16.msra.mxu0 %v6807_v0 }
 0x389   : > { %6273 = vmatprep.subr.bf16.mxu0 %v6809_v51 }
 0x38c   : > { %6274 = vmatpush3.bf16.msra.mxu0 %v6811_v54 }
 0x38d   : > { %6275 = vmatprep.subr.bf16.mxu0 %v6813_v47 }
 0x390   : > { %6276 = vmatpush3.bf16.msra.mxu0 %v6815_v55 }
 0x391   : > { %6305 = vmatprep.subr.bf16.mxu0 %v6817_v13 }
 0x393   : > { %3818 = vmatmul.mubr.bf16.vlgmr.msra.gmra.mrb[28].mxu0 %v3449_v33 }
 0x394   : > { %6306 = vmatpush3.bf16.msra.mxu0 %v6819_v36  ;;  %4401 = vmatprep.mubr.bf16.mxu0 %v8082_v12  ;;  %v6831_v12 = vld [vmem:[%s8730_s9 + $0x318] sm:$0xff]  }
 0x395   : > { %6307 = vmatprep.subr.bf16.mxu0 %v6821_v39 }
 0x398   : > { %6308 = vmatpush3.bf16.msra.mxu0 %v6823_v7 }
 0x399   : > { %6309 = vmatprep.subr.bf16.mxu0 %v6825_v16 }
 0x39c   : > { %6310 = vmatpush3.bf16.msra.mxu0 %v6827_v61  ;;  %v6211_v52 = vpop.f32.mrb[16].mxu1 }
 0x39d   : > { %6311 = vmatprep.subr.bf16.mxu0 %v6829_v37  ;;  %v6212_v6 = vpop.f32.mrb[17].mxu1 }
 0x39e   : > { %v8316_v27 = vadd.f32 %v6212_v6, %v6211_v52  ;;  %v6214_v1 = vpop.f32.mrb[18].mxu1 }
 0x39f   : > { %v6215_v11 = vpop.f32.mrb[19].mxu1 }
 0x3a0   : > { %6312 = vmatpush3.bf16.msra.mxu0 %v6831_v12  ;;  %v6868_v11 = vld [vmem:[%s8679_s18 + $0x8] sm:$0xff]  }
 0x3a1   : > { %6313 = vmatprep.subr.bf16.mxu0 %v6833_v63 }
 0x3a4   : > { %6314 = vmatpush3.bf16.msra.mxu0 %v6835_v2 }
 0x3a5   : > { %6315 = vmatprep.subr.bf16.mxu0 %v6837_v30 }
 0x3a8   : > { %6316 = vmatpush3.bf16.msra.mxu0 %v6839_v4  ;;  %v6865_v4 = vld [vmem:[%s8680_s19] sm:$0xff]  }
 0x3a9   : > { %6317 = vmatprep.subr.bf16.mxu0 %v6841_v8  ;;  %6479 = vmatpush3.bf16.msra.mxu1 %v6865_v4  ;;  %v4504_v8 = vld [vmem:[%s910_s14] sm:$0x3]  ;;  %s8481_s14 = scalar_lea.vmem [#allocation4], %s5534_s12  ;;  %s8554_s12 = scalar_lea.sflag [#allocation5], %s5278_s30 }
 0x3aa   : > { %6480 = vmatprep.subr.bf16.mxu1 %v7067_v31  ;;  %s5315_s5 = sshll.u32 %s8481_s14, 4  ;;  %s8551_s5 = int_to_ptr.vmem [resolvable:$true] %s5315_s5 }
 0x3ac   : > { %6318 = vmatpush3.bf16.msra.mxu0 %v6843_v14 }
 0x3ad   : > { %6319 = vmatprep.subr.bf16.mxu0 %v6845_v18  ;;  %6481 = vmatpush3.bf16.msra.mxu1 %v6866_v59 }
 0x3ae   : > { %6486 = vmatprep.subr.bf16.mxu1 %v7067_v31 }
 0x3b0   : > { %6320 = vmatpush3.bf16.msra.mxu0 %v6847_v17  ;;  %6483 = vmatmul.mubr.msk.bf16.vlgmr.msra.gmra.mrb[32].mxu1 %vm1098_vm1, %v4504_v8 }
 0x3b1   : > { %6349 = vmatprep.subr.bf16.mxu0 %v6849_v10  ;;  %6490 = vmatprep.mubr.msk.bf16.mxu1 %vm7068_vm6, %v7067_v31 }
 0x3b2   : > { %6487 = vmatpush3.bf16.msra.mxu1 %v6867_v9 }
 0x3b3   : > { %4402 = vmatmul.mubr.bf16.vlgmr.msra.gmra.mrb[32].mxu0 %v8090_v26  ;;  %v6855_v26 = vld [vmem:[%s8730_s9 + $0x458] sm:$0xff]   ;;  %6488 = vmatprep.subr.bf16.mxu1 %v7067_v31  ;;  %s6938_s9 = scalar_lea.vmem %s8551_s5, 64 }
 0x3b4   : > { %6350 = vmatpush3.bf16.msra.mxu0 %v6850_v20  ;;  %4481 = vmatprep.mubr.bf16.mxu0 %v4072_v21  ;;  %p6939_p11 = scmp.ne.s32.totalorder %s8551_s5, %s6938_s9 }
 0x3b5   : > { %6351 = vmatprep.subr.bf16.mxu0 %v6851_v22 }
 0x3b6   : > { %6489 = vmatpush3.bf16.msra.mxu1 %v6868_v11  ;;  %p6940_p12 = pnand %p6939_p11, %p7250_p5 }
 0x3b7   : > { %6494 = vmatprep.subr.bf16.mxu1 %v7067_v31 }
 0x3b8   : > { %6352 = vmatpush3.bf16.msra.mxu0 %v6852_v23  ;;  %p6941_p13 = pneg %p6940_p12 }
 0x3b9   : > { %6353 = vmatprep.subr.bf16.mxu0 %v6853_v32 }
 0x3bc   : > { %6354 = vmatpush3.bf16.msra.mxu0 %v6854_v38 }
 0x3bd   : > { %6355 = vmatprep.subr.bf16.mxu0 %v6855_v26 }
 0x3c0   : > { %6356 = vmatpush3.bf16.msra.mxu0 %v6856_v41 }
 0x3c1   : > { %6357 = vmatprep.subr.bf16.mxu0 %v6857_v24 }
 0x3c3   : > { %v6255_v56 = vpop.f32.mrb[20].mxu1 }
 0x3c4   : > { %6358 = vmatpush3.bf16.msra.mxu0 %v6858_v44  ;;  %v6256_v25 = vpop.f32.mrb[21].mxu1 }
 0x3c5   : > { %6359 = vmatprep.subr.bf16.mxu0 %v6859_v40  ;;  %v6257_v3 = vadd.f32 %v6256_v25, %v6255_v56  ;;  %v6258_v29 = vpop.f32.mrb[22].mxu1 }
 0x3c6   : > { %v6259_v34 = vpop.f32.mrb[23].mxu1 }
 0x3c8   : > { %6360 = vmatpush3.bf16.msra.mxu0 %v6860_v35 }
 0x3c9   : > { %6361 = vmatprep.subr.bf16.mxu0 %v6861_v45 }
 0x3cc   : > { %6362 = vmatpush3.bf16.msra.mxu0 %v6862_v46 }
 0x3cd   : > { %6363 = vmatprep.subr.bf16.mxu0 %v6863_v28 }
 0x3d0   : > { %6364 = vmatpush3.bf16.msra.mxu0 %v6864_v48 }
 0x3d1   : > { %6502 = vmatprep.subr.bf16.mxu0 %v7067_v31 }
 0x3d3   : > { %4482 = vmatmul.mubr.bf16.vlgmr.msra.gmra.mrb[36].mxu0 %v4058_v49 }
 0x3d4   : > { %6506 = vmatprep.mubr.msk.bf16.mxu0 %vm7068_vm6, %v7067_v31 }
 0x3e4   : > { %v6299_v50 = vpop.f32.mrb[24].mxu1 }
 0x3e5   : > { %v6300_v42 = vpop.f32.mrb[25].mxu1 }
 0x3e6   : > { %v6301_v53 = vadd.f32 %v6300_v42, %v6299_v50  ;;  %v6302_v0 = vpop.f32.mrb[26].mxu1 }
 0x3e7   : > { %v6303_v51 = vpop.f32.mrb[27].mxu1 }
 0x3e8   : > { %v6869_v51 = vld [vmem:[%s8682_s21 + $0x10] sm:$0xff]  }
 0x404   : > { %v6343_v7 = vpop.f32.mrb[28].mxu1 }
 0x405   : > { %v6344_v16 = vpop.f32.mrb[29].mxu1 }
 0x406   : > { %v2531_v54 = vpop.f32.mrb[16].mxu0  ;;  %v6345_v37 = vadd.f32 %v6344_v16, %v6343_v7  ;;  %v6346_v12 = vpop.f32.mrb[30].mxu1 }
 0x407   : > { %v2532_v47 = vadd.f32 %v2531_v54, %v8232_v58  ;;  %v6476_v55 = vpop.f32.mrb[17].mxu0  ;;  %v6347_v60 = vpop.f32.mrb[31].mxu1 }
 0x408   : > { %v2534_v13 = vpop.f32.mrb[18].mxu0  ;;  %v6875_v60 = vld [vmem:[%s8682_s21 + $0x40] sm:$0xff]  }
 0x409   : > { %v2545_v33 = vadd.f32 %v5711_v62, %v2532_v47  ;;  %v2535_v36 = vadd.f32 %v2534_v13, %v8240_v57  ;;  %v6477_v39 = vpop.f32.mrb[19].mxu0 }
 0x40a   : > { %v4676_v39 = vrot.slane %v7065_v15, 1  ;;  %v6873_v15 = vld [vmem:[%s8682_s21 + $0x8] sm:$0xff]  }
 0x40b   : > { %2547 = vst.msk [vmem:[%s8384_s1] sm:$0xff] %vm1073_vm0, %v2545_v33  ;;  %v2546_v61 = vadd.f32 %v5711_v62, %v2535_v36  ;;  %v6870_v62 = vld [vmem:[%s8682_s21 + $0x18] sm:$0xff]   ;;  %v6871_v36 = vld [vmem:[%s8682_s21] sm:$0xff]  }
 0x40c   : > { %6503 = vmatpush3.bf16.msra.mxu0 %v6871_v36  ;;  %v4688_v16 = vsel %vm8432_vm9, 0, %v4676_v39 }
 0x40d   : > { %2548 = vst.msk [vmem:[%s8384_s1 + $0x8] sm:$0xff] %vm1073_vm0, %v2546_v61  ;;  %v6872_v61 = vld [vmem:[%s8682_s21 + $0x20] sm:$0xff]   ;;  %6504 = vmatprep.subr.bf16.mxu0 %v7067_v31  ;;  %v4836_v12 = vshrl.u32 %v4688_v16, 16 }
 0x410   : > { %6505 = vmatpush3.bf16.msra.mxu0 %v6873_v15 }
 0x411   : > { %6518 = vmatprep.subr.bf16.mxu0 %v7067_v31 }
 0x413   : > { %6507 = vmatmul.mubr.msk.bf16.vlgmr.msra.gmra.mrb[40].mxu0 %vm1098_vm1, %v4688_v16 }
 0x414   : > { %6522 = vmatprep.mubr.msk.bf16.mxu0 %vm7068_vm6, %v7067_v31 }
 0x426   : > { %v6189_v58 = vpop.f32.mrb[20].mxu0 }
 0x427   : > { %v6190_v63 = vpop.f32.mrb[21].mxu0 }
 0x428   : > { %v6191_v2 = vadd.f32 %v6190_v63, %v6189_v58  ;;  %v6192_v57 = vpop.f32.mrb[22].mxu0  ;;  %v6876_v58 = vld [vmem:[%s8682_s21 + $0x30] sm:$0xff]   ;;  %v6877_v63 = vld [vmem:[%s8682_s21 + $0x48] sm:$0xff]  }
 0x429   : > { %v6193_v5 = vpop.f32.mrb[23].mxu0  ;;  %6519 = vmatpush3.bf16.msra.mxu0 %v6876_v58 }
 0x42a   : > { %v3358_v30 = vadd.f32 %v8316_v27, %v6191_v2  ;;  %6520 = vmatprep.subr.bf16.mxu0 %v7067_v31  ;;  %v6878_v2 = vld [vmem:[%s8682_s21 + $0x38] sm:$0xff]   ;;  %v6065_v5 = vld [vmem:[%s8681_s20] ss:$0 sm:$0xff] }
 0x42d   : > { %6521 = vmatpush3.bf16.msra.mxu0 %v6878_v2 }
 0x42e   : > { %6534 = vmatprep.subr.bf16.mxu0 %v7067_v31 }
 0x446   : > { %v6233_v52 = vpop.f32.mrb[24].mxu0 }
 0x447   : > { %v6234_v14 = vpop.f32.mrb[25].mxu0 }
 0x448   : > { %v6235_v6 = vadd.f32 %v6234_v14, %v6233_v52  ;;  %v6236_v18 = vpop.f32.mrb[26].mxu0 }
 0x449   : > { %v6237_v27 = vpop.f32.mrb[27].mxu0 }
 0x44a   : > { %v3398_v1 = vadd.f32 %v6235_v6, %v3358_v30 }
 0x44c   : > { %v3780_v17 = vadd.f32 %v6257_v3, %v3398_v1  ;;  %v6058_v3 = vld [vmem:[%s8734_s11] ss:$0 sm:$0xff]  ;;  %s6942_s11 = sshll.u32 %s7070_s0, 4  ;;  %s6943_s11 = int_to_ptr.vmem [resolvable:$false] %s6942_s11 }
 0x44d   : > { %s6944_s6 = scalar_lea.vmem %s6943_s11, 128  ;;  %p6945_p0 = scmp.lt.s32.totalorder %s8551_s5, %s6943_s11 }
 0x44e   : > { %p6946_p1 = scmp.lt.s32.totalorder %s6944_s6, %s6938_s9 }
 0x450   : > { %p6947_p2 = por %p6946_p1, %p6945_p0 }
 0x452   : > { %p6948_p3 = pnand %p6947_p2, %p6941_p13 }
 0x466   : > { %v6277_v19 = vpop.f32.mrb[28].mxu0 }
 0x467   : > { %v6278_v10 = vpop.f32.mrb[29].mxu0 }
 0x468   : > { %v6279_v20 = vadd.f32 %v6278_v10, %v6277_v19  ;;  %v6280_v21 = vpop.f32.mrb[30].mxu0 }
 0x469   : > { %v6281_v22 = vpop.f32.mrb[31].mxu0 }
 0x46a   : > { %v3820_v23 = vadd.f32 %v6279_v20, %v3780_v17 }
 0x46c   : > { %v3860_v32 = vadd.f32 %v6301_v53, %v3820_v23 }
 0x483   : > { %v4563_v47 = vpop.f32.mrb[32].mxu1 }
 0x484   : > { %v6484_v55 = vpop.f32.mrb[33].mxu1 }
 0x485   : > { %v4566_v13 = vpop.f32.mrb[34].mxu1 }
 0x486   : > { %v6321_v38 = vpop.f32.mrb[32].mxu0  ;;  %v6485_v33 = vpop.f32.mrb[35].mxu1 }
 0x487   : > { %v6322_v26 = vpop.f32.mrb[33].mxu0 }
 0x488   : > { %v6323_v41 = vadd.f32 %v6322_v26, %v6321_v38  ;;  %v6324_v24 = vpop.f32.mrb[34].mxu0  ;;  %v6879_v38 = vld [vmem:[%s8682_s21 + $0x60] sm:$0xff]  }
 0x489   : > { %v6325_v44 = vpop.f32.mrb[35].mxu0 }
 0x48a   : > { %v4444_v40 = vadd.f32 %v6345_v37, %v6323_v41  ;;  %v6874_v37 = vld [vmem:[%s8682_s21 + $0x28] sm:$0xff]  }
 0x4a6   : > { %v6365_v35 = vpop.f32.mrb[36].mxu0 }
 0x4a7   : > { %v6366_v45 = vpop.f32.mrb[37].mxu0 }
 0x4a8   : > { %v6367_v46 = vadd.f32 %v6366_v45, %v6365_v35  ;;  %v6368_v28 = vpop.f32.mrb[38].mxu0  ;;  %v6880_v35 = vld [vmem:[%s8682_s21 + $0x50] sm:$0xff]  }
 0x4a9   : > { %v6369_v56 = vpop.f32.mrb[39].mxu0  ;;  %v6881_v28 = vld [vmem:[%s8682_s21 + $0x68] sm:$0xff]  }
 0x4aa   : > { %v4484_v25 = vadd.f32 %v6367_v46, %v4444_v40  ;;  %v6882_v56 = vld [vmem:[%s8682_s21 + $0x58] sm:$0xff]  }
 0x4ac   : > { %v4489_v29 = vadd.f32 %v4484_v25, %v3860_v32 }
 0x4ae   : > { %v4497_v48 = vadd.f32 %v6058_v3, %v4489_v29  ;;  %v6883_v3 = vld [vmem:[%s8682_s21 + $0x80] sm:$0xff]  }
 0x4b0   : > { %v4498_v34 = vsub.f32 0.0, %v4497_v48 }
 0x4b2   : > { %v4499_v49 = vmul.f32 1.442695, %v4498_v34 }
 0x4b4   : > { %6927 = vpow2.f32 %v4499_v49  ;;  %v6885_v49 = vld [vmem:[%s8682_s21 + $0x88] sm:$0xff]  }
 0x4be   : > { %v6928_v50 = vpop.eup %6927 }
 0x4bf   : > { %v4501_v42 = vadd.f32 1.0, %v6928_v50  ;;  %v6886_v50 = vld [vmem:[%s8682_s21 + $0x78] sm:$0xff]  }
 0x4c1   : > { %6929 = vrcp.f32 %v4501_v42 }
 0x4cb   : > { %v6930_v53 = vpop.eup %6929 }
 0x4cc   : > { %v4503_v0 = vmul.f32 %v6930_v53, %v4497_v48  ;;  %v6884_v48 = vld [vmem:[%s8682_s21 + $0x70] sm:$0xff]  }
 0x4ce   : > { %v4505_v54 = vpack.c.bf16 %v4503_v0, %v4503_v0 }
 0x4d0   : > { %6491 = vmatmul.mubr.msk.bf16.vlgmr.msra.gmra.mrb[36].mxu1 %vm1098_vm1, %v4505_v54 }
 0x4d1   : > { %6495 = vmatpush3.bf16.msra.mxu1 %v6869_v51  ;;  %6498 = vmatprep.mubr.msk.bf16.mxu1 %vm7068_vm6, %v7067_v31 }
 0x4d2   : > { %6496 = vmatprep.subr.bf16.mxu1 %v7067_v31 }
 0x4d5   : > { %6497 = vmatpush3.bf16.msra.mxu1 %v6870_v62 }
 0x4d6   : > { %6510 = vmatprep.subr.bf16.mxu1 %v7067_v31 }
 0x4d8   : > { %6499 = vmatmul.mubr.msk.bf16.vlgmr.msra.gmra.mrb[40].mxu1 %vm1098_vm1, %v4688_v16 }
 0x4d9   : > { %6511 = vmatpush3.bf16.msra.mxu1 %v6872_v61  ;;  %6514 = vmatprep.mubr.msk.bf16.mxu1 %vm7068_vm6, %v7067_v31 }
 0x4da   : > { %6512 = vmatprep.subr.bf16.mxu1 %v7067_v31 }
 0x4dd   : > { %6513 = vmatpush3.bf16.msra.mxu1 %v6874_v37 }
 0x4de   : > { %6526 = vmatprep.subr.bf16.mxu1 %v7067_v31 }
 0x4e0   : > { %6515 = vmatmul.mubr.msk.bf16.vlgmr.msra.gmra.mrb[44].mxu1 %vm1098_vm1, %v4836_v12 }
 0x4e1   : > { %6530 = vmatprep.mubr.msk.bf16.mxu1 %vm7068_vm6, %v7067_v31  ;;  %6527 = vmatpush3.bf16.msra.mxu1 %v6875_v60 }
 0x4e2   : > { %6528 = vmatprep.subr.bf16.mxu1 %v7067_v31 }
 0x4e5   : > { %6529 = vmatpush3.bf16.msra.mxu1 %v6877_v63 }
 0x4e6   : > { %6542 = vmatprep.subr.bf16.mxu1 %v7067_v31  ;;  %v4825_v55 = vpop.f32.mrb[40].mxu0 }
 0x4e7   : > { %v6508_v33 = vpop.f32.mrb[41].mxu0 }
 0x4e8   : > { %v4828_v39 = vpop.f32.mrb[42].mxu0 }
 0x4e9   : > { %v6509_v7 = vpop.f32.mrb[43].mxu0 }
 0x5a3   : > { %v4618_v57 = vpop.f32.mrb[36].mxu1 }
 0x5a4   : > { %v4619_v30 = vadd.f32 %v4618_v57, %v4563_v47  ;;  %v6492_v4 = vpop.f32.mrb[37].mxu1 }
 0x5a5   : > { %v4621_v59 = vpop.f32.mrb[38].mxu1 }
 0x5a6   : > { %v4631_v8 = vadd.f32 %v6065_v5, %v4619_v30  ;;  %v6493_v52 = vpop.f32.mrb[39].mxu1 }
 0x5a8   : > { %v4641_v14 = vrot.slane %v4631_v8, %v7517_v43  ;;  %4633 = vst.msk [vmem:[%s8481_s14] sm:$0xf] %vm4632_vm10, %v4631_v8 }
 0x5aa   : > { %v4642_v9 = vcombine.high %v4641_v14, %v4641_v14  ;;  %v4645_v6 = vpack.c.bf16 %v4641_v14, %v4641_v14 }
 0x5ab   : > { %v4770_v54 = vpop.f32.mrb[40].mxu1 }
 0x5ac   : > { %v4646_v18 = vpack.c.bf16 %v4642_v9, %v4642_v9  ;;  %v4648_v27 = vshrl.u32 %v4645_v6, 16  ;;  %v4651_v11 = vshll.u32 %v4645_v6, 16  ;;  %v6500_v62 = vpop.f32.mrb[41].mxu1  ;;  %v4826_v13 = vadd.f32 %v4825_v55, %v4770_v54 }
 0x5ad   : > { %v4773_v47 = vpop.f32.mrb[42].mxu1 }
 0x5ae   : > { %v4650_v1 = vrot.slane %v4648_v27, 7  ;;  %v4655_v17 = vshrl.u32 %v4646_v18, 16  ;;  %v4658_v20 = vshll.u32 %v4646_v18, 16 }
 0x5b0   : > { %v4653_v19 = vor.u32 %v4651_v11, %v4650_v1  ;;  %v4657_v10 = vrot.slane %v4655_v17, 7 }
 0x5b2   : > { %v4660_v21 = vor.u32 %v4658_v20, %v4657_v10  ;;  %v4666_v43 = vsel %vm8432_vm9, 0, %v4653_v19 }
 0x5b3   : > { %v4671_v22 = vsel %vm4670_vm13, %v4666_v43, 0 }
 0x5b4   : > { %v4693_v23 = vshrl.u32 %v4671_v22, 16  ;;  %v4704_v32 = vrot.slane %v4671_v22, 1  ;;  %v4678_v26 = vshll.u32 %v4671_v22, 16  ;;  %v4667_v41 = vsel %vm8432_vm9, 0, %v4660_v21 }
 0x5b5   : > { %v4672_v24 = vsel %vm4670_vm13, %v4667_v41, 0 }
 0x5b6   : > { %v4710_v44 = vsel %vm8432_vm9, %v4693_v23, %v4704_v32  ;;  %v4680_v40 = vrot.slane %v4678_v26, 1  ;;  %v4682_v45 = vshll.u32 %v4672_v24, 16  ;;  %v4695_v42 = vshrl.u32 %v4672_v24, 16 }
 0x5b7   : > { %6531 = vmatmul.mubr.msk.bf16.vlgmr.msra.gmra.mrb[48].mxu1 %vm1098_vm1, %v4710_v44  ;;  %v4705_v53 = vrot.slane %v4672_v24, 1 }
 0x5b8   : > { %6543 = vmatpush3.bf16.msra.mxu1 %v6879_v38  ;;  %v4689_v46 = vsel %vm8432_vm9, %v4671_v22, %v4680_v40  ;;  %6546 = vmatprep.mubr.msk.bf16.mxu1 %vm7068_vm6, %v7067_v31  ;;  %v4684_v25 = vrot.slane %v4682_v45, 1 }
 0x5b9   : > { %6523 = vmatmul.mubr.msk.bf16.vlgmr.msra.gmra.mrb[44].mxu0 %vm1098_vm1, %v4689_v46  ;;  %6544 = vmatprep.subr.bf16.mxu1 %v7067_v31  ;;  %v5021_v34 = vshrl.u32 %v4689_v46, 16  ;;  %v4711_v51 = vsel %vm8432_vm9, %v4695_v42, %v4705_v53 }
 0x5ba   : > { %6535 = vmatpush3.bf16.msra.mxu0 %v6880_v35  ;;  %6538 = vmatprep.mubr.msk.bf16.mxu0 %vm7068_vm6, %v7067_v31  ;;  %v4690_v29 = vsel %vm8432_vm9, %v4672_v24, %v4684_v25 }
 0x5bb   : > { %6536 = vmatprep.subr.bf16.mxu0 %v7067_v31  ;;  %v5206_v0 = vshrl.u32 %v4690_v29, 16 }
 0x5bc   : > { %6545 = vmatpush3.bf16.msra.mxu1 %v6881_v28 }
 0x5bd   : > { %6558 = vmatprep.subr.bf16.mxu1 %v7067_v31 }
 0x5be   : > { %6537 = vmatpush3.bf16.msra.mxu0 %v6882_v56 }
 0x5bf   : > { %6547 = vmatmul.mubr.msk.bf16.vlgmr.msra.gmra.mrb[52].mxu1 %vm1098_vm1, %v4690_v29  ;;  %6550 = vmatprep.subr.bf16.mxu0 %v7067_v31 }
 0x5c0   : > { %6559 = vmatpush3.bf16.msra.mxu1 %v6883_v3  ;;  %6562 = vmatprep.mubr.msk.bf16.mxu1 %vm7068_vm6, %v7067_v31 }
 0x5c1   : > { %6539 = vmatmul.mubr.msk.bf16.vlgmr.msra.gmra.mrb[48].mxu0 %vm1098_vm1, %v5021_v34  ;;  %6560 = vmatprep.subr.bf16.mxu1 %v7067_v31 }
 0x5c2   : > { %6551 = vmatpush3.bf16.msra.mxu0 %v6884_v48  ;;  %6554 = vmatprep.mubr.msk.bf16.mxu0 %vm7068_vm6, %v7067_v31 }
 0x5c3   : > { %6552 = vmatprep.subr.bf16.mxu0 %v7067_v31  ;;  %v6501_v31 = vpop.f32.mrb[43].mxu1 }
 0x5c4   : > { %6561 = vmatpush3.bf16.msra.mxu1 %v6885_v49  ;;  %v4887_v36 = vpop.f32.mrb[44].mxu1 }
 0x5c5   : > { %v8540_v16 = vadd.f32 %v4887_v36, %v4826_v13  ;;  %v6516_v61 = vpop.f32.mrb[45].mxu1 }
 0x5c6   : > { %6553 = vmatpush3.bf16.msra.mxu0 %v6886_v50  ;;  %v4890_v15 = vpop.f32.mrb[46].mxu1 }
 0x5c7   : > { %6563 = vmatmul.mubr.msk.bf16.vlgmr.msra.gmra.mrb[56].mxu1 %vm1098_vm1, %v5206_v0  ;;  %v6517_v37 = vpop.f32.mrb[47].mxu1 }
 0x5c9   : > { %6555 = vmatmul.mubr.msk.bf16.vlgmr.msra.gmra.mrb[52].mxu0 %vm1098_vm1, %v4711_v51 }
 0x5ca   : > { %6951 = shalt.err (!%p6948_p3)
}
 0x5cb   : > { %s6952_s14 = scalar_lea.hbm %s8548_s7, 64  ;;  %s6956_s0 = scalar_lea.hbm %s8686_s25, 128 }
 0x5cc   : > { %p6953_p4 = scmp.ne.s32.totalorder %s8548_s7, %s6952_s14  ;;  %p6957_p9 = scmp.lt.u32.totalorder %s8548_s7, %s8686_s25 }
 0x5cd   : > { %p6958_p10 = scmp.lt.u32.totalorder %s6956_s0, %s6952_s14  ;;  %p6960_p12 = scmp.lt.u32.totalorder %s6952_s14, %s8548_s7 }
 0x5ce   : > { %p6954_p7 = pnand %p6953_p4, %p7250_p5 }
 0x5cf   : > { %p6959_p11 = por %p6958_p10, %p6957_p9 }
 0x5d0   : > { %p6955_p8 = pneg %p6954_p7 }
 0x5d1   : > { %p6961_p13 = por %p6960_p12, %p6959_p11 }
 0x5d3   : > { %p6962_p0 = pnand %p6961_p13, %p6955_p8 }
 0x5d5   : > { %6965 = shalt.err (!%p6962_p0)
}
 0x5d6   : > { %6595 = dma.vmem_to_hbm [thread:$0]  (%p7250_p5), %s8551_s5, 64, %s8548_s7, %s8554_s12  }
 0x5d7   : > { %s8583_s30 = scalar_lea.hbm %s8685_s24, %s6137_s13  ;;  %s8737_s14 = sshll.u32 %s8384_s1, 4  ;;  %s8587_s14 = int_to_ptr.vmem [resolvable:$true] %s8737_s14 }
 0x5d8   : > { %s5274_s29 = scalar_lea.sflag [#allocation3], %s8376_s4  ;;  %s6966_s0 = scalar_lea.vmem %s8587_s14, 256 }
 0x5d9   : > { %p6967_p1 = scmp.ne.s32.totalorder %s8587_s14, %s6966_s0  ;;  %s7071_s10 = smov [#allocation2]  }
 0x5da   : > { %s6970_s7 = sshll.u32 %s7071_s10, 4  ;;  %s6971_s7 = int_to_ptr.vmem [resolvable:$false] %s6970_s7 }
 0x5db   : > { %p6968_p2 = pnand %p6967_p1, %p7250_p5  ;;  %s6972_s5 = scalar_lea.vmem %s6971_s7, 512 }
 0x5dc   : > { %p6973_p4 = scmp.lt.s32.totalorder %s8587_s14, %s6971_s7  ;;  %p6974_p7 = scmp.lt.s32.totalorder %s6972_s5, %s6966_s0 }
 0x5dd   : > { %p6969_p3 = pneg %p6968_p2 }
 0x5de   : > { %p6975_p8 = por %p6974_p7, %p6973_p4 }
 0x5e0   : > { %p6976_p9 = pnand %p6975_p8, %p6969_p3 }
 0x5e2   : > { %6979 = shalt.err (!%p6976_p9)
}
 0x5e3   : > { %s6980_s1 = scalar_lea.hbm %s8583_s30, 256  ;;  %s6984_s9 = scalar_lea.hbm %s8685_s24, 512 }
 0x5e4   : > { %p6981_p10 = scmp.ne.s32.totalorder %s8583_s30, %s6980_s1  ;;  %p6985_p13 = scmp.lt.u32.totalorder %s8583_s30, %s8685_s24 }
 0x5e5   : > { %p6986_p0 = scmp.lt.u32.totalorder %s6984_s9, %s6980_s1  ;;  %p6988_p2 = scmp.lt.u32.totalorder %s6980_s1, %s8583_s30 }
 0x5e6   : > { %p6982_p11 = pnand %p6981_p10, %p7250_p5 }
 0x5e7   : > { %p6987_p1 = por %p6986_p0, %p6985_p13 }
 0x5e8   : > { %p6983_p12 = pneg %p6982_p11 }
 0x5e9   : > { %p6989_p3 = por %p6988_p2, %p6987_p1 }
 0x5eb   : > { %p6990_p4 = pnand %p6989_p3, %p6983_p12 }
 0x5ed   : > { %6993 = shalt.err (!%p6990_p4)
}
 0x5ee   : > { %s7072_s0 = smov 128   ;;  %s7073_s7 = smov 8   ;;  %v5264_v32 = vld [vmem:[%s8683_s22] sm:$0x1]  ;;  %vm5266_vm14 = vcmask 516096  }
 0x5ef   : > { %6594 = dma.vmem_to_hbm [thread:$0]  (%p7250_p5), %s8587_s14, 256, %s8583_s30, %s5274_s29, %s7072_s0, %s7072_s0, %s7073_s7  }
 0x5f0   : > { %s6130_s29 = sshll.u32 %s7231_s8, 4  ;;  %s881_s5 = scalar_lea.vmem [#allocation6], %s8376_s4 }
 0x5f1   : > { %s5328_s1 = sshll.u32 %s881_s5, 4  ;;  %s8622_s9 = scalar_lea.hbm %s8687_s26, %s6130_s29  ;;  %s5329_s1 = int_to_ptr.vmem [resolvable:$true] %s5328_s1 }
 0x5f2   : > { %s6994_s6 = scalar_lea.vmem %s5329_s1, 16  ;;  %s7074_s10 = smov [#allocation6]  }
 0x5f3   : > { %p6995_p7 = scmp.ne.s32.totalorder %s5329_s1, %s6994_s6  ;;  %s6998_s8 = sshll.u32 %s7074_s10, 4  ;;  %s6999_s8 = int_to_ptr.vmem [resolvable:$false] %s6998_s8 }
 0x5f4   : > { %s7000_s4 = scalar_lea.vmem %s6999_s8, 32  ;;  %p7001_p10 = scmp.lt.s32.totalorder %s5329_s1, %s6999_s8 }
 0x5f5   : > { %p6996_p8 = pnand %p6995_p7, %p7250_p5  ;;  %p7002_p11 = scmp.lt.s32.totalorder %s7000_s4, %s6994_s6 }
 0x5f7   : > { %p6997_p9 = pneg %p6996_p8  ;;  %p7003_p12 = por %p7002_p11, %p7001_p10 }
 0x5f9   : > { %p7004_p13 = pnand %p7003_p12, %p6997_p9 }
 0x68a   : > { %v5009_v12 = vpop.f32.mrb[48].mxu1 }
 0x68b   : > { %v6532_v60 = vpop.f32.mrb[49].mxu1 }
 0x68c   : > { %v4948_v58 = vpop.f32.mrb[44].mxu0  ;;  %v5012_v63 = vpop.f32.mrb[50].mxu1 }
 0x68d   : > { %v4954_v2 = vadd.f32 %v4948_v58, %v8540_v16  ;;  %v6524_v57 = vpop.f32.mrb[45].mxu0  ;;  %v6533_v5 = vpop.f32.mrb[51].mxu1 }
 0x68e   : > { %v4951_v30 = vpop.f32.mrb[46].mxu0 }
 0x68f   : > { %v6525_v4 = vpop.f32.mrb[47].mxu0  ;;  %v5015_v59 = vadd.f32 %v5009_v12, %v4954_v2 }
 0x692   : > { %v5133_v8 = vpop.f32.mrb[52].mxu1 }
 0x693   : > { %v6548_v52 = vpop.f32.mrb[53].mxu1 }
 0x694   : > { %v5072_v14 = vpop.f32.mrb[48].mxu0  ;;  %v5136_v9 = vpop.f32.mrb[54].mxu1 }
 0x695   : > { %v5078_v6 = vadd.f32 %v5072_v14, %v5015_v59  ;;  %v6540_v18 = vpop.f32.mrb[49].mxu0  ;;  %v6549_v27 = vpop.f32.mrb[55].mxu1 }
 0x696   : > { %v5075_v1 = vpop.f32.mrb[50].mxu0 }
 0x697   : > { %v6541_v11 = vpop.f32.mrb[51].mxu0  ;;  %v5139_v17 = vadd.f32 %v5133_v8, %v5078_v6 }
 0x69a   : > { %v5257_v19 = vpop.f32.mrb[56].mxu1 }
 0x69b   : > { %v6564_v10 = vpop.f32.mrb[57].mxu1 }
 0x69c   : > { %v5194_v20 = vpop.f32.mrb[52].mxu0  ;;  %v5260_v21 = vpop.f32.mrb[58].mxu1 }
 0x69d   : > { %v5200_v43 = vadd.f32 %v5194_v20, %v5139_v17  ;;  %v6556_v22 = vpop.f32.mrb[53].mxu0  ;;  %v6565_v23 = vpop.f32.mrb[59].mxu1 }
 0x69e   : > { %v5197_v38 = vpop.f32.mrb[54].mxu0 }
 0x69f   : > { %v5263_v26 = vadd.f32 %v5257_v19, %v5200_v43  ;;  %v6557_v41 = vpop.f32.mrb[55].mxu0 }
 0x6a1   : > { %v5265_v24 = vadd.f32 %v5264_v32, %v5263_v26 }
 0x6a3   : > { %5267 = vst.msk [vmem:[%s881_s5] sm:$0x1] %vm5266_vm14, %v5265_v24 }
 0x6a4   : > { %7007 = shalt.err (!%p7004_p13)
}
 0x6a5   : > { %s7008_s0 = scalar_lea.hbm %s8622_s9, 16  ;;  %s7012_s14 = scalar_lea.hbm %s8687_s26, 32 }
 0x6a6   : > { %p7009_p0 = scmp.ne.s32.totalorder %s8622_s9, %s7008_s0  ;;  %p7013_p3 = scmp.lt.u32.totalorder %s8622_s9, %s8687_s26 }
 0x6a7   : > { %p7014_p4 = scmp.lt.u32.totalorder %s7012_s14, %s7008_s0  ;;  %p7016_p8 = scmp.lt.u32.totalorder %s7008_s0, %s8622_s9 }
 0x6a8   : > { %p7010_p1 = pnand %p7009_p0, %p7250_p5 }
 0x6a9   : > { %p7015_p7 = por %p7014_p4, %p7013_p3 }
 0x6aa   : > { %p7011_p2 = pneg %p7010_p1 }
 0x6ab   : > { %p7017_p9 = por %p7016_p8, %p7015_p7 }
 0x6ad   : > { %p7018_p10 = pnand %p7017_p9, %p7011_p2 }
 0x6af   : > { %7021 = shalt.err (!%p7018_p10)
}
 0x6b0   : > { %6596 = dma.vmem_to_hbm [thread:$0]  (%p7250_p5), %s5329_s1, 16, %s8622_s9, %s8554_s12  }
 0x6b1 PF: > { %p6610_p11 = scmp.ge.s32.totalorder %s7060_s28, 2  ;;  %s5348_s11 = sand.u32 1, %s7048_s27  }
 0x6b2   : > { %s5349_s6 = scalar_lea.sflag [#allocation3], %s5348_s11 }
 0x6b3   : > { %p6601_p12 = pnand %p6610_p11, %p7254_p6 }
 0x6b5   : > { %7039 = dma.done.wait (!%p6601_p12), %s5349_s6, 256  }
 0x6b6   : > { %7041 = vsyncadd (!%p6601_p12), %s5349_s6, 4294967040  ;;  %s8739_s10 = sadd.s32 4294967294, %s7060_s28  }
 0x6b7   : > { %s5357_s8 = sand.u32 1, %s8739_s10  }
 0x6b8   : > { %s5358_s4 = scalar_lea.sflag [#allocation5], %s5357_s8 }
 0x6b9   : > { %7043 = dma.done.wait (!%p6601_p12), %s5358_s4, 80  }
 0x6ba   : > { %7045 = vsyncadd (!%p6601_p12), %s5358_s4, 4294967216  ;;  %s8740_s28 = sld [smem:[#allocation10_spill]]  ;;  %s8741_s2 = sld [smem:[#allocation9_spill]] }
 0x6bb   : > { %s8742_s7 = sld [smem:[#allocation11_spill]]  ;;  %s8743_s27 = smov %s7052_s3 }
 0x6c0   : > { %p40_p5 = scmp.ge.s32.totalorder %s8740_s28, 4   ;;  %s8744_s3 = smov %s8741_s2 }
 0x6c2   :  { %42 = sbr.rel (!%p40_p5) target bundleno = 21 (0x15), region = 220 }
 0x6c9   :  { %5371 = vsyncpa [#allocation3], 1 }
 0x6ca   :  { %5373 = vsyncpa [#allocation3 + $0x1], 1 }
 0x6cb   :  { %5374 = vsyncpa [#allocation5], 1 }
 0x6cc   :  { %5376 = vsyncpa [#allocation5 + $0x1], 1 }

</bundles_post_ra>
